<compile_context>
chip_gen: v7x
topology: tpu7x:2x2x1
jax: 0.10.0
libtpu: 0.0.40
codegen_flags: <defaults>
</compile_context>

<pallas_src>
import functools
import inspect

import jax
import jax.numpy as jnp
from jax import lax
from jax.experimental import pallas as pl
from jax.experimental.pallas import tpu as pltpu


def _round_up(v, m):
    return (v + m - 1) // m * m


def _supports_pipeline_mode():
    try:
        return hasattr(pl, "Buffered") and (
            "pipeline_mode" in inspect.signature(pl.BlockSpec).parameters)
    except (TypeError, ValueError):
        return False


_HAS_PIPELINE_MODE = _supports_pipeline_mode()


def _bottleneck_kernel(x_ref, w1_ref, b1_ref, w2_ref, b2_ref, w3_ref, b3_ref,
                       o_ref, hbuf, *, W, HW, top_pad, P_p):
    """One image per grid step.

    x_ref : (1, HW, Cin)     bf16  activation, channels-last, unpadded channels
    w1_ref: (Cin, P_p)       bf16  conv1 weight (MTL scale + BN1 scale folded)
    w2_ref: (3, 3*P_p, P_p)  bf16  conv2 weights, kx-fused per ky
    w3_ref: (P_p, Cout)      bf16  conv3 weight (MTL + BN3 scale folded)
    b*_ref: (1, .)           f32   folded BN biases
    o_ref : (1, HW, Cout)    bf16
    hbuf  : (rows, 3*P_p)    bf16  staging scratch: masked dx=-1/0/+1 copies of h1
    """
    x = x_ref[0]                                                    # (HW, Cin) bf16

    # ---- conv1 (1x1, MTL + BN1 scale folded) + bias + relu -------------------
    h1 = jnp.dot(x, w1_ref[...], preferred_element_type=jnp.float32)
    h1 = jnp.maximum(h1 + b1_ref[...], 0.0)                         # (HW, P_p) f32

    # ---- column-edge masks (in-kernel iota; no side input) -------------------
    col = lax.broadcasted_iota(jnp.int32, (HW, 1), 0) % W
    zrow = jnp.zeros((1, P_p), jnp.float32)
    # left[r]  = h1[r-1], zeroed on column 0     (the dx = -1 tap, pre-masked)
    # right[r] = h1[r+1], zeroed on column W-1   (the dx = +1 tap, pre-masked)
    left = jnp.where(col >= 1, jnp.concatenate([zrow, h1[:-1]], axis=0), 0.0)
    right = jnp.where(col <= W - 2, jnp.concatenate([h1[1:], zrow], axis=0), 0.0)

    # ---- zero the vertical halo (small; every step for megacore safety) ------
    halo = jnp.zeros((W, 3 * P_p), jnp.bfloat16)
    hbuf[pl.ds(top_pad - W, W), :] = halo          # rows read by dy = -1 at y == 0
    hbuf[pl.ds(top_pad + HW, W), :] = halo         # rows read by dy = +1 at y == H-1

    # ---- stage the three pre-shifted, pre-masked lane groups (all aligned) ---
    hbuf[pl.ds(top_pad, HW), 0:P_p] = left.astype(jnp.bfloat16)          # dx = -1
    hbuf[pl.ds(top_pad, HW), P_p:2 * P_p] = h1.astype(jnp.bfloat16)      # dx =  0
    hbuf[pl.ds(top_pad, HW), 2 * P_p:3 * P_p] = right.astype(jnp.bfloat16)  # dx = +1

    # ---- conv2 (3x3, stride=1, pad=1): one K = 3*P_p matmul per dy -----------
    h2 = jnp.dot(hbuf[pl.ds(top_pad - W, HW), :], w2_ref[0],
                 preferred_element_type=jnp.float32)                # dy = -1
    h2 = h2 + jnp.dot(hbuf[pl.ds(top_pad, HW), :], w2_ref[1],
                      preferred_element_type=jnp.float32)           # dy =  0
    h2 = h2 + jnp.dot(hbuf[pl.ds(top_pad + W, HW), :], w2_ref[2],
                      preferred_element_type=jnp.float32)           # dy = +1
    h2 = jnp.maximum(h2 + b2_ref[...], 0.0)                         # (HW, P_p) f32

    # ---- conv3 (1x1) + bn3 bias + residual add + relu ------------------------
    h3 = jnp.dot(h2.astype(jnp.bfloat16), w3_ref[...],
                 preferred_element_type=jnp.float32)                # (HW, Cout)
    out = jnp.maximum(h3 + b3_ref[...] + x.astype(jnp.float32), 0.0)
    o_ref[0] = out.astype(jnp.bfloat16)


def _fold_bn(gamma, beta, mean, var, eps=1e-5):
    scale = gamma / jnp.sqrt(var + eps)
    shift = beta - mean * scale
    return scale, shift


def _pad2(a, shape):
    return jnp.pad(a, [(0, shape[0] - a.shape[0]), (0, shape[1] - a.shape[1])])


@functools.partial(jax.jit, static_argnames=("single_buffer_consts",))
def bottleneck_mtl_forward(x_nchw, params, *, single_buffer_consts=True):
    """Forward pass of BottleneckMtl (downsample=None, stride=1). x is NCHW f32."""
    N, Cin, H, W = x_nchw.shape
    HW = H * W

    # ---- fold Conv2dMtl (weight * mtl_weight) and the BN scale into weights ----
    s1, b1 = _fold_bn(*params['bn1'])
    s2, b2 = _fold_bn(*params['bn2'])
    s3, b3 = _fold_bn(*params['bn3'])

    w1 = (params['w1'] * params['mtl1'])[:, :, 0, 0].T * s1[None, :]       # (Cin, P)
    w2f = params['w2'] * params['mtl2']                                    # (P,P,3,3)
    w3 = (params['w3'] * params['mtl3'])[:, :, 0, 0].T * s3[None, :]       # (P, Cout)

    P = w1.shape[1]
    Cout = w3.shape[1]
    assert Cout == Cin, "identity residual requires inplanes == planes * expansion"

    # Mid channels padded to 128 lanes for the VMEM-resident weights / scratch only;
    # the HBM-side x / out keep their true channel counts (fewer DMA bytes wins).
    p_p = _round_up(P, 128)

    w1p = jnp.pad(w1, [(0, 0), (0, p_p - P)]).astype(jnp.bfloat16)         # (Cin,p_p)
    # conv2 weights fused over kx: w2p[ky][g*p_p:(g+1)*p_p, :] = W(ky, kx=g)
    w2p = jnp.stack([
        jnp.concatenate([_pad2(w2f[:, :, ky, kx].T * s2[None, :], (p_p, p_p))
                         for kx in range(3)], axis=0)
        for ky in range(3)], axis=0).astype(jnp.bfloat16)                  # (3,3p_p,p_p)
    w3p = jnp.pad(w3, [(0, p_p - P), (0, 0)]).astype(jnp.bfloat16)         # (p_p,Cout)
    b1p = jnp.pad(b1, (0, p_p - P)).reshape(1, p_p).astype(jnp.float32)
    b2p = jnp.pad(b2, (0, p_p - P)).reshape(1, p_p).astype(jnp.float32)
    b3p = b3.reshape(1, Cout).astype(jnp.float32)

    # NCHW f32 -> (N, H*W, C) channels-last bf16 (halves activation HBM traffic).
    x_flat = jnp.transpose(x_nchw, (0, 2, 3, 1)).reshape(N, HW, Cin)
    x_flat = x_flat.astype(jnp.bfloat16)

    top_pad = _round_up(W, 16)                      # >= W and bf16 sublane aligned
    scratch_rows = _round_up(top_pad + HW + W, 16)

    # Scoped-VMEM budget = per-step working set (+generous headroom), capped <100MB.
    vmem_bytes = (
        2 * 2 * HW * Cin * 2                                   # x + out, double-buffered bf16
        + scratch_rows * 3 * p_p * 2                           # hbuf staging scratch
        + (Cin * p_p + 9 * p_p * p_p + p_p * Cout) * 2         # folded bf16 weights
        + (2 * p_p + Cout) * 4                                 # biases
        + 8 * HW * p_p * 4                                     # f32 temporaries (h1/h2/taps)
    )
    vmem_limit = int(min(100 * 1024 * 1024, 2 * vmem_bytes + (8 << 20)))

    # Single-buffer the grid-invariant operands (constant index maps) when supported.
    if single_buffer_consts and _HAS_PIPELINE_MODE:
        const_kw = {"pipeline_mode": pl.Buffered(1)}
    else:
        const_kw = {}

    def const_spec(shape):
        zeros = (0,) * len(shape)
        return pl.BlockSpec(shape, lambda n: zeros, **const_kw)

    kernel = functools.partial(_bottleneck_kernel, W=W, HW=HW,
                               top_pad=top_pad, P_p=p_p)
    out = pl.pallas_call(
        kernel,
        out_shape=jax.ShapeDtypeStruct((N, HW, Cout), jnp.bfloat16),
        grid_spec=pltpu.PrefetchScalarGridSpec(
            num_scalar_prefetch=0,
            grid=(N,),
            in_specs=[
                pl.BlockSpec((1, HW, Cin), lambda n: (n, 0, 0)),   # x (per image)
                const_spec((Cin, p_p)),                            # w1
                const_spec((1, p_p)),                              # b1
                const_spec((3, 3 * p_p, p_p)),                     # w2 (kx-fused taps)
                const_spec((1, p_p)),                              # b2
                const_spec((p_p, Cout)),                           # w3
                const_spec((1, Cout)),                             # b3
            ],
            out_specs=pl.BlockSpec((1, HW, Cout), lambda n: (n, 0, 0)),
            scratch_shapes=[pltpu.VMEM((scratch_rows, 3 * p_p), jnp.bfloat16)],
        ),
        compiler_params=pltpu.CompilerParams(
            dimension_semantics=("parallel",),
            vmem_limit_bytes=vmem_limit),
        # Identity residual: bf16 input and bf16 output share shape+dtype; alias
        # them so only one full-size HBM activation buffer exists.
        input_output_aliases=({0: 0} if Cin == Cout else {}),
    )(x_flat, w1p, b1p, w2p, b2p, w3p, b3p)

    # (N, H*W, Cout) bf16 -> NCHW f32 (PyTorch-like interface for the demo).
    return out.astype(jnp.float32).reshape(N, H, W, Cout).transpose(0, 3, 1, 2)


def init_params(key, inplanes, planes, expansion=4):
    """Deterministic synthetic parameters; shapes follow BottleneckMtl.__init__."""
    keys = jax.random.split(key, 20)

    def nrm(k, shape, scale=0.1):
        return scale * jax.random.normal(k, shape, jnp.float32)

    def uni(k, shape, lo=0.5, hi=1.5):
        return jax.random.uniform(k, shape, jnp.float32, lo, hi)

    cout = planes * expansion
    p = {}
    p['w1'] = nrm(keys[0], (planes, inplanes, 1, 1))
    p['mtl1'] = uni(keys[15], (planes, inplanes, 1, 1), 0.8, 1.2)   # Conv2dMtl scale
    p['bn1'] = (uni(keys[1], (planes,)), nrm(keys[2], (planes,)),
                nrm(keys[3], (planes,)), uni(keys[4], (planes,)))   # gamma,beta,mean,var
    p['w2'] = nrm(keys[5], (planes, planes, 3, 3))
    p['mtl2'] = uni(keys[16], (planes, planes, 1, 1), 0.8, 1.2)
    p['bn2'] = (uni(keys[6], (planes,)), nrm(keys[7], (planes,)),
                nrm(keys[8], (planes,)), uni(keys[9], (planes,)))
    p['w3'] = nrm(keys[10], (cout, planes, 1, 1))
    p['mtl3'] = uni(keys[17], (cout, planes, 1, 1), 0.8, 1.2)
    p['bn3'] = (uni(keys[11], (cout,)), nrm(keys[12], (cout,)),
                nrm(keys[13], (cout,)), uni(keys[14], (cout,)))
    return p


def reference_forward(x, params, eps=1e-5):
    """Pure-JAX NCHW reference (eval-mode BN), f32 HIGHEST precision."""
    def conv(y, w, mtl, stride=1, pad=0):
        return lax.conv_general_dilated(
            y, w * mtl, (stride, stride), [(pad, pad), (pad, pad)],
            dimension_numbers=('NCHW', 'OIHW', 'NCHW'),
            precision=lax.Precision.HIGHEST)

    def bn(y, g, b, m, v):
        s = g / jnp.sqrt(v + eps)
        return y * s[None, :, None, None] + (b - m * s)[None, :, None, None]

    out = jax.nn.relu(bn(conv(x, params['w1'], params['mtl1']), *params['bn1']))
    out = jax.nn.relu(bn(conv(out, params['w2'], params['mtl2'], 1, 1), *params['bn2']))
    out = bn(conv(out, params['w3'], params['mtl3']), *params['bn3'])
    return jax.nn.relu(out + x)


if __name__ == "__main__":
    key = jax.random.PRNGKey(0)
    N, H, W = 2, 16, 16
    planes = 8
    inplanes = planes * 4            # identity residual => downsample=None, stride=1

    kx, kp = jax.random.split(key)
    x = jax.random.normal(kx, (N, inplanes, H, W), jnp.float32)     # NCHW like PyTorch
    params = init_params(kp, inplanes, planes)

    try:
        out = jax.block_until_ready(
            bottleneck_mtl_forward(x, params, single_buffer_consts=True))
    except Exception:
        # Version-compat fallback: if this JAX rejects pipeline_mode=pl.Buffered(1),
        # retry with default (double-buffered) constant operands — identical math.
        out = jax.block_until_ready(
            bottleneck_mtl_forward(x, params, single_buffer_consts=False))
    assert out.shape == (N, inplanes, H, W)

    ref = reference_forward(x, params)
    err = float(jnp.max(jnp.abs(out - ref)))
    # bf16 activations in HBM + bf16 MXU matmuls vs the f32 HIGHEST reference.
    assert err < 1e-1, f"max abs error vs reference: {err}"

    print("KERNEL_OK")
</pallas_src>

<mosaic_0001>
module attributes {stable_mosaic.version = 11 : i64} {
  func.func @_bottleneck_kernel(%arg0: i32, %arg1: memref<1x256x32xbf16, #tpu.memory_space<vmem>>, %arg2: memref<32x128xbf16, #tpu.memory_space<vmem>>, %arg3: memref<1x128xf32, #tpu.memory_space<vmem>>, %arg4: memref<3x384x128xbf16, #tpu.memory_space<vmem>>, %arg5: memref<1x128xf32, #tpu.memory_space<vmem>>, %arg6: memref<128x32xbf16, #tpu.memory_space<vmem>>, %arg7: memref<1x32xf32, #tpu.memory_space<vmem>>, %arg8: memref<1x256x32xbf16, #tpu.memory_space<vmem>>, %arg9: memref<288x384xbf16, #tpu.memory_space<vmem>>) attributes {dimension_semantics = [#tpu.dimension_semantics<parallel>], iteration_bounds = array<i64: 2>, scalar_prefetch = 0 : i64, scratch_operands = 1 : i64, tpu.core_type = #tpu.core_type<tc>, window_params = [{transform_indices = @transform_0, window_bounds = array<i64: 1, 256, 32>}, {pipeline_mode = #tpu.pipeline_mode<synchronous>, transform_indices = @transform_1, window_bounds = array<i64: 32, 128>}, {pipeline_mode = #tpu.pipeline_mode<synchronous>, transform_indices = @transform_2, window_bounds = array<i64: 1, 128>}, {pipeline_mode = #tpu.pipeline_mode<synchronous>, transform_indices = @transform_3, window_bounds = array<i64: 3, 384, 128>}, {pipeline_mode = #tpu.pipeline_mode<synchronous>, transform_indices = @transform_4, window_bounds = array<i64: 1, 128>}, {pipeline_mode = #tpu.pipeline_mode<synchronous>, transform_indices = @transform_5, window_bounds = array<i64: 128, 32>}, {pipeline_mode = #tpu.pipeline_mode<synchronous>, transform_indices = @transform_6, window_bounds = array<i64: 1, 32>}, {transform_indices = @transform_7, window_bounds = array<i64: 1, 256, 32>}]} {
    %c0 = arith.constant 0 : index
    %c0_0 = arith.constant 0 : index
    %c0_1 = arith.constant 0 : index
    %0 = vector.load %arg1[%c0, %c0_0, %c0_1] : memref<1x256x32xbf16, #tpu.memory_space<vmem>>, vector<1x256x32xbf16>
    %1 = vector.shape_cast %0 : vector<1x256x32xbf16> to vector<256x32xbf16>
    %c0_2 = arith.constant 0 : index
    %c0_3 = arith.constant 0 : index
    %2 = vector.load %arg2[%c0_2, %c0_3] : memref<32x128xbf16, #tpu.memory_space<vmem>>, vector<32x128xbf16>
    %cst = arith.constant dense<0.000000e+00> : vector<256x128xf32>
    %3 = tpu.matmul %1, %2, %cst {dimension_numbers = #tpu.dot_dimension_numbers<[1], [0], [0], [1], [0, 0, 1, 1], [], []>} : vector<256x32xbf16>, vector<32x128xbf16>, vector<256x128xf32> -> vector<256x128xf32>
    %c0_4 = arith.constant 0 : index
    %c0_5 = arith.constant 0 : index
    %4 = vector.load %arg3[%c0_4, %c0_5] : memref<1x128xf32, #tpu.memory_space<vmem>>, vector<1x128xf32>
    %5 = vector.broadcast %4 : vector<1x128xf32> to vector<256x128xf32>
    %6 = arith.addf %3, %5 : vector<256x128xf32>
    %cst_6 = arith.constant 0.000000e+00 : f32
    %7 = vector.broadcast %cst_6 : f32 to vector<256x128xf32>
    %8 = arith.maximumf %6, %7 : vector<256x128xf32>
    %9 = tpu.iota {dimensions = array<i32: 0>} : vector<256x1xi32>
    %c16_i32 = arith.constant 16 : i32
    %c0_i32 = arith.constant 0 : i32
    %10 = arith.cmpi eq, %c16_i32, %c0_i32 : i32
    %c1_i32 = arith.constant 1 : i32
    %11 = arith.select %10, %c1_i32, %c16_i32 : i32
    %12 = vector.broadcast %11 : i32 to vector<256x1xi32>
    %13 = arith.remsi %9, %12 : vector<256x1xi32>
    %c0_i32_7 = arith.constant 0 : i32
    %14 = vector.broadcast %c0_i32_7 : i32 to vector<256x1xi32>
    %15 = arith.cmpi ne, %13, %14 : vector<256x1xi32>
    %c0_i32_8 = arith.constant 0 : i32
    %16 = vector.broadcast %c0_i32_8 : i32 to vector<256x1xi32>
    %17 = arith.cmpi slt, %13, %16 : vector<256x1xi32>
    %c0_i32_9 = arith.constant 0 : i32
    %18 = arith.cmpi slt, %11, %c0_i32_9 : i32
    %19 = vector.broadcast %18 : i1 to vector<256x1xi1>
    %20 = vector.broadcast %19 : vector<256x1xi1> to vector<256x1xi1>
    %21 = arith.xori %17, %20 : vector<256x1xi1>
    %22 = arith.andi %21, %15 : vector<256x1xi1>
    %23 = vector.broadcast %11 : i32 to vector<256x1xi32>
    %24 = arith.addi %13, %23 : vector<256x1xi32>
    %25 = arith.select %22, %24, %13 : vector<256x1xi1>, vector<256x1xi32>
    %cst_10 = arith.constant 0.000000e+00 : f32
    %26 = vector.broadcast %cst_10 : f32 to vector<1x128xf32>
    %c1_i32_11 = arith.constant 1 : i32
    %27 = vector.broadcast %c1_i32_11 : i32 to vector<256x1xi32>
    %28 = arith.cmpi sge, %25, %27 : vector<256x1xi32>
    %29 = vector.extract_strided_slice %8 {offsets = [0, 0], sizes = [255, 128], strides = [1, 1]} : vector<256x128xf32> to vector<255x128xf32>
    %30 = tpu.concatenate %26, %29 in 0 : vector<1x128xf32>, vector<255x128xf32> -> vector<256x128xf32>
    %cst_12 = arith.constant 0.000000e+00 : f32
    %31 = vector.shape_cast %28 : vector<256x1xi1> to vector<256x1xi1>
    %32 = vector.broadcast %31 : vector<256x1xi1> to vector<256x128xi1>
    %33 = vector.broadcast %cst_12 : f32 to vector<256x128xf32>
    %34 = arith.select %32, %30, %33 : vector<256x128xi1>, vector<256x128xf32>
    %c14_i32 = arith.constant 14 : i32
    %35 = vector.broadcast %c14_i32 : i32 to vector<256x1xi32>
    %36 = arith.cmpi sle, %25, %35 : vector<256x1xi32>
    %37 = vector.extract_strided_slice %8 {offsets = [1, 0], sizes = [255, 128], strides = [1, 1]} : vector<256x128xf32> to vector<255x128xf32>
    %38 = tpu.concatenate %37, %26 in 0 : vector<255x128xf32>, vector<1x128xf32> -> vector<256x128xf32>
    %cst_13 = arith.constant 0.000000e+00 : f32
    %39 = vector.shape_cast %36 : vector<256x1xi1> to vector<256x1xi1>
    %40 = vector.broadcast %39 : vector<256x1xi1> to vector<256x128xi1>
    %41 = vector.broadcast %cst_13 : f32 to vector<256x128xf32>
    %42 = arith.select %40, %38, %41 : vector<256x128xi1>, vector<256x128xf32>
    %cst_14 = arith.constant 0.000000e+00 : bf16
    %43 = vector.broadcast %cst_14 : bf16 to vector<16x384xbf16>
    %c0_15 = arith.constant 0 : index
    %c0_16 = arith.constant 0 : index
    %44 = vector.load %arg9[%c0_15, %c0_16] : memref<288x384xbf16, #tpu.memory_space<vmem>>, vector<16x384xbf16>
    tpu.vector_store %arg9[%c0_15, %c0_16], %43 {strides = array<i32>} : memref<288x384xbf16, #tpu.memory_space<vmem>>, vector<16x384xbf16>,
    %c272 = arith.constant 272 : index
    %c0_17 = arith.constant 0 : index
    %45 = vector.load %arg9[%c272, %c0_17] : memref<288x384xbf16, #tpu.memory_space<vmem>>, vector<16x384xbf16>
    tpu.vector_store %arg9[%c272, %c0_17], %43 {strides = array<i32>} : memref<288x384xbf16, #tpu.memory_space<vmem>>, vector<16x384xbf16>,
    %46 = arith.truncf %34 : vector<256x128xf32> to vector<256x128xbf16>
    %c16 = arith.constant 16 : index
    %c0_18 = arith.constant 0 : index
    %47 = vector.load %arg9[%c16, %c0_18] : memref<288x384xbf16, #tpu.memory_space<vmem>>, vector<256x128xbf16>
    tpu.vector_store %arg9[%c16, %c0_18], %46 {strides = array<i32>} : memref<288x384xbf16, #tpu.memory_space<vmem>>, vector<256x128xbf16>,
    %48 = arith.truncf %8 : vector<256x128xf32> to vector<256x128xbf16>
    %c16_19 = arith.constant 16 : index
    %c128 = arith.constant 128 : index
    %49 = vector.load %arg9[%c16_19, %c128] : memref<288x384xbf16, #tpu.memory_space<vmem>>, vector<256x128xbf16>
    tpu.vector_store %arg9[%c16_19, %c128], %48 {strides = array<i32>} : memref<288x384xbf16, #tpu.memory_space<vmem>>, vector<256x128xbf16>,
    %50 = arith.truncf %42 : vector<256x128xf32> to vector<256x128xbf16>
    %c16_20 = arith.constant 16 : index
    %c256 = arith.constant 256 : index
    %51 = vector.load %arg9[%c16_20, %c256] : memref<288x384xbf16, #tpu.memory_space<vmem>>, vector<256x128xbf16>
    tpu.vector_store %arg9[%c16_20, %c256], %50 {strides = array<i32>} : memref<288x384xbf16, #tpu.memory_space<vmem>>, vector<256x128xbf16>,
    %c0_21 = arith.constant 0 : index
    %c0_22 = arith.constant 0 : index
    %52 = vector.load %arg9[%c0_21, %c0_22] : memref<288x384xbf16, #tpu.memory_space<vmem>>, vector<256x384xbf16>
    %c0_23 = arith.constant 0 : index
    %c0_24 = arith.constant 0 : index
    %c0_25 = arith.constant 0 : index
    %53 = vector.load %arg4[%c0_23, %c0_24, %c0_25] : memref<3x384x128xbf16, #tpu.memory_space<vmem>>, vector<1x384x128xbf16>
    %54 = vector.shape_cast %53 : vector<1x384x128xbf16> to vector<384x128xbf16>
    %cst_26 = arith.constant dense<0.000000e+00> : vector<256x128xf32>
    %55 = tpu.matmul %52, %54, %cst_26 {dimension_numbers = #tpu.dot_dimension_numbers<[1], [0], [0], [1], [0, 0, 1, 1], [], []>} : vector<256x384xbf16>, vector<384x128xbf16>, vector<256x128xf32> -> vector<256x128xf32>
    %c16_27 = arith.constant 16 : index
    %c0_28 = arith.constant 0 : index
    %56 = vector.load %arg9[%c16_27, %c0_28] : memref<288x384xbf16, #tpu.memory_space<vmem>>, vector<256x384xbf16>
    %c1 = arith.constant 1 : index
    %c0_29 = arith.constant 0 : index
    %c0_30 = arith.constant 0 : index
    %57 = vector.load %arg4[%c1, %c0_29, %c0_30] : memref<3x384x128xbf16, #tpu.memory_space<vmem>>, vector<1x384x128xbf16>
    %58 = vector.shape_cast %57 : vector<1x384x128xbf16> to vector<384x128xbf16>
    %cst_31 = arith.constant dense<0.000000e+00> : vector<256x128xf32>
    %59 = tpu.matmul %56, %58, %cst_31 {dimension_numbers = #tpu.dot_dimension_numbers<[1], [0], [0], [1], [0, 0, 1, 1], [], []>} : vector<256x384xbf16>, vector<384x128xbf16>, vector<256x128xf32> -> vector<256x128xf32>
    %60 = arith.addf %55, %59 : vector<256x128xf32>
    %c32 = arith.constant 32 : index
    %c0_32 = arith.constant 0 : index
    %61 = vector.load %arg9[%c32, %c0_32] : memref<288x384xbf16, #tpu.memory_space<vmem>>, vector<256x384xbf16>
    %c2 = arith.constant 2 : index
    %c0_33 = arith.constant 0 : index
    %c0_34 = arith.constant 0 : index
    %62 = vector.load %arg4[%c2, %c0_33, %c0_34] : memref<3x384x128xbf16, #tpu.memory_space<vmem>>, vector<1x384x128xbf16>
    %63 = vector.shape_cast %62 : vector<1x384x128xbf16> to vector<384x128xbf16>
    %cst_35 = arith.constant dense<0.000000e+00> : vector<256x128xf32>
    %64 = tpu.matmul %61, %63, %cst_35 {dimension_numbers = #tpu.dot_dimension_numbers<[1], [0], [0], [1], [0, 0, 1, 1], [], []>} : vector<256x384xbf16>, vector<384x128xbf16>, vector<256x128xf32> -> vector<256x128xf32>
    %65 = arith.addf %60, %64 : vector<256x128xf32>
    %c0_36 = arith.constant 0 : index
    %c0_37 = arith.constant 0 : index
    %66 = vector.load %arg5[%c0_36, %c0_37] : memref<1x128xf32, #tpu.memory_space<vmem>>, vector<1x128xf32>
    %67 = vector.broadcast %66 : vector<1x128xf32> to vector<256x128xf32>
    %68 = arith.addf %65, %67 : vector<256x128xf32>
    %cst_38 = arith.constant 0.000000e+00 : f32
    %69 = vector.broadcast %cst_38 : f32 to vector<256x128xf32>
    %70 = arith.maximumf %68, %69 : vector<256x128xf32>
    %71 = arith.truncf %70 : vector<256x128xf32> to vector<256x128xbf16>
    %c0_39 = arith.constant 0 : index
    %c0_40 = arith.constant 0 : index
    %72 = vector.load %arg6[%c0_39, %c0_40] : memref<128x32xbf16, #tpu.memory_space<vmem>>, vector<128x32xbf16>
    %cst_41 = arith.constant dense<0.000000e+00> : vector<256x32xf32>
    %73 = tpu.matmul %71, %72, %cst_41 {dimension_numbers = #tpu.dot_dimension_numbers<[1], [0], [0], [1], [0, 0, 1, 1], [], []>} : vector<256x128xbf16>, vector<128x32xbf16>, vector<256x32xf32> -> vector<256x32xf32>
    %c0_42 = arith.constant 0 : index
    %c0_43 = arith.constant 0 : index
    %74 = vector.load %arg7[%c0_42, %c0_43] : memref<1x32xf32, #tpu.memory_space<vmem>>, vector<1x32xf32>
    %75 = vector.broadcast %74 : vector<1x32xf32> to vector<256x32xf32>
    %76 = arith.addf %73, %75 : vector<256x32xf32>
    %77 = arith.extf %1 : vector<256x32xbf16> to vector<256x32xf32>
    %78 = arith.addf %76, %77 : vector<256x32xf32>
    %cst_44 = arith.constant 0.000000e+00 : f32
    %79 = vector.broadcast %cst_44 : f32 to vector<256x32xf32>
    %80 = arith.maximumf %78, %79 : vector<256x32xf32>
    %81 = arith.truncf %80 : vector<256x32xf32> to vector<256x32xbf16>
    %c0_45 = arith.constant 0 : index
    %c0_46 = arith.constant 0 : index
    %c0_47 = arith.constant 0 : index
    %82 = vector.load %arg8[%c0_45, %c0_46, %c0_47] : memref<1x256x32xbf16, #tpu.memory_space<vmem>>, vector<1x256x32xbf16>
    %83 = vector.shape_cast %82 : vector<1x256x32xbf16> to vector<256x32xbf16>
    %84 = vector.shape_cast %81 : vector<256x32xbf16> to vector<1x256x32xbf16>
    tpu.vector_store %arg8[%c0_45, %c0_46, %c0_47], %84 {strides = array<i32>} : memref<1x256x32xbf16, #tpu.memory_space<vmem>>, vector<1x256x32xbf16>,
    return
  }
  func.func @transform_0(%arg0: i32) -> (i32, i32, i32) {
    %c0_i32 = arith.constant 0 : i32
    %c0_i32_0 = arith.constant 0 : i32
    %c0_i32_1 = arith.constant 0 : i32
    return %arg0, %c0_i32, %c0_i32_0 : i32, i32, i32
  }
  func.func @transform_1(%arg0: i32) -> (i32, i32) {
    %c0_i32 = arith.constant 0 : i32
    %c0_i32_0 = arith.constant 0 : i32
    %c0_i32_1 = arith.constant 0 : i32
    return %c0_i32, %c0_i32_0 : i32, i32
  }
  func.func @transform_2(%arg0: i32) -> (i32, i32) {
    %c0_i32 = arith.constant 0 : i32
    %c0_i32_0 = arith.constant 0 : i32
    %c0_i32_1 = arith.constant 0 : i32
    return %c0_i32, %c0_i32_0 : i32, i32
  }
  func.func @transform_3(%arg0: i32) -> (i32, i32, i32) {
    %c0_i32 = arith.constant 0 : i32
    %c0_i32_0 = arith.constant 0 : i32
    %c0_i32_1 = arith.constant 0 : i32
    %c0_i32_2 = arith.constant 0 : i32
    return %c0_i32, %c0_i32_0, %c0_i32_1 : i32, i32, i32
  }
  func.func @transform_4(%arg0: i32) -> (i32, i32) {
    %c0_i32 = arith.constant 0 : i32
    %c0_i32_0 = arith.constant 0 : i32
    %c0_i32_1 = arith.constant 0 : i32
    return %c0_i32, %c0_i32_0 : i32, i32
  }
  func.func @transform_5(%arg0: i32) -> (i32, i32) {
    %c0_i32 = arith.constant 0 : i32
    %c0_i32_0 = arith.constant 0 : i32
    %c0_i32_1 = arith.constant 0 : i32
    return %c0_i32, %c0_i32_0 : i32, i32
  }
  func.func @transform_6(%arg0: i32) -> (i32, i32) {
    %c0_i32 = arith.constant 0 : i32
    %c0_i32_0 = arith.constant 0 : i32
    %c0_i32_1 = arith.constant 0 : i32
    return %c0_i32, %c0_i32_0 : i32, i32
  }
  func.func @transform_7(%arg0: i32) -> (i32, i32, i32) {
    %c0_i32 = arith.constant 0 : i32
    %c0_i32_0 = arith.constant 0 : i32
    %c0_i32_1 = arith.constant 0 : i32
    return %arg0, %c0_i32, %c0_i32_0 : i32, i32, i32
  }
}

module attributes {stable_mosaic.version = 11 : i64} {
  func.func @_bottleneck_kernel(%arg0: i32, %arg1: memref<1x256x32xbf16, #tpu.memory_space<vmem>>, %arg2: memref<32x128xbf16, #tpu.memory_space<vmem>>, %arg3: memref<1x128xf32, #tpu.memory_space<vmem>>, %arg4: memref<3x384x128xbf16, #tpu.memory_space<vmem>>, %arg5: memref<1x128xf32, #tpu.memory_space<vmem>>, %arg6: memref<128x32xbf16, #tpu.memory_space<vmem>>, %arg7: memref<1x32xf32, #tpu.memory_space<vmem>>, %arg8: memref<1x256x32xbf16, #tpu.memory_space<vmem>>, %arg9: memref<288x384xbf16, #tpu.memory_space<vmem>>) attributes {dimension_semantics = [#tpu.dimension_semantics<parallel>], iteration_bounds = array<i64: 2>, scalar_prefetch = 0 : i64, scratch_operands = 1 : i64, tpu.core_type = #tpu.core_type<tc>, window_params = [{transform_indices = @transform_0, window_bounds = array<i64: 1, 256, 32>}, {pipeline_mode = #tpu.pipeline_mode<synchronous>, transform_indices = @transform_1, window_bounds = array<i64: 32, 128>}, {pipeline_mode = #tpu.pipeline_mode<synchronous>, transform_indices = @transform_2, window_bounds = array<i64: 1, 128>}, {pipeline_mode = #tpu.pipeline_mode<synchronous>, transform_indices = @transform_3, window_bounds = array<i64: 3, 384, 128>}, {pipeline_mode = #tpu.pipeline_mode<synchronous>, transform_indices = @transform_4, window_bounds = array<i64: 1, 128>}, {pipeline_mode = #tpu.pipeline_mode<synchronous>, transform_indices = @transform_5, window_bounds = array<i64: 128, 32>}, {pipeline_mode = #tpu.pipeline_mode<synchronous>, transform_indices = @transform_6, window_bounds = array<i64: 1, 32>}, {transform_indices = @transform_7, window_bounds = array<i64: 1, 256, 32>}]} {
    %c0 = arith.constant 0 : index
    %c0_0 = arith.constant 0 : index
    %c0_1 = arith.constant 0 : index
    %0 = vector.load %arg1[%c0, %c0_0, %c0_1] : memref<1x256x32xbf16, #tpu.memory_space<vmem>>, vector<1x256x32xbf16>
    %1 = vector.shape_cast %0 : vector<1x256x32xbf16> to vector<256x32xbf16>
    %c0_2 = arith.constant 0 : index
    %c0_3 = arith.constant 0 : index
    %2 = vector.load %arg2[%c0_2, %c0_3] : memref<32x128xbf16, #tpu.memory_space<vmem>>, vector<32x128xbf16>
    %cst = arith.constant dense<0.000000e+00> : vector<256x128xf32>
    %3 = tpu.matmul %1, %2, %cst {dimension_numbers = #tpu.dot_dimension_numbers<[1], [0], [0], [1], [0, 0, 1, 1], [], []>} : vector<256x32xbf16>, vector<32x128xbf16>, vector<256x128xf32> -> vector<256x128xf32>
    %c0_4 = arith.constant 0 : index
    %c0_5 = arith.constant 0 : index
    %4 = vector.load %arg3[%c0_4, %c0_5] : memref<1x128xf32, #tpu.memory_space<vmem>>, vector<1x128xf32>
    %5 = vector.broadcast %4 : vector<1x128xf32> to vector<256x128xf32>
    %6 = arith.addf %3, %5 : vector<256x128xf32>
    %cst_6 = arith.constant 0.000000e+00 : f32
    %7 = vector.broadcast %cst_6 : f32 to vector<256x128xf32>
    %8 = arith.maximumf %6, %7 : vector<256x128xf32>
    %9 = tpu.iota {dimensions = array<i32: 0>} : vector<256x1xi32>
    %c16_i32 = arith.constant 16 : i32
    %c0_i32 = arith.constant 0 : i32
    %10 = arith.cmpi eq, %c16_i32, %c0_i32 : i32
    %c1_i32 = arith.constant 1 : i32
    %11 = arith.select %10, %c1_i32, %c16_i32 : i32
    %12 = vector.broadcast %11 : i32 to vector<256x1xi32>
    %13 = arith.remsi %9, %12 : vector<256x1xi32>
    %c0_i32_7 = arith.constant 0 : i32
    %14 = vector.broadcast %c0_i32_7 : i32 to vector<256x1xi32>
    %15 = arith.cmpi ne, %13, %14 : vector<256x1xi32>
    %c0_i32_8 = arith.constant 0 : i32
    %16 = vector.broadcast %c0_i32_8 : i32 to vector<256x1xi32>
    %17 = arith.cmpi slt, %13, %16 : vector<256x1xi32>
    %c0_i32_9 = arith.constant 0 : i32
    %18 = arith.cmpi slt, %11, %c0_i32_9 : i32
    %19 = vector.broadcast %18 : i1 to vector<256x1xi1>
    %20 = vector.broadcast %19 : vector<256x1xi1> to vector<256x1xi1>
    %21 = arith.xori %17, %20 : vector<256x1xi1>
    %22 = arith.andi %21, %15 : vector<256x1xi1>
    %23 = vector.broadcast %11 : i32 to vector<256x1xi32>
    %24 = arith.addi %13, %23 : vector<256x1xi32>
    %25 = arith.select %22, %24, %13 : vector<256x1xi1>, vector<256x1xi32>
    %cst_10 = arith.constant 0.000000e+00 : f32
    %26 = vector.broadcast %cst_10 : f32 to vector<1x128xf32>
    %c1_i32_11 = arith.constant 1 : i32
    %27 = vector.broadcast %c1_i32_11 : i32 to vector<256x1xi32>
    %28 = arith.cmpi sge, %25, %27 : vector<256x1xi32>
    %29 = vector.extract_strided_slice %8 {offsets = [0, 0], sizes = [255, 128], strides = [1, 1]} : vector<256x128xf32> to vector<255x128xf32>
    %30 = tpu.concatenate %26, %29 in 0 : vector<1x128xf32>, vector<255x128xf32> -> vector<256x128xf32>
    %cst_12 = arith.constant 0.000000e+00 : f32
    %31 = vector.shape_cast %28 : vector<256x1xi1> to vector<256x1xi1>
    %32 = vector.broadcast %31 : vector<256x1xi1> to vector<256x128xi1>
    %33 = vector.broadcast %cst_12 : f32 to vector<256x128xf32>
    %34 = arith.select %32, %30, %33 : vector<256x128xi1>, vector<256x128xf32>
    %c14_i32 = arith.constant 14 : i32
    %35 = vector.broadcast %c14_i32 : i32 to vector<256x1xi32>
    %36 = arith.cmpi sle, %25, %35 : vector<256x1xi32>
    %37 = vector.extract_strided_slice %8 {offsets = [1, 0], sizes = [255, 128], strides = [1, 1]} : vector<256x128xf32> to vector<255x128xf32>
    %38 = tpu.concatenate %37, %26 in 0 : vector<255x128xf32>, vector<1x128xf32> -> vector<256x128xf32>
    %cst_13 = arith.constant 0.000000e+00 : f32
    %39 = vector.shape_cast %36 : vector<256x1xi1> to vector<256x1xi1>
    %40 = vector.broadcast %39 : vector<256x1xi1> to vector<256x128xi1>
    %41 = vector.broadcast %cst_13 : f32 to vector<256x128xf32>
    %42 = arith.select %40, %38, %41 : vector<256x128xi1>, vector<256x128xf32>
    %cst_14 = arith.constant 0.000000e+00 : bf16
    %43 = vector.broadcast %cst_14 : bf16 to vector<16x384xbf16>
    %c0_15 = arith.constant 0 : index
    %c0_16 = arith.constant 0 : index
    %44 = vector.load %arg9[%c0_15, %c0_16] : memref<288x384xbf16, #tpu.memory_space<vmem>>, vector<16x384xbf16>
    tpu.vector_store %arg9[%c0_15, %c0_16], %43 {strides = array<i32>} : memref<288x384xbf16, #tpu.memory_space<vmem>>, vector<16x384xbf16>,
    %c272 = arith.constant 272 : index
    %c0_17 = arith.constant 0 : index
    %45 = vector.load %arg9[%c272, %c0_17] : memref<288x384xbf16, #tpu.memory_space<vmem>>, vector<16x384xbf16>
    tpu.vector_store %arg9[%c272, %c0_17], %43 {strides = array<i32>} : memref<288x384xbf16, #tpu.memory_space<vmem>>, vector<16x384xbf16>,
    %46 = arith.truncf %34 : vector<256x128xf32> to vector<256x128xbf16>
    %c16 = arith.constant 16 : index
    %c0_18 = arith.constant 0 : index
    %47 = vector.load %arg9[%c16, %c0_18] : memref<288x384xbf16, #tpu.memory_space<vmem>>, vector<256x128xbf16>
    tpu.vector_store %arg9[%c16, %c0_18], %46 {strides = array<i32>} : memref<288x384xbf16, #tpu.memory_space<vmem>>, vector<256x128xbf16>,
    %48 = arith.truncf %8 : vector<256x128xf32> to vector<256x128xbf16>
    %c16_19 = arith.constant 16 : index
    %c128 = arith.constant 128 : index
    %49 = vector.load %arg9[%c16_19, %c128] : memref<288x384xbf16, #tpu.memory_space<vmem>>, vector<256x128xbf16>
    tpu.vector_store %arg9[%c16_19, %c128], %48 {strides = array<i32>} : memref<288x384xbf16, #tpu.memory_space<vmem>>, vector<256x128xbf16>,
    %50 = arith.truncf %42 : vector<256x128xf32> to vector<256x128xbf16>
    %c16_20 = arith.constant 16 : index
    %c256 = arith.constant 256 : index
    %51 = vector.load %arg9[%c16_20, %c256] : memref<288x384xbf16, #tpu.memory_space<vmem>>, vector<256x128xbf16>
    tpu.vector_store %arg9[%c16_20, %c256], %50 {strides = array<i32>} : memref<288x384xbf16, #tpu.memory_space<vmem>>, vector<256x128xbf16>,
    %c0_21 = arith.constant 0 : index
    %c0_22 = arith.constant 0 : index
    %52 = vector.load %arg9[%c0_21, %c0_22] : memref<288x384xbf16, #tpu.memory_space<vmem>>, vector<256x384xbf16>
    %c0_23 = arith.constant 0 : index
    %c0_24 = arith.constant 0 : index
    %c0_25 = arith.constant 0 : index
    %53 = vector.load %arg4[%c0_23, %c0_24, %c0_25] : memref<3x384x128xbf16, #tpu.memory_space<vmem>>, vector<1x384x128xbf16>
    %54 = vector.shape_cast %53 : vector<1x384x128xbf16> to vector<384x128xbf16>
    %cst_26 = arith.constant dense<0.000000e+00> : vector<256x128xf32>
    %55 = tpu.matmul %52, %54, %cst_26 {dimension_numbers = #tpu.dot_dimension_numbers<[1], [0], [0], [1], [0, 0, 1, 1], [], []>} : vector<256x384xbf16>, vector<384x128xbf16>, vector<256x128xf32> -> vector<256x128xf32>
    %c16_27 = arith.constant 16 : index
    %c0_28 = arith.constant 0 : index
    %56 = vector.load %arg9[%c16_27, %c0_28] : memref<288x384xbf16, #tpu.memory_space<vmem>>, vector<256x384xbf16>
    %c1 = arith.constant 1 : index
    %c0_29 = arith.constant 0 : index
    %c0_30 = arith.constant 0 : index
    %57 = vector.load %arg4[%c1, %c0_29, %c0_30] : memref<3x384x128xbf16, #tpu.memory_space<vmem>>, vector<1x384x128xbf16>
    %58 = vector.shape_cast %57 : vector<1x384x128xbf16> to vector<384x128xbf16>
    %cst_31 = arith.constant dense<0.000000e+00> : vector<256x128xf32>
    %59 = tpu.matmul %56, %58, %cst_31 {dimension_numbers = #tpu.dot_dimension_numbers<[1], [0], [0], [1], [0, 0, 1, 1], [], []>} : vector<256x384xbf16>, vector<384x128xbf16>, vector<256x128xf32> -> vector<256x128xf32>
    %60 = arith.addf %55, %59 : vector<256x128xf32>
    %c32 = arith.constant 32 : index
    %c0_32 = arith.constant 0 : index
    %61 = vector.load %arg9[%c32, %c0_32] : memref<288x384xbf16, #tpu.memory_space<vmem>>, vector<256x384xbf16>
    %c2 = arith.constant 2 : index
    %c0_33 = arith.constant 0 : index
    %c0_34 = arith.constant 0 : index
    %62 = vector.load %arg4[%c2, %c0_33, %c0_34] : memref<3x384x128xbf16, #tpu.memory_space<vmem>>, vector<1x384x128xbf16>
    %63 = vector.shape_cast %62 : vector<1x384x128xbf16> to vector<384x128xbf16>
    %cst_35 = arith.constant dense<0.000000e+00> : vector<256x128xf32>
    %64 = tpu.matmul %61, %63, %cst_35 {dimension_numbers = #tpu.dot_dimension_numbers<[1], [0], [0], [1], [0, 0, 1, 1], [], []>} : vector<256x384xbf16>, vector<384x128xbf16>, vector<256x128xf32> -> vector<256x128xf32>
    %65 = arith.addf %60, %64 : vector<256x128xf32>
    %c0_36 = arith.constant 0 : index
    %c0_37 = arith.constant 0 : index
    %66 = vector.load %arg5[%c0_36, %c0_37] : memref<1x128xf32, #tpu.memory_space<vmem>>, vector<1x128xf32>
    %67 = vector.broadcast %66 : vector<1x128xf32> to vector<256x128xf32>
    %68 = arith.addf %65, %67 : vector<256x128xf32>
    %cst_38 = arith.constant 0.000000e+00 : f32
    %69 = vector.broadcast %cst_38 : f32 to vector<256x128xf32>
    %70 = arith.maximumf %68, %69 : vector<256x128xf32>
    %71 = arith.truncf %70 : vector<256x128xf32> to vector<256x128xbf16>
    %c0_39 = arith.constant 0 : index
    %c0_40 = arith.constant 0 : index
    %72 = vector.load %arg6[%c0_39, %c0_40] : memref<128x32xbf16, #tpu.memory_space<vmem>>, vector<128x32xbf16>
    %cst_41 = arith.constant dense<0.000000e+00> : vector<256x32xf32>
    %73 = tpu.matmul %71, %72, %cst_41 {dimension_numbers = #tpu.dot_dimension_numbers<[1], [0], [0], [1], [0, 0, 1, 1], [], []>} : vector<256x128xbf16>, vector<128x32xbf16>, vector<256x32xf32> -> vector<256x32xf32>
    %c0_42 = arith.constant 0 : index
    %c0_43 = arith.constant 0 : index
    %74 = vector.load %arg7[%c0_42, %c0_43] : memref<1x32xf32, #tpu.memory_space<vmem>>, vector<1x32xf32>
    %75 = vector.broadcast %74 : vector<1x32xf32> to vector<256x32xf32>
    %76 = arith.addf %73, %75 : vector<256x32xf32>
    %77 = arith.extf %1 : vector<256x32xbf16> to vector<256x32xf32>
    %78 = arith.addf %76, %77 : vector<256x32xf32>
    %cst_44 = arith.constant 0.000000e+00 : f32
    %79 = vector.broadcast %cst_44 : f32 to vector<256x32xf32>
    %80 = arith.maximumf %78, %79 : vector<256x32xf32>
    %81 = arith.truncf %80 : vector<256x32xf32> to vector<256x32xbf16>
    %c0_45 = arith.constant 0 : index
    %c0_46 = arith.constant 0 : index
    %c0_47 = arith.constant 0 : index
    %82 = vector.load %arg8[%c0_45, %c0_46, %c0_47] : memref<1x256x32xbf16, #tpu.memory_space<vmem>>, vector<1x256x32xbf16>
    %83 = vector.shape_cast %82 : vector<1x256x32xbf16> to vector<256x32xbf16>
    %84 = vector.shape_cast %81 : vector<256x32xbf16> to vector<1x256x32xbf16>
    tpu.vector_store %arg8[%c0_45, %c0_46, %c0_47], %84 {strides = array<i32>} : memref<1x256x32xbf16, #tpu.memory_space<vmem>>, vector<1x256x32xbf16>,
    return
  }
  func.func @transform_0(%arg0: i32) -> (i32, i32, i32) {
    %c0_i32 = arith.constant 0 : i32
    %c0_i32_0 = arith.constant 0 : i32
    %c0_i32_1 = arith.constant 0 : i32
    return %arg0, %c0_i32, %c0_i32_0 : i32, i32, i32
  }
  func.func @transform_1(%arg0: i32) -> (i32, i32) {
    %c0_i32 = arith.constant 0 : i32
    %c0_i32_0 = arith.constant 0 : i32
    %c0_i32_1 = arith.constant 0 : i32
    return %c0_i32, %c0_i32_0 : i32, i32
  }
  func.func @transform_2(%arg0: i32) -> (i32, i32) {
    %c0_i32 = arith.constant 0 : i32
    %c0_i32_0 = arith.constant 0 : i32
    %c0_i32_1 = arith.constant 0 : i32
    return %c0_i32, %c0_i32_0 : i32, i32
  }
  func.func @transform_3(%arg0: i32) -> (i32, i32, i32) {
    %c0_i32 = arith.constant 0 : i32
    %c0_i32_0 = arith.constant 0 : i32
    %c0_i32_1 = arith.constant 0 : i32
    %c0_i32_2 = arith.constant 0 : i32
    return %c0_i32, %c0_i32_0, %c0_i32_1 : i32, i32, i32
  }
  func.func @transform_4(%arg0: i32) -> (i32, i32) {
    %c0_i32 = arith.constant 0 : i32
    %c0_i32_0 = arith.constant 0 : i32
    %c0_i32_1 = arith.constant 0 : i32
    return %c0_i32, %c0_i32_0 : i32, i32
  }
  func.func @transform_5(%arg0: i32) -> (i32, i32) {
    %c0_i32 = arith.constant 0 : i32
    %c0_i32_0 = arith.constant 0 : i32
    %c0_i32_1 = arith.constant 0 : i32
    return %c0_i32, %c0_i32_0 : i32, i32
  }
  func.func @transform_6(%arg0: i32) -> (i32, i32) {
    %c0_i32 = arith.constant 0 : i32
    %c0_i32_0 = arith.constant 0 : i32
    %c0_i32_1 = arith.constant 0 : i32
    return %c0_i32, %c0_i32_0 : i32, i32
  }
  func.func @transform_7(%arg0: i32) -> (i32, i32, i32) {
    %c0_i32 = arith.constant 0 : i32
    %c0_i32_0 = arith.constant 0 : i32
    %c0_i32_1 = arith.constant 0 : i32
    return %arg0, %c0_i32, %c0_i32_0 : i32, i32, i32
  }
}

</mosaic_0001>

<bundles_post_ra>
// kernel: mul.56
= control target key start
LH: loop header
LB: loop body
LE: loop exit
PB: predicated region body
PF: predicated region fallthrough
CT: control target
= control target key end

     0   :  { %s34_s0 = inlined_call_operand.vmem [shape: f32[8,32,1,1], index: 0, kind: input, shape index: {}]   ;;  %s35_s1 = inlined_call_operand.vmem [shape: f32[8,32,1,1], index: 1, kind: input, shape index: {}]   ;;  %s36_s2 = inlined_call_operand.vmem [shape: f32[8,32,1,1], index: 2, kind: output, shape index: {}]  }
   0x1   :  { %v3_v0 = vld [vmem:[%s34_s0] sm:$0xff] }
   0x2   :  { %v4_v1 = vld [vmem:[%s35_s1] sm:$0xff] }
   0x3   :  { %v7_v2 = vmul.f32 %v4_v1, %v3_v0 }
   0x5   :  { %9 = vst [vmem:[%s36_s2] sm:$0xff] %v7_v2 }

// kernel: bottleneck_mtl_forward.1
= control target key start
LH: loop header
LB: loop body
LE: loop exit
PB: predicated region body
PF: predicated region fallthrough
CT: control target
= control target key end

     0   :  { %s5550_s24 = smov 0   ;;  %s7656_s0 = inlined_call_operand.vmem [shape: bf16[2,256,32], index: 0, kind: input, shape index: {}, may-alias: {0,7}]   ;;  %s7657_s1 = inlined_call_operand.vmem [shape: bf16[32,128], index: 1, kind: input, shape index: {}]   ;;  %s7658_s2 = inlined_call_operand.vmem [shape: f32[1,128], index: 2, kind: input, shape index: {}]   ;;  %s7659_s3 = inlined_call_operand.vmem [shape: bf16[3,384,128], index: 3, kind: input, shape index: {}]   ;;  %s7660_s4 = inlined_call_operand.vmem [shape: f32[1,128], index: 4, kind: input, shape index: {}]   ;;  %s7661_s5 = inlined_call_operand.vmem [shape: bf16[128,32], index: 5, kind: input, shape index: {}]   ;;  %s7662_s6 = inlined_call_operand.vmem [shape: f32[1,32], index: 6, kind: input, shape index: {}]   ;;  %s7663_s7 = inlined_call_operand.vmem [shape: bf16[2,256,32], index: 7, kind: output, shape index: {}, may-alias: {0,7}]  }
   0x1 LB: > { %s3964_s25 = sadd.s32 4294967295, %s5506_s24   ;;  %p3968_p0 = scmp.ge.s32.totalorder %s5506_s24, 1  ;;  %s5506_s24 = sphi %s5550_s24, %s17_s24  }
   0x2   : > { %p237_p1 = scmp.lt.s32.totalorder %s5506_s24, 3 }
   0x4   : > { %p238_p2 = pnand %p3968_p0, %p237_p1 }
   0x6   : > { %241 = sbr.rel (%p238_p2) target bundleno = 1035 (0x40b), region = 48 }
   0xd   : > { %v5382_v0 = vld [vmem:[%s7657_s1] sm:$0xff]   ;;  %p269_p3 = scmp.lt.s32.totalorder %s3964_s25, 1  ;;  %v5383_v1 = vld [vmem:[%s7657_s1 + $0x8] sm:$0xff]   ;;  %vm415_vm0 = vcmask 261120   ;;  %v5405_v17 = vld [vmem:[%s7659_s3 + $0x110] sm:$0xff]   ;;  %v657_v44 = vlaneseq  ;;  %vm7721_vm1 = vcmask 1040384  }
   0xe   : > { %4980 = vmatprep.subr.bf16.mxu0 %v5382_v0  ;;  %5208 = vmatprep.subr.bf16.mxu1 %v5382_v0  ;;  %v5400_v2 = vld [vmem:[%s7659_s3 + $0x100] sm:$0xff]   ;;  %v5402_v12 = vld [vmem:[%s7659_s3 + $0x108] sm:$0xff]   ;;  %v5406_v19 = vld [vmem:[%s7659_s3 + $0xd0] sm:$0xff]   ;;  %vm7726_vm2 = vcmask 1046528   ;;  %vm7737_vm8 = vmmov 1  }
   0xf   : > { %s8120_s25 = smov (!%p269_p3, %s3964_s25), 1  ;;  %4981 = vmatpush3.bf16.msra.mxu0 %v5382_v0  ;;  %5210 = vmatpush3.bf16.msra.mxu1 %v5382_v0  ;;  %v5401_v9 = vld [vmem:[%s7659_s3 + $0xc0] sm:$0xff]   ;;  %v5403_v14 = vld [vmem:[%s7659_s3 + $0xc8] sm:$0xff]   ;;  %v5408_v21 = vld [vmem:[%s7659_s3 + $0x118] sm:$0xff]   ;;  %v5720_v45 = vshrl.u32 %v657_v44, 7 }
  0x10   : > { %4982 = vmatprep.subr.bf16.mxu0 %v5383_v1  ;;  %s4220_s30 = sshll.u32 %s8120_s25, 7  ;;  %5209 = vmatprep.subr.bf16.mxu1 %v5383_v1  ;;  %v5404_v15 = vld [vmem:[%s7659_s3 + $0x140] sm:$0xff]   ;;  %v5407_v18 = vld [vmem:[%s7659_s3 + $0x148] sm:$0xff]   ;;  %v5410_v23 = vld [vmem:[%s7659_s3 + $0x150] sm:$0xff]  }
  0x11   : > { %s5575_s12 = scalar_lea.vmem %s7656_s0, %s4220_s30  ;;  %v5409_v25 = vld [vmem:[%s7659_s3 + $0xd8] sm:$0xff]   ;;  %v5411_v27 = vld [vmem:[%s7659_s3 + $0x120] sm:$0xff]   ;;  %v5414_v32 = vld [vmem:[%s7659_s3 + $0x128] sm:$0xff]   ;;  %v659_v46 = vadd.s32 8, %v5720_v45  ;;  %v5724_v47 = vadd.s32 24, %v5720_v45  ;;  %v5727_v48 = vadd.s32 16, %v5720_v45  ;;  %s7533_s29 = scalar_lea.vmem %s7663_s7, %s4220_s30 }
  0x12   : > { %v280_v3 = vld [vmem:[%s5575_s12] sm:$0xff]   ;;  %v282_v4 = vld [vmem:[%s5575_s12 + $0x8] sm:$0xff]   ;;  %v284_v5 = vld [vmem:[%s5575_s12 + $0x10] sm:$0xff]   ;;  %v5730_v49 = vadd.s32 40, %v5720_v45  ;;  %v5733_v50 = vadd.s32 56, %v5720_v45  ;;  %v5736_v51 = vadd.s32 32, %v5720_v45 }
  0x13   : > { %4983 = vmatpush3.bf16.msra.mxu0 %v5383_v1  ;;  %5211 = vmatpush3.bf16.msra.mxu1 %v5383_v1  ;;  %v5581_v6 = vld [vmem:[%s5575_s12 + $0x40] sm:$0xff]   ;;  %v5584_v7 = vld [vmem:[%s5575_s12 + $0x48] sm:$0xff]   ;;  %v5588_v8 = vld [vmem:[%s5575_s12 + $0x50] sm:$0xff]   ;;  %v694_v52 = vand.u32 15, %v5720_v45  ;;  %v701_v53 = vand.u32 15, %v659_v46  ;;  %v715_v54 = vand.u32 15, %v5724_v47 }
  0x14   : > { %7776 = vst [vmem:[#allocation3_spill] sm:$0xff] %v5581_v6  ;;  %7777 = vst [vmem:[#allocation4_spill] sm:$0xff] %v5584_v7  ;;  %4548 = vmatprep.subr.bf16.mxu1 %v5400_v2  ;;  %4984 = vmatprep.mubr.msk.bf16.mxu0 %vm415_vm0, %v280_v3  ;;  %v286_v10 = vld [vmem:[%s5575_s12 + $0x18] sm:$0xff]   ;;  %v5596_v11 = vld [vmem:[%s5575_s12 + $0x20] sm:$0xff]   ;;  %v5741_v55 = vadd.s32 72, %v5720_v45  ;;  %v708_v56 = vand.u32 15, %v5727_v48 }
  0x15   : > { %7778 = vst [vmem:[#allocation5_spill] sm:$0xff] %v5588_v8  ;;  %7779 = vst [vmem:[#allocation6_spill] sm:$0xff] %v5596_v11  ;;  %5000 = vmatprep.mubr.msk.bf16.mxu1 %vm415_vm0, %v5581_v6  ;;  %v5605_v13 = vld [vmem:[%s5575_s12 + $0x58] sm:$0xff]   ;;  %v5618_v16 = vld [vmem:[%s5575_s12 + $0x60] sm:$0xff]   ;;  %5016 = vmatprep.subr.bf16.mxu0 %v5404_v15  ;;  %v729_v57 = vand.u32 15, %v5730_v49  ;;  %v5747_v59 = vadd.s32 88, %v5720_v45 }
  0x16   : > { %4985 = vmatmul.mubr.msk.bf16.vlgmr.msra.gmra.mrb[0].mxu0 %vm415_vm0, %v282_v4  ;;  %7780 = vst [vmem:[#allocation7_spill] sm:$0xff] %v5605_v13  ;;  %5001 = vmatmul.mubr.msk.bf16.vlgmr.msra.gmra.mrb[0].mxu1 %vm415_vm0, %v5584_v7  ;;  %7781 = vst [vmem:[#allocation8_spill] sm:$0xff] %v5618_v16  ;;  %v5630_v20 = vld [vmem:[%s5575_s12 + $0x28] sm:$0xff]   ;;  %v5637_v22 = vld [vmem:[%s5575_s12 + $0x30] sm:$0xff]   ;;  %v5751_v61 = vadd.s32 48, %v5720_v45  ;;  %v5754_v62 = vadd.s32 104, %v5720_v45 }
  0x17   : > { %4988 = vmatprep.mubr.msk.bf16.mxu0 %vm415_vm0, %v284_v5  ;;  %5004 = vmatprep.mubr.msk.bf16.mxu1 %vm415_vm0, %v5588_v8  ;;  %7782 = vst [vmem:[#allocation9_spill] sm:$0xff] %v5630_v20  ;;  %7783 = vst [vmem:[#allocation10_spill] sm:$0xff] %v5637_v22  ;;  %v5645_v24 = vld [vmem:[%s5575_s12 + $0x68] sm:$0xff]   ;;  %v5653_v26 = vld [vmem:[%s5575_s12 + $0x70] sm:$0xff]   ;;  %v5757_v63 = vadd.s32 120, %v5720_v45  ;;  %v5760_v0 = vadd.s32 136, %v5720_v45 }
  0x18   : > { %4549 = vmatpush3.bf16.msra.mxu1 %v5401_v9  ;;  %5017 = vmatpush3.bf16.msra.mxu0 %v5404_v15  ;;  %7784 = vst [vmem:[#allocation11_spill] sm:$0xff] %v5645_v24  ;;  %7785 = vst [vmem:[#allocation12_spill] sm:$0xff] %v5653_v26  ;;  %v5413_v28 = vld [vmem:[%s7659_s3 + $0x158] sm:$0xff]   ;;  %v5412_v29 = vld [vmem:[%s7659_s3 + $0xe0] sm:$0xff]   ;;  %v5763_v1 = vadd.s32 64, %v5720_v45  ;;  %v5766_v2 = vadd.s32 152, %v5720_v45 }
  0x19   : > { %4550 = vmatprep.subr.bf16.mxu1 %v5402_v12  ;;  %5018 = vmatprep.subr.bf16.mxu0 %v5407_v18  ;;  %v5667_v30 = vld [vmem:[%s5575_s12 + $0x38] sm:$0xff]   ;;  %v5415_v33 = vld [vmem:[%s7659_s3 + $0xe8] sm:$0xff]   ;;  %v5416_v34 = vld [vmem:[%s7659_s3 + $0x160] sm:$0xff]   ;;  %v5769_v3 = vadd.s32 168, %v5720_v45  ;;  %v5773_v5 = vadd.s32 80, %v5720_v45  ;;  %v5776_v9 = vadd.s32 184, %v5720_v45 }
  0x1a   : > { %7786 = vst [vmem:[#allocation13_spill] sm:$0xff] %v5667_v30  ;;  %v5674_v31 = vld [vmem:[%s5575_s12 + $0x78] sm:$0xff]   ;;  %v5417_v35 = vld [vmem:[%s7659_s3 + $0x130] sm:$0xff]   ;;  %v5419_v37 = vld [vmem:[%s7659_s3 + $0x168] sm:$0xff]   ;;  %vm5786_vm3 = vcmp.ge.s32.totalorder %v694_v52, 1  ;;  %vm5800_vm4 = vcmp.le.s32.totalorder %v701_v53, 14 }
  0x1b   : > { %7787 = vst [vmem:[#allocation14_spill] sm:$0xff] %v5674_v31  ;;  %v5418_v36 = vld [vmem:[%s7659_s3 + $0xf0] sm:$0xff]   ;;  %v5420_v38 = vld [vmem:[%s7659_s3 + $0x138] sm:$0xff]   ;;  %v5424_v42 = vld [vmem:[%s7659_s3 + $0x40] sm:$0xff]   ;;  %v5830_v46 = vadd.s32 248, %v5720_v45  ;;  %vm5834_vm5 = vcmp.le.s32.totalorder %v715_v54, 14 }
  0x1c   : > { %4551 = vmatpush3.bf16.msra.mxu1 %v5403_v14  ;;  %5019 = vmatpush3.bf16.msra.mxu0 %v5407_v18  ;;  %v5421_v39 = vld [vmem:[%s7659_s3 + $0xf8] sm:$0xff]   ;;  %v5422_v40 = vld [vmem:[%s7659_s3 + $0x170] sm:$0xff]   ;;  %v5440_v43 = vld [vmem:[%s7659_s3 + $0x1c0] sm:$0xff]   ;;  %v5795_v18 = vadd.s32 216, %v5720_v45  ;;  %vm5842_vm6 = vcmp.ge.s32.totalorder %v708_v56, 1  ;;  %vm5855_vm7 = vcmp.le.s32.totalorder %v729_v57, 14 }
  0x1d   : > { %4552 = vmatprep.subr.bf16.mxu1 %v5405_v17  ;;  %5020 = vmatprep.subr.bf16.mxu0 %v5410_v23  ;;  %v5423_v41 = vld [vmem:[%s7659_s3 + $0x178] sm:$0xff]   ;;  %v5784_v12 = vld [vmem:[%s7658_s2] ss:$0 sm:$0xff]  ;;  %v5792_v17 = vadd.s32 96, %v5720_v45  ;;  %vm5868_vm9 = vmpackc.low %vm7737_vm8, %vm5786_vm3  ;;  %v7799_v49 = vmov 0  ;;  %v7822_v7 = vmov 0 }
  0x1e   : > { %4989 = vmatmul.mubr.msk.bf16.gmra.mrb[4].mxu0 %vm415_vm0, %v286_v10  ;;  %5005 = vmatmul.mubr.msk.bf16.gmra.mrb[4].mxu1 %vm415_vm0, %v5605_v13  ;;  %v5779_v10 = vadd.s32 200, %v5720_v45  ;;  %v7800_v49 = vsel %vm5868_vm9, 4294967295, %v7799_v49  ;;  %vm5884_vm10 = vmpackc.low %vm5800_vm4, %vm7737_vm8 }
  0x1f   : > { %4992 = vmatprep.mubr.msk.bf16.mxu0 %vm415_vm0, %v5596_v11  ;;  %5008 = vmatprep.mubr.msk.bf16.mxu1 %vm415_vm0, %v5618_v16  ;;  %7801 = vst [vmem:[#allocation16_spill] sm:$0xff] %v7800_v49  ;;  %vm5961_vm13 = vmpackc.low %vm5834_vm5, %vm7737_vm8 }
  0x20   : > { %4553 = vmatpush3.bf16.msra.mxu1 %v5406_v19  ;;  %5021 = vmatpush3.bf16.msra.mxu0 %v5410_v23  ;;  %v5798_v19 = vadd.s32 232, %v5720_v45  ;;  %vm5984_vm15 = vmpackc.low %vm7737_vm8, %vm5842_vm6 }
  0x21   : > { %4554 = vmatprep.subr.bf16.mxu1 %v5408_v21  ;;  %5022 = vmatprep.subr.bf16.mxu0 %v5413_v28  ;;  %v7823_v7 = vsel %vm5984_vm15, 4294967295, %v7822_v7 }
  0x22   : > { %7824 = vst [vmem:[#allocation24_spill] sm:$0xff] %v7823_v7 }
  0x24   : > { %4555 = vmatpush3.bf16.msra.mxu1 %v5409_v25  ;;  %5023 = vmatpush3.bf16.msra.mxu0 %v5413_v28  ;;  %v5808_v28 = vadd.s32 112, %v5720_v45 }
  0x25   : > { %4556 = vmatprep.subr.bf16.mxu1 %v5411_v27  ;;  %5024 = vmatprep.subr.bf16.mxu0 %v5416_v34 }
  0x26   : > { %4993 = vmatmul.mubr.msk.bf16.gmra.mrb[8].mxu0 %vm415_vm0, %v5630_v20  ;;  %5009 = vmatmul.mubr.msk.bf16.gmra.mrb[8].mxu1 %vm415_vm0, %v5645_v24 }
  0x27   : > { %4996 = vmatprep.mubr.msk.bf16.mxu0 %vm415_vm0, %v5637_v22  ;;  %5012 = vmatprep.mubr.msk.bf16.mxu1 %vm415_vm0, %v5653_v26  ;;  %v7802_v26 = vmov 0 }
  0x28   : > { %4557 = vmatpush3.bf16.msra.mxu1 %v5412_v29  ;;  %5025 = vmatpush3.bf16.msra.mxu0 %v5416_v34  ;;  %v7803_v26 = vsel %vm5884_vm10, 4294967295, %v7802_v26 }
  0x29   : > { %4558 = vmatprep.subr.bf16.mxu1 %v5414_v32  ;;  %5026 = vmatprep.subr.bf16.mxu0 %v5419_v37  ;;  %7804 = vst [vmem:[#allocation17_spill] sm:$0xff] %v7803_v26 }
  0x2c   : > { %4559 = vmatpush3.bf16.msra.mxu1 %v5415_v33  ;;  %5027 = vmatpush3.bf16.msra.mxu0 %v5419_v37 }
  0x2d   : > { %4560 = vmatprep.subr.bf16.mxu1 %v5417_v35  ;;  %5028 = vmatprep.subr.bf16.mxu0 %v5422_v40 }
  0x2e   : > { %4997 = vmatmul.mubr.msk.bf16.gmra.mrb[12].mxu0 %vm415_vm0, %v5667_v30  ;;  %5013 = vmatmul.mubr.msk.bf16.gmra.mrb[12].mxu1 %vm415_vm0, %v5674_v31  ;;  %v5443_v31 = vld [vmem:[%s7659_s3 + $0x1c8] sm:$0xff]   ;;  %vm5998_vm0 = vmpackc.low %vm5855_vm7, %vm7737_vm8 }
  0x30   : > { %4561 = vmatpush3.bf16.msra.mxu1 %v5418_v36  ;;  %5029 = vmatpush3.bf16.msra.mxu0 %v5422_v40 }
  0x31   : > { %4562 = vmatprep.subr.bf16.mxu1 %v5420_v38  ;;  %5030 = vmatprep.subr.bf16.mxu0 %v5423_v41 }
  0x34   : > { %4563 = vmatpush3.bf16.msra.mxu1 %v5421_v39  ;;  %5031 = vmatpush3.bf16.msra.mxu0 %v5423_v41 }
  0x35   : > { %4684 = vmatprep.subr.bf16.mxu0 %v5424_v42  ;;  %4820 = vmatprep.subr.bf16.mxu1 %v5440_v43 }
  0xe9   : > { %v4986_v29 = vpop.f32.mrb[0].mxu0  ;;  %v5002_v43 = vpop.f32.mrb[0].mxu1 }
  0xea   : > { %v507_v36 = vadd.f32 %v4986_v29, %v5784_v12  ;;  %v498_v37 = vpop.f32.mrb[1].mxu0  ;;  %v571_v38 = vadd.f32 %v5002_v43, %v5784_v12  ;;  %v562_v35 = vpop.f32.mrb[1].mxu1 }
  0xeb   : > { %v499_v41 = vadd.f32 %v5784_v12, %v498_v37  ;;  %v4987_v42 = vpop.f32.mrb[2].mxu0  ;;  %v563_v34 = vadd.f32 %v5784_v12, %v562_v35  ;;  %v5827_v33 = vpop.f32.mrb[2].mxu1  ;;  %v7825_v35 = vmov 0 }
  0xec   : > { %v627_v52 = vmax.f32 %v507_v36, 0.0  ;;  %v510_v53 = vadd.f32 %v4987_v42, %v5784_v12  ;;  %v501_v29 = vpop.f32.mrb[3].mxu0  ;;  %v5838_v43 = vmax.f32 %v571_v38, 0.0  ;;  %v7826_v35 = vsel %vm5998_vm0, 4294967295, %v7825_v35 }
  0xed   : > { %v625_v40 = vmax.f32 %v499_v41, 0.0  ;;  %v502_v37 = vadd.f32 %v5784_v12, %v501_v29  ;;  %v565_v41 = vpop.f32.mrb[3].mxu1  ;;  %v5846_v27 = vmax.f32 %v563_v34, 0.0  ;;  %7827 = vst [vmem:[#allocation25_spill] sm:$0xff] %v7826_v35 }
  0xee   : > { %v1142_v47 = vrot.slane %v627_v52, 7  ;;  %v1367_v36 = vrot.slane %v627_v52, 1  ;;  %v5832_v44 = vmax.f32 %v510_v53, 0.0 }
  0xef   : > { %v1139_v39 = vrot.slane %v625_v40, 7  ;;  %v1364_v29 = vrot.slane %v625_v40, 1  ;;  %v626_v32 = vmax.f32 %v502_v37, 0.0 }
  0xf0   : > { %v7666_v53 = vrot.slane %v5832_v44, 7  ;;  %v1369_v54 = vrot.slane %v5832_v44, 1  ;;  %v5851_v25 = vpack.c.bf16 %v5832_v44, %v627_v52 }
  0xf1   : > { %v1234_v56 = vsel %vm7721_vm1, 0.0, %v1139_v39  ;;  %v1140_v37 = vrot.slane %v626_v32, 7  ;;  %v1365_v34 = vrot.slane %v626_v32, 1  ;;  %v4990_v23 = vpop.f32.mrb[4].mxu0  ;;  %v5861_v15 = vpack.c.bf16 %v626_v32, %v625_v40 }
  0xf2   : > { %7796 = vst [vmem:[#allocation15_spill] sm:$0xff] %v5851_v25  ;;  %v1370_v4 = vsel %vm7726_vm2, %v1367_v36, %v1369_v54  ;;  %v523_v52 = vadd.f32 %v4990_v23, %v5784_v12  ;;  %v514_v60 = vpop.f32.mrb[5].mxu0  ;;  %v1145_v57 = vsel %vm7721_vm1, %v1142_v47, %v7666_v53  ;;  %v5888_v53 = vpop.f32.mrb[4].mxu1 }
  0xf3   : > { %v1141_v40 = vsel %vm7721_vm1, %v1139_v39, %v1140_v37  ;;  %v515_v48 = vadd.f32 %v5784_v12, %v514_v60  ;;  %v4991_v23 = vpop.f32.mrb[6].mxu0  ;;  %1982 = vmatprep.mubr.bf16.mxu1 %v5861_v15  ;;  %v1366_v14 = vsel %vm7726_vm2, %v1364_v29, %v1365_v34  ;;  %v1368_v58 = vsel %vm7726_vm2, %v1365_v34, %v1367_v36  ;;  %v5441_v60 = vld [vmem:[%s7659_s3 + $0x180] sm:$0xff]   ;;  %v5900_v21 = vpop.f32.mrb[5].mxu1 }
  0xf4   : > { %v5893_v39 = vpack.c.bf16 %v1141_v40, %v1234_v56  ;;  %v5895_v32 = vmax.f32 %v523_v52, 0.0  ;;  %v526_v29 = vadd.f32 %v4991_v23, %v5784_v12  ;;  %v517_v36 = vpop.f32.mrb[7].mxu0  ;;  %v5898_v34 = vpack.c.bf16 %v1368_v58, %v1366_v14  ;;  %v5910_v40 = vpop.f32.mrb[6].mxu1 }
  0xf5   : > { %v5905_v16 = vmax.f32 %v515_v48, 0.0  ;;  %v518_v24 = vadd.f32 %v5784_v12, %v517_v36  ;;  %v1143_v56 = vsel %vm7721_vm1, %v1140_v37, %v1142_v47  ;;  %v7808_v47 = vand.u32 15, %v5733_v50  ;;  %v5930_v36 = vpop.f32.mrb[7].mxu1  ;;  %v5444_v50 = vld [vmem:[%s7659_s3 + $0x188] sm:$0xff]   ;;  %v5451_v37 = vld [vmem:[%s7659_s3 + $0x1e0] sm:$0xff]  }
  0xf6   : > { %7805 = vst [vmem:[#allocation18_spill] sm:$0xff] %v5893_v39  ;;  %7806 = vst [vmem:[#allocation19_spill] sm:$0xff] %v5898_v34  ;;  %v1375_v58 = vrot.slane %v5895_v32, 1  ;;  %v5914_v14 = vmax.f32 %v526_v29, 0.0  ;;  %4256 = vmatmul.mubr.msk.bf16.vlgmr.msra.gmra.mrb[16].mxu1 %vm5868_vm9, %v5893_v39  ;;  %5032 = vmatprep.mubr.msk.bf16.mxu0 %vm5884_vm10, %v5898_v34  ;;  %v5922_v48 = vpack.c.bf16 %v1145_v57, %v1143_v56 }
  0xf7   : > { %vm5926_vm11 = vcmp.le.s32.totalorder %v7808_v47, 14  ;;  %v1371_v52 = vrot.slane %v5905_v16, 1  ;;  %v5934_v23 = vmax.f32 %v518_v24, 0.0  ;;  %1990 = vmatprep.mubr.bf16.mxu1 %v5851_v25  ;;  %4821 = vmatpush3.bf16.msra.mxu1 %v5441_v60  ;;  %v574_v47 = vadd.f32 %v5827_v33, %v5784_v12  ;;  %v5446_v60 = vld [vmem:[%s7659_s3 + $0x1d0] sm:$0xff]  }
  0xf8   : > { %7807 = vst [vmem:[#allocation20_spill] sm:$0xff] %v5922_v48  ;;  %v566_v29 = vadd.f32 %v5784_v12, %v565_v41  ;;  %v7811_v24 = vand.u32 15, %v5736_v51  ;;  %4822 = vmatprep.subr.bf16.mxu1 %v5443_v31  ;;  %v7814_v51 = vmov 0  ;;  %v5425_v31 = vld [vmem:[%s7659_s3] sm:$0xff]   ;;  %vm6095_vm5 = vmpackc.low %vm5926_vm11, %vm7737_vm8  ;;  %v579_v7 = vadd.f32 %v5784_v12, %v5900_v21 }
  0xf9   : > { %v1372_v8 = vsel %vm7726_vm2, %v1369_v54, %v1371_v52  ;;  %v1373_v56 = vrot.slane %v5934_v23, 1  ;;  %v4994_v33 = vpop.f32.mrb[8].mxu0  ;;  %v7815_v51 = vsel %vm5961_vm13, 4294967295, %v7814_v51  ;;  %v5970_v41 = vpack.c.bf16 %v5934_v23, %v5905_v16 }
  0xfa   : > { %vm5948_vm12 = vcmp.ge.s32.totalorder %v7811_v24, 1  ;;  %7816 = vst [vmem:[#allocation21_spill] sm:$0xff] %v7815_v51  ;;  %v7818_v54 = vand.u32 15, %v5741_v55  ;;  %v5978_v57 = vpack.c.bf16 %v1372_v8, %v1370_v4  ;;  %v539_v42 = vadd.f32 %v4994_v33, %v5784_v12  ;;  %v530_v6 = vpop.f32.mrb[9].mxu0  ;;  %v6008_v33 = vpop.f32.mrb[8].mxu1 }
  0xfb   : > { %7817 = vst [vmem:[#allocation22_spill] sm:$0xff] %v5970_v41  ;;  %v5988_v22 = vmax.f32 %v574_v47, 0.0  ;;  %v5990_v30 = vmax.f32 %v566_v29, 0.0  ;;  %v531_v55 = vadd.f32 %v5784_v12, %v530_v6  ;;  %v1374_v8 = vsel %vm7726_vm2, %v1371_v52, %v1373_v56  ;;  %v5426_v47 = vld [vmem:[%s7659_s3 + $0x48] sm:$0xff]   ;;  %4823 = vmatpush3.bf16.msra.mxu1 %v5444_v50  ;;  %v6019_v26 = vpop.f32.mrb[9].mxu1  ;;  %vm6129_vm7 = vmpackc.low %vm7737_vm8, %vm5948_vm12 }
  0xfc   : > { %vm5974_vm14 = vcmp.le.s32.totalorder %v7818_v54, 14  ;;  %7821 = vst [vmem:[#allocation23_spill] sm:$0xff] %v5978_v57  ;;  %v4995_v54 = vpop.f32.mrb[10].mxu0  ;;  %v1376_v4 = vsel %vm7726_vm2, %v1373_v56, %v1375_v58  ;;  %v7828_v29 = vrot.slane %v5914_v14, 1  ;;  %v6010_v52 = vmax.f32 %v539_v42, 0.0  ;;  %5033 = vmatmul.mubr.msk.bf16.vlgmr.msra.gmra.mrb[16].mxu0 %vm5961_vm13, %v5978_v57  ;;  %4824 = vmatprep.subr.bf16.mxu1 %v5446_v60  ;;  %v5449_v60 = vld [vmem:[%s7659_s3 + $0x1d8] sm:$0xff]  }
  0xfd   : > { %v542_v56 = vadd.f32 %v4995_v54, %v5784_v12  ;;  %v533_v38 = vpop.f32.mrb[11].mxu0  ;;  %v6016_v11 = vpack.c.bf16 %v1376_v4, %v1374_v8  ;;  %v6024_v50 = vmax.f32 %v531_v55, 0.0  ;;  %4685 = vmatpush3.bf16.msra.mxu0 %v5425_v31  ;;  %v5427_v8 = vld [vmem:[%s7659_s3 + $0x8] sm:$0xff]   ;;  %v6032_v4 = vpop.f32.mrb[10].mxu1  ;;  %v7830_v55 = vand.u32 15, %v5747_v59  ;;  %v5450_v59 = vld [vmem:[%s7659_s3 + $0x198] sm:$0xff]   ;;  %vm6148_vm11 = vmpackc.low %vm5974_vm14, %vm7737_vm8 }
  0xfe   : > { %v1378_v6 = vsel %vm7726_vm2, %v1375_v58, %v7828_v29  ;;  %v5447_v58 = vld [vmem:[%s7659_s3 + $0x190] sm:$0xff]   ;;  %v534_v42 = vadd.f32 %v5784_v12, %v533_v38  ;;  %4259 = vmatmul.mubr.msk.bf16.gmra.mrb[20].mxu1 %vm5984_vm15, %v5922_v48  ;;  %4686 = vmatprep.subr.bf16.mxu0 %v5426_v47  ;;  %v587_v31 = vadd.f32 %v5888_v53, %v5784_v12  ;;  %v7834_v57 = vrot.slane %v5832_v44, 7  ;;  %v5435_v44 = vld [vmem:[%s7659_s3 + $0x28] sm:$0xff]  }
  0xff   : > { %7829 = vst [vmem:[#allocation26_spill] sm:$0xff] %v6016_v11  ;;  %v6039_v38 = vmax.f32 %v542_v56, 0.0  ;;  %5036 = vmatprep.mubr.msk.bf16.mxu0 %vm5998_vm0, %v6016_v11  ;;  %v5428_v29 = vld [vmem:[%s7659_s3 + $0x50] sm:$0xff]   ;;  %vm6053_vm3 = vcmp.le.s32.totalorder %v7830_v55, 14  ;;  %v6057_v56 = vpop.f32.mrb[11].mxu1  ;;  %v1379_v51 = vrot.slane %v6024_v50, 1  ;;  %1998 = vmatprep.mubr.bf16.mxu1 %v5970_v41  ;;  %v6166_v24 = vpack.c.bf16 %v5914_v14, %v5895_v32 }
 0x100   : > { %v6061_v35 = vmax.f32 %v534_v42, 0.0  ;;  %v7833_v11 = vrot.slane %v5905_v16, 7  ;;  %v7835_v34 = vrot.slane %v5934_v23, 7  ;;  %v7837_v47 = vand.u32 15, %v5751_v61  ;;  %4825 = vmatpush3.bf16.msra.mxu1 %v5447_v58  ;;  %v5456_v54 = vld [vmem:[%s7659_s3 + $0x1f0] sm:$0xff]  }
 0x101   : > { %v7840_v16 = vrot.slane %v5914_v14, 1  ;;  %v7841_v61 = vmov 0  ;;  %4687 = vmatpush3.bf16.msra.mxu0 %v5427_v8  ;;  %v6099_v58 = vmax.f32 %v587_v31, 0.0  ;;  %4826 = vmatprep.subr.bf16.mxu1 %v5449_v60  ;;  %v7852_v13 = vrot.slane %v6010_v52, 1  ;;  %7857 = vst [vmem:[#allocation33_spill] sm:$0xff] %v6166_v24 }
 0x102   : > { %v1147_v20 = vsel %vm7721_vm1, %v7834_v57, %v7833_v11  ;;  %v7836_v42 = vmov %v7833_v11  ;;  %vm6080_vm4 = vcmp.ge.s32.totalorder %v7837_v47, 1  ;;  %v1381_v11 = vrot.slane %v6061_v35, 1  ;;  %v4998_v57 = vpop.f32.mrb[12].mxu0  ;;  %4688 = vmatprep.subr.bf16.mxu0 %v5428_v29 }
 0x103   : > { %v1149_v41 = vsel %vm7721_vm1, %v7836_v42, %v7835_v34  ;;  %v1380_v34 = vsel %vm7726_vm2, %v7840_v16, %v1379_v51  ;;  %v7842_v61 = vsel %vm6095_vm5, 4294967295, %v7841_v61  ;;  %v5429_v42 = vld [vmem:[%s7659_s3 + $0x10] sm:$0xff]   ;;  %v7844_v47 = vand.u32 15, %v5754_v62  ;;  %v546_v8 = vpop.f32.mrb[13].mxu0  ;;  %v5430_v62 = vld [vmem:[%s7659_s3 + $0x58] sm:$0xff]   ;;  %vm6232_vm1 = vmpackc.low %vm6053_vm3, %vm7737_vm8 }
 0x104   : > { %7843 = vst [vmem:[#allocation27_spill] sm:$0xff] %v7842_v61  ;;  %v555_v16 = vadd.f32 %v4998_v57, %v5784_v12  ;;  %v6114_v31 = vpack.c.bf16 %v1380_v34, %v1378_v6  ;;  %v6116_v55 = vpack.c.bf16 %v1149_v41, %v1147_v20  ;;  %v547_v60 = vadd.f32 %v5784_v12, %v546_v8  ;;  %v6134_v41 = vpop.f32.mrb[12].mxu1 }
 0x105   : > { %vm6106_vm6 = vcmp.le.s32.totalorder %v7844_v47, 14  ;;  %v4999_v47 = vpop.f32.mrb[14].mxu0  ;;  %v7849_v20 = vmov 0  ;;  %v1382_v21 = vsel %vm7726_vm2, %v1379_v51, %v1381_v11  ;;  %v1384_v8 = vsel %vm7726_vm2, %v1381_v11, %v7852_v13  ;;  %v6154_v48 = vpop.f32.mrb[13].mxu1  ;;  %4827 = vmatpush3.bf16.msra.mxu1 %v5450_v59  ;;  %4689 = vmatpush3.bf16.msra.mxu0 %v5429_v42 }
 0x106   : > { %7847 = vst [vmem:[#allocation28_spill] sm:$0xff] %v6114_v31  ;;  %7848 = vst [vmem:[#allocation29_spill] sm:$0xff] %v6116_v55  ;;  %v7850_v20 = vsel %vm6129_vm7, 4294967295, %v7849_v20  ;;  %v6136_v6 = vmax.f32 %v555_v16, 0.0  ;;  %v558_v29 = vadd.f32 %v4999_v47, %v5784_v12  ;;  %v549_v34 = vpop.f32.mrb[15].mxu0  ;;  %5037 = vmatmul.mubr.msk.bf16.gmra.mrb[20].mxu0 %vm6095_vm5, %v6114_v31  ;;  %v7853_v51 = vmov 0  ;;  %4828 = vmatprep.subr.bf16.mxu1 %v5451_v37 }
 0x107   : > { %7851 = vst [vmem:[#allocation30_spill] sm:$0xff] %v7850_v20  ;;  %v7854_v51 = vsel %vm6148_vm11, 4294967295, %v7853_v51  ;;  %v6152_v16 = vmax.f32 %v579_v7, 0.0  ;;  %v5452_v47 = vld [vmem:[%s7659_s3 + $0x1a0] sm:$0xff]   ;;  %v6159_v57 = vmax.f32 %v547_v60, 0.0  ;;  %v550_v11 = vadd.f32 %v5784_v12, %v549_v34  ;;  %v5431_v7 = vld [vmem:[%s7659_s3 + $0x18] sm:$0xff]   ;;  %4262 = vmatmul.mubr.msk.bf16.gmra.mrb[24].mxu1 %vm6129_vm7, %v6116_v55  ;;  %4690 = vmatprep.subr.bf16.mxu0 %v5430_v62  ;;  %vm6272_vm5 = vmpackc.low %vm7737_vm8, %vm6080_vm4 }
 0x108   : > { %7855 = vst [vmem:[#allocation31_spill] sm:$0xff] %v7854_v51  ;;  %v6162_v13 = vpack.c.bf16 %v1384_v8, %v1382_v21  ;;  %v6171_v59 = vpop.f32.mrb[14].mxu1  ;;  %v5453_v60 = vld [vmem:[%s7659_s3 + $0x1e8] sm:$0xff]   ;;  %v1391_v21 = vrot.slane %v6136_v6, 1  ;;  %v6178_v8 = vmax.f32 %v558_v29, 0.0  ;;  %v7858_v61 = vand.u32 15, %v5757_v63  ;;  %2006 = vmatprep.mubr.bf16.mxu1 %v6166_v24 }
 0x109   : > { %v6190_v31 = vpop.f32.mrb[15].mxu1  ;;  %v5432_v29 = vld [vmem:[%s7659_s3 + $0x60] sm:$0xff]   ;;  %v1387_v20 = vrot.slane %v6159_v57, 1  ;;  %v6197_v55 = vmax.f32 %v550_v11, 0.0  ;;  %v590_v11 = vadd.f32 %v5910_v40, %v5784_v12  ;;  %v582_v51 = vadd.f32 %v5784_v12, %v5930_v36  ;;  %4829 = vmatpush3.bf16.msra.mxu1 %v5452_v47  ;;  %v5455_v63 = vld [vmem:[%s7659_s3 + $0x1a8] sm:$0xff]   ;;  %4691 = vmatpush3.bf16.msra.mxu0 %v5431_v7  ;;  %v5437_v37 = vld [vmem:[%s7659_s3 + $0x30] sm:$0xff]  }
 0x10a   : > { %7856 = vst [vmem:[#allocation32_spill] sm:$0xff] %v6162_v13  ;;  %vm6186_vm12 = vcmp.le.s32.totalorder %v7858_v61, 14  ;;  %5040 = vmatprep.mubr.msk.bf16.mxu0 %vm6148_vm11, %v6162_v13  ;;  %v7861_v61 = vand.u32 15, %v5760_v0  ;;  %v1393_v34 = vrot.slane %v6178_v8, 1  ;;  %v7864_v13 = vrot.slane %v6039_v38, 1  ;;  %4830 = vmatprep.subr.bf16.mxu1 %v5453_v60 }
 0x10b   : > { %v7865_v42 = vrot.slane %v6010_v52, 1  ;;  %v7867_v36 = vmov 0  ;;  %v7869_v47 = vand.u32 15, %v5763_v1  ;;  %v603_v1 = vadd.f32 %v6008_v33, %v5784_v12  ;;  %4692 = vmatprep.subr.bf16.mxu0 %v5432_v29 }
 0x10c   : > { %vm6206_vm14 = vcmp.le.s32.totalorder %v7861_v61, 14  ;;  %v1389_v61 = vrot.slane %v6197_v55, 1  ;;  %v7866_v40 = vmov %v7864_v13  ;;  %v7868_v36 = vsel %vm6232_vm1, 4294967295, %v7867_v36 }
 0x10d   : > { %v1386_v24 = vsel %vm7726_vm2, %v7865_v42, %v7864_v13  ;;  %v1388_v25 = vsel %vm7726_vm2, %v7866_v40, %v1387_v20  ;;  %vm6238_vm11 = vcmp.ge.s32.totalorder %v7869_v47, 1  ;;  %v5433_v13 = vld [vmem:[%s7659_s3 + $0x20] sm:$0xff]   ;;  %v6248_v42 = vmax.f32 %v590_v11, 0.0  ;;  %v5434_v47 = vld [vmem:[%s7659_s3 + $0x68] sm:$0xff]   ;;  %4831 = vmatpush3.bf16.msra.mxu1 %v5455_v63  ;;  %v5458_v63 = vld [vmem:[%s7659_s3 + $0x1f8] sm:$0xff]  }
 0x10e   : > { %v6250_v40 = vmax.f32 %v582_v51, 0.0  ;;  %v6252_v7 = vpack.c.bf16 %v1388_v25, %v1386_v24  ;;  %v7872_v60 = vrot.slane %v5895_v32, 7  ;;  %v7873_v49 = vrot.slane %v5934_v23, 7  ;;  %4693 = vmatpush3.bf16.msra.mxu0 %v5433_v13  ;;  %4832 = vmatprep.subr.bf16.mxu1 %v5456_v54 }
 0x10f   : > { %vm7874_vm3 = vcmask 1040384   ;;  %v7875_v11 = vrot.slane %v5914_v14, 7  ;;  %vm7880_vm0 = vcmask 1046528   ;;  %v7882_v53 = vmov 0  ;;  %4694 = vmatprep.subr.bf16.mxu0 %v5434_v47 }
 0x110   : > { %v1151_v39 = vsel %vm7874_vm3, %v7873_v49, %v7872_v60  ;;  %v7876_v51 = vmov %v7872_v60  ;;  %vm7877_vm2 = vmmov %vm7874_vm3  ;;  %v1390_v24 = vsel %vm7880_vm0, %v1387_v20, %v1389_v61  ;;  %5041 = vmatmul.mubr.msk.bf16.gmra.mrb[24].mxu0 %vm6232_vm1, %v6252_v7  ;;  %v5457_v20 = vld [vmem:[%s7659_s3 + $0x1b0] sm:$0xff]   ;;  %v595_v23 = vadd.f32 %v5784_v12, %v6019_v26 }
 0x111   : > { %v1153_v25 = vsel %vm7877_vm2, %v7876_v51, %v7875_v11  ;;  %vm7881_vm13 = vmmov %vm7880_vm0  ;;  %v598_v26 = vadd.f32 %v5784_v12, %v6057_v56  ;;  %v7889_v56 = vrot.slane %v5846_v27, 1  ;;  %v7891_v47 = vand.u32 15, %v5769_v3  ;;  %4833 = vmatpush3.bf16.msra.mxu1 %v5457_v20 }
 0x112   : > { %v1392_v29 = vsel %vm7881_vm13, %v1389_v61, %v1391_v21  ;;  %vm6288_vm2 = vmpackc.low %vm6106_vm6, %vm7737_vm8  ;;  %v6295_v61 = vmax.f32 %v603_v1, 0.0  ;;  %v6297_v11 = vpack.c.bf16 %v1153_v25, %v1151_v39  ;;  %v6311_v1 = vpack.c.bf16 %v6061_v35, %v6024_v50  ;;  %4695 = vmatpush3.bf16.msra.mxu0 %v5435_v44  ;;  %4834 = vmatprep.subr.bf16.mxu1 %v5458_v63  ;;  %v5438_v44 = vld [vmem:[%s7659_s3 + $0x78] sm:$0xff]  }
 0x113   : > { %v7883_v53 = vsel %vm6288_vm2, 4294967295, %v7882_v53  ;;  %v6299_v51 = vpack.c.bf16 %v1392_v29, %v1390_v24  ;;  %v606_v39 = vadd.f32 %v6032_v4, %v5784_v12  ;;  %vm7885_vm13 = vmmov %vm7880_vm0  ;;  %v7886_v25 = vand.u32 15, %v5766_v2  ;;  %v5436_v24 = vld [vmem:[%s7659_s3 + $0x70] sm:$0xff]   ;;  %v5459_v63 = vld [vmem:[%s7659_s3 + $0x1b8] sm:$0xff]  }
 0x114   : > { %7884 = vst [vmem:[#allocation34_spill] sm:$0xff] %v7883_v53  ;;  %v1394_v13 = vsel %vm7885_vm13, %v1391_v21, %v1393_v34  ;;  %4265 = vmatmul.mubr.msk.bf16.gmra.mrb[28].mxu1 %vm6272_vm5, %v6297_v11  ;;  %v6335_v2 = vmax.f32 %v595_v23, 0.0  ;;  %vm7890_vm4 = vmmov %vm7885_vm13  ;;  %vm6342_vm6 = vcmp.le.s32.totalorder %v7891_v47, 14  ;;  %v6349_v60 = vmax.f32 %v598_v26, 0.0  ;;  %4696 = vmatprep.subr.bf16.mxu0 %v5436_v24 }
 0x115   : > { %vm6320_vm0 = vcmp.le.s32.totalorder %v7886_v25, 14  ;;  %5044 = vmatprep.mubr.msk.bf16.mxu0 %vm6288_vm2, %v6299_v51  ;;  %v1396_v21 = vsel %vm7890_vm4, %v1393_v34, %v7889_v56  ;;  %2014 = vmatprep.mubr.bf16.mxu1 %v6311_v1  ;;  %v6347_v29 = vmax.f32 %v606_v39, 0.0  ;;  %v7895_v23 = vrot.slane %v5990_v30, 1  ;;  %vm7897_vm3 = vmmov %vm7890_vm4 }
 0x116   : > { %v6351_v4 = vpack.c.bf16 %v1396_v21, %v1394_v13  ;;  %v7896_v49 = vmov %v7889_v56  ;;  %vm6363_vm13 = vmpackc.low %vm6186_vm12, %vm7737_vm8  ;;  %v7898_v39 = vmov 0  ;;  %v7901_v26 = vrot.slane %v5838_v43, 1  ;;  %4697 = vmatpush3.bf16.msra.mxu0 %v5437_v37  ;;  %4835 = vmatpush3.bf16.msra.mxu1 %v5459_v63 }
 0x117   : > { %v1398_v34 = vsel %vm7897_vm3, %v7896_v49, %v7895_v23  ;;  %v7899_v39 = vsel %vm6363_vm13, 4294967295, %v7898_v39  ;;  %v7902_v13 = vmov %v7895_v23  ;;  %vm7903_vm4 = vmmov %vm7897_vm3  ;;  %v619_v49 = vadd.f32 %v6134_v41, %v5784_v12  ;;  %4698 = vmatprep.subr.bf16.mxu0 %v5438_v44 }
 0x118   : > { %7894 = vst [vmem:[#allocation35_spill] sm:$0xff] %v6351_v4  ;;  %7900 = vst [vmem:[#allocation36_spill] sm:$0xff] %v7899_v39  ;;  %v1400_v21 = vsel %vm7903_vm4, %v7902_v13, %v7901_v26  ;;  %v7904_v20 = vand.u32 15, %v5773_v5  ;;  %v1413_v41 = vrot.slane %v6349_v60, 1  ;;  %v7907_v5 = vmov 0  ;;  %5045 = vmatmul.mubr.msk.bf16.gmra.mrb[28].mxu0 %vm6363_vm13, %v6351_v4 }
 0x119   : > { %vm6390_vm12 = vmpackc.low %vm6206_vm14, %vm7737_vm8  ;;  %v6400_v13 = vpack.c.bf16 %v1400_v21, %v1398_v34  ;;  %v7911_v23 = vrot.slane %v6024_v50, 7  ;;  %v7912_v62 = vrot.slane %v5914_v14, 7  ;;  %vm7913_vm14 = vcmask 1040384   ;;  %v8075_v34 = vld [vmem:[#allocation17_spill] sm:$0xff] }
 0x11a   : > { %vm6376_vm3 = vcmp.ge.s32.totalorder %v7904_v20, 1  ;;  %v7908_v5 = vsel %vm6390_vm12, 4294967295, %v7907_v5  ;;  %v6402_v20 = vmax.f32 %v619_v49, 0.0  ;;  %v7914_v24 = vrot.slane %v6061_v35, 7  ;;  %vm7916_vm4 = vmmov %vm7913_vm14 }
 0x11b   : > { %7909 = vst [vmem:[#allocation37_spill] sm:$0xff] %v7908_v5  ;;  %7910 = vst [vmem:[#allocation38_spill] sm:$0xff] %v6400_v13  ;;  %v1155_v26 = vsel %vm7913_vm14, %v7912_v62, %v7911_v23  ;;  %v7915_v3 = vmov %v7911_v23  ;;  %v611_v21 = vadd.f32 %v5784_v12, %v6154_v48  ;;  %v6430_v50 = vpack.c.bf16 %v6039_v38, %v6010_v52 }
 0x11c   : > { %v1157_v56 = vsel %vm7916_vm4, %v7915_v3, %v7914_v24  ;;  %vm6420_vm2 = vmpackc.low %vm7737_vm8, %vm6238_vm11  ;;  %v622_v3 = vadd.f32 %v6171_v59, %v5784_v12  ;;  %5048 = vmatprep.mubr.msk.bf16.mxu0 %vm6390_vm12, %v6400_v13  ;;  %v1423_v49 = vrot.slane %v6402_v20, 1  ;;  %v7919_v48 = vrot.slane %v5988_v22, 1  ;;  %v5439_v59 = vld [vmem:[%s7659_s3 + $0x38] sm:$0xff]  }
 0x11d   : > { %v6424_v14 = vpack.c.bf16 %v1157_v56, %v1155_v26  ;;  %v614_v56 = vadd.f32 %v5784_v12, %v6190_v31  ;;  %v7920_v23 = vrot.slane %v5838_v43, 1  ;;  %vm7921_vm11 = vcmask 1046528   ;;  %4699 = vmatpush3.bf16.msra.mxu0 %v5439_v59 }
 0x11e   : > { %v6449_v62 = vmax.f32 %v611_v21, 0.0  ;;  %v6451_v24 = vmax.f32 %v622_v3, 0.0  ;;  %v7922_v0 = vrot.slane %v6152_v16, 1  ;;  %v7923_v32 = vmov %v7919_v48  ;;  %vm7924_vm14 = vmmov %vm7921_vm11  ;;  %v6472_v21 = vld [vmem:[%s7659_s3 + $0x80] sm:$0xff]  }
 0x11f   : > { %v1402_v26 = vsel %vm7921_vm11, %v7920_v23, %v7919_v48  ;;  %v7925_v31 = vrot.slane %v6250_v40, 1  ;;  %vm7927_vm4 = vmmov %vm7921_vm11  ;;  %v7928_v48 = vand.u32 15, %v5776_v9  ;;  %4268 = vmatmul.mubr.msk.bf16.gmra.mrb[32].mxu1 %vm6420_vm2, %v6424_v14  ;;  %v7931_v9 = vrot.slane %v6099_v58, 1  ;;  %5064 = vmatprep.subr.bf16.mxu0 %v6472_v21 }
 0x120   : > { %v1404_v12 = vsel %vm7924_vm14, %v7923_v32, %v7922_v0  ;;  %v7926_v5 = vmov %v7922_v0  ;;  %v6477_v32 = vmax.f32 %v614_v56, 0.0  ;;  %vm7933_vm14 = vmmov %vm7927_vm4  ;;  %v7934_v0 = vrot.slane %v6010_v52, 7  ;;  %2022 = vmatprep.mubr.bf16.mxu1 %v6430_v50 }
 0x121   : > { %v1406_v37 = vsel %vm7927_vm4, %v7926_v5, %v7925_v31  ;;  %vm6465_vm11 = vcmp.le.s32.totalorder %v7928_v48, 14  ;;  %v6479_v5 = vpack.c.bf16 %v1404_v12, %v1402_v26  ;;  %v7932_v3 = vmov %v7925_v31 }
 0x122   : > { %v1408_v44 = vsel %vm7933_vm14, %v7932_v3, %v7931_v9  ;;  %v7935_v31 = vrot.slane %v6061_v35, 7  ;;  %vm7936_vm4 = vcmask 1040384   ;;  %v7937_v48 = vand.u32 15, %v5779_v10 }
 0x123   : > { %v1419_v26 = vrot.slane %v6449_v62, 1  ;;  %v1425_v9 = vrot.slane %v6451_v24, 1  ;;  %v1421_v3 = vrot.slane %v6477_v32, 1  ;;  %vm7940_vm14 = vmmov 1  }
 0x124   : > { %v1159_v63 = vsel %vm7936_vm4, %v7935_v31, %v7934_v0  ;;  %vm6493_vm8 = vcmp.le.s32.totalorder %v7937_v48, 14  ;;  %vm6507_vm4 = vmpackc.low %vm6320_vm0, %vm7940_vm14  ;;  %v7941_v10 = vmov 0  ;;  %v6511_v0 = vpack.c.bf16 %v1408_v44, %v1406_v37 }
 0x125   : > { %v7942_v10 = vsel %vm6507_vm4, 4294967295, %v7941_v10  ;;  %v7943_v31 = vrot.slane %v6039_v38, 7  ;;  %v7944_v48 = vrot.slane %v6010_v52, 7  ;;  %vm7945_vm12 = vcmask 1040384   ;;  %vm6528_vm0 = vmpackc.low %vm6342_vm6, %vm7940_vm14  ;;  %5049 = vmatmul.mubr.msk.bf16.gmra.mrb[32].mxu0 %vm6507_vm4, %v6479_v5 }
 0x126   : > { %v7946_v56 = vand.u32 15, %v5792_v17  ;;  %vm7949_vm1 = vcmask 1046528   ;;  %v7950_v37 = vmov 0  ;;  %v6536_v52 = vpack.c.bf16 %v6197_v55, %v6159_v57  ;;  %5052 = vmatprep.mubr.msk.bf16.mxu0 %vm6528_vm0, %v6511_v0 }
 0x127   : > { %v1161_v12 = vsel %vm7945_vm12, %v7944_v48, %v7943_v31  ;;  %v1459_v54 = vsel %vm7949_vm1, %v1425_v9, 0.0  ;;  %v7951_v37 = vsel %vm6528_vm0, 4294967295, %v7950_v37  ;;  %v7953_v17 = vrot.slane %v6248_v42, 1  ;;  %vm7955_vm12 = vmmov %vm7949_vm1 }
 0x128   : > { %vm6520_vm13 = vcmp.ge.s32.totalorder %v7946_v56, 1  ;;  %7952 = vst [vmem:[#allocation39_spill] sm:$0xff] %v7951_v37  ;;  %v6532_v44 = vpack.c.bf16 %v1161_v12, %v1159_v63  ;;  %v7954_v56 = vrot.slane %v6099_v58, 1  ;;  %v7956_v25 = vrot.slane %v6335_v2, 1  ;;  %vm7959_vm6 = vmmov %vm7949_vm1 }
 0x129   : > { %v7957_v31 = vmov %v7953_v17  ;;  %v7960_v39 = vrot.slane %v6295_v61, 1  ;;  %vm7961_vm10 = vmmov %vm7949_vm1  ;;  %v7962_v53 = vrot.slane %v6159_v57, 7  ;;  %v7980_v37 = vrot.slane %v6136_v6, 7 }
 0x12a   : > { %v1410_v59 = vsel %vm7955_vm12, %v7954_v56, %v7953_v17  ;;  %v1412_v48 = vsel %vm7949_vm1, %v7957_v31, %v7956_v25  ;;  %v7958_v63 = vmov %v7956_v25  ;;  %v7963_v17 = vrot.slane %v6039_v38, 7  ;;  %vm6566_vm1 = vmpackc.low %vm7940_vm14, %vm6376_vm3  ;;  %v8080_v25 = vld [vmem:[#allocation26_spill] sm:$0xff] }
 0x12b   : > { %v1414_v12 = vsel %vm7959_vm6, %v7958_v63, %v1413_v41  ;;  %v1416_v4 = vsel %vm7961_vm10, %v1413_v41, %v7960_v39  ;;  %vm7964_vm12 = vcmask 1040384   ;;  %v6570_v31 = vpack.c.bf16 %v1412_v48, %v1410_v59  ;;  %vm7972_vm3 = vmmov %vm7959_vm6  ;;  %4271 = vmatmul.mubr.msk.bf16.gmra.mrb[36].mxu1 %vm6566_vm1, %v6532_v44 }
 0x12c   : > { %v1163_v56 = vsel %vm7964_vm12, %v7963_v17, %v7962_v53  ;;  %v6572_v39 = vpack.c.bf16 %v1416_v4, %v1414_v12  ;;  %v7967_v41 = vrot.slane %v6197_v55, 7  ;;  %v7968_v38 = vmov %v7962_v53  ;;  %vm7969_vm10 = vmmov %vm7964_vm12  ;;  %2030 = vmatprep.mubr.bf16.mxu1 %v6536_v52 }
 0x12d   : > { %v6581_v63 = vpack.c.bf16 %v6178_v8, %v6136_v6  ;;  %v7970_v59 = vrot.slane %v6347_v29, 1  ;;  %v7971_v4 = vrot.slane %v6295_v61, 1  ;;  %vm7974_vm6 = vmmov %vm7972_vm3  ;;  %v7986_v6 = vrot.slane %v5846_v27, 7 }
 0x12e   : > { %v1165_v53 = vsel %vm7969_vm10, %v7968_v38, %v7967_v41  ;;  %vm7975_vm12 = vmmov %vm7972_vm3  ;;  %v7976_v41 = vand.u32 15, %v5795_v18  ;;  %v6666_v23 = vpack.c.bf16 %v6250_v40, %v6152_v16  ;;  %v6689_v13 = vpack.c.bf16 %v6248_v42, %v6099_v58  ;;  %v8087_v38 = vld [vmem:[#allocation31_spill] sm:$0xff] }
 0x12f   : > { %v6586_v47 = vpack.c.bf16 %v1165_v53, %v1163_v56  ;;  %v1418_v48 = vsel %vm7972_vm3, %v7971_v4, %v7970_v59  ;;  %v7973_v57 = vmov %v7970_v59  ;;  %v1422_v17 = vsel %vm7975_vm12, %v1419_v26, %v1421_v3  ;;  %vm7979_vm0 = vmmov %vm7972_vm3 }
 0x130   : > { %v1420_v12 = vsel %vm7974_vm6, %v7973_v57, %v1419_v26  ;;  %vm6599_vm10 = vcmp.le.s32.totalorder %v7976_v41, 14  ;;  %v1424_v53 = vsel %vm7979_vm0, %v1421_v3, %v1423_v49  ;;  %v7981_v59 = vrot.slane %v6197_v55, 7 }
 0x131   : > { %v6603_v56 = vpack.c.bf16 %v1420_v12, %v1418_v48  ;;  %vm7982_vm3 = vcmask 1040384   ;;  %v7983_v57 = vrot.slane %v6178_v8, 7  ;;  %v7984_v26 = vmov %v7980_v37 }
 0x132   : > { %v1167_v4 = vsel %vm7982_vm3, %v7981_v59, %v7980_v37  ;;  %vm7985_vm6 = vmmov %vm7982_vm3  ;;  %v6619_v48 = vpack.c.bf16 %v1424_v53, %v1422_v17  ;;  %v6625_v3 = vpack.c.bf16 %v5990_v30, %v5846_v27  ;;  %v1426_v55 = vsel %vm7979_vm0, %v1423_v49, %v1425_v9 }
 0x133   : > { %v1169_v18 = vsel %vm7985_vm6, %v7984_v26, %v7983_v57  ;;  %v6629_v37 = vpack.c.bf16 %v1459_v54, %v1426_v55  ;;  %v7987_v41 = vmov %v7983_v57  ;;  %vm7988_vm12 = vmmov %vm7982_vm3  ;;  %v7989_v17 = vrot.slane %v5990_v30, 7 }
 0x134   : > { %v6621_v12 = vpack.c.bf16 %v1169_v18, %v1167_v4  ;;  %v1171_v59 = vsel %vm7988_vm12, %v7987_v41, %v7986_v6  ;;  %v7990_v53 = vmov %v7986_v6  ;;  %v6643_v57 = vpack.c.bf16 %v5988_v22, %v5838_v43  ;;  %vm6648_vm6 = vmpackc.low %vm6465_vm11, %vm7940_vm14 }
 0x135   : > { %v1173_v4 = vsel %vm7982_vm3, %v7990_v53, %v7989_v17  ;;  %v7991_v49 = vmov 0  ;;  %v7993_v9 = vrot.slane %v5838_v43, 7  ;;  %v7994_v54 = vmov %v7989_v17  ;;  %vm7995_vm0 = vmmov %vm7982_vm3  ;;  %5053 = vmatmul.mubr.msk.bf16.gmra.mrb[36].mxu0 %vm6648_vm6, %v6570_v31 }
 0x136   : > { %v7992_v49 = vsel %vm6648_vm6, 4294967295, %v7991_v49  ;;  %v6652_v8 = vpack.c.bf16 %v1173_v4, %v1171_v59  ;;  %v7996_v26 = vrot.slane %v5988_v22, 7  ;;  %vm7998_vm12 = vmmov %vm7995_vm0  ;;  %v7999_v6 = vmov 0 }
 0x137   : > { %v1175_v27 = vsel %vm7995_vm0, %v7994_v54, %v7993_v9  ;;  %v7997_v18 = vmov %v7993_v9  ;;  %vm6671_vm11 = vmpackc.low %vm6493_vm8, %vm7940_vm14  ;;  %v8001_v41 = vrot.slane %v6152_v16, 7  ;;  %v8004_v17 = vrot.slane %v6250_v40, 7  ;;  %v8086_v40 = vld [vmem:[#allocation32_spill] sm:$0xff] }
 0x138   : > { %v1177_v55 = vsel %vm7998_vm12, %v7997_v18, %v7996_v26  ;;  %v8000_v6 = vsel %vm6671_vm11, 4294967295, %v7999_v6  ;;  %v8002_v59 = vmov %v7996_v26  ;;  %vm8003_vm3 = vmmov %vm7995_vm0  ;;  %v8006_v54 = vrot.slane %v6099_v58, 7  ;;  %5056 = vmatprep.mubr.msk.bf16.mxu0 %vm6671_vm11, %v6572_v39 }
 0x139   : > { %v6675_v30 = vpack.c.bf16 %v1177_v55, %v1175_v27  ;;  %v1179_v43 = vsel %vm8003_vm3, %v8002_v59, %v8001_v41  ;;  %v8005_v53 = vmov %v8001_v41  ;;  %v8007_v27 = vmov %v8004_v17  ;;  %vm8008_vm8 = vmmov %vm7995_vm0 }
 0x13a   : > { %v1181_v4 = vsel %vm7995_vm0, %v8005_v53, %v8004_v17  ;;  %v1183_v22 = vsel %vm8008_vm8, %v8007_v27, %v8006_v54  ;;  %v8009_v26 = vrot.slane %v6248_v42, 7  ;;  %v8010_v18 = vmov %v8006_v54  ;;  %vm8011_vm12 = vmmov %vm7995_vm0 }
 0x13b   : > { %v6691_v9 = vpack.c.bf16 %v1181_v4, %v1179_v43  ;;  %v6705_v55 = vpack.c.bf16 %v6349_v60, %v6335_v2  ;;  %vm6713_vm3 = vmpackc.low %vm7940_vm14, %vm6520_vm13  ;;  %v8014_v58 = vrot.slane %v6335_v2, 7  ;;  %v8016_v17 = vrot.slane %v6349_v60, 7 }
 0x13c   : > { %v1185_v16 = vsel %vm8011_vm12, %v8010_v18, %v8009_v26  ;;  %v8015_v59 = vmov %v8009_v26  ;;  %vm8018_vm8 = vmmov %vm7995_vm0  ;;  %v6731_v35 = vpack.c.bf16 %v6347_v29, %v6295_v61  ;;  %v8019_v42 = vrot.slane %v6295_v61, 7  ;;  %4274 = vmatmul.mubr.msk.bf16.gmra.mrb[40].mxu1 %vm6713_vm3, %v6586_v47 }
 0x13d   : > { %v6717_v41 = vpack.c.bf16 %v1185_v16, %v1183_v22  ;;  %v1187_v43 = vsel %vm7995_vm0, %v8015_v59, %v8014_v58  ;;  %v8017_v53 = vmov %v8014_v58  ;;  %v8020_v27 = vmov %v8016_v17  ;;  %vm8021_vm13 = vmmov %vm7995_vm0  ;;  %2038 = vmatprep.mubr.bf16.mxu1 %v6581_v63 }
 0x13e   : > { %v1189_v4 = vsel %vm8018_vm8, %v8017_v53, %v8016_v17  ;;  %v1191_v22 = vsel %vm8021_vm13, %v8020_v27, %v8019_v42  ;;  %v8022_v2 = vrot.slane %v6347_v29, 7  ;;  %v8023_v26 = vmov %v8019_v42  ;;  %vm8024_vm12 = vmmov %vm7995_vm0 }
 0x13f   : > { %v6736_v54 = vpack.c.bf16 %v1189_v4, %v1187_v43  ;;  %v6750_v16 = vpack.c.bf16 %v6477_v32, %v6449_v62  ;;  %v8025_v59 = vrot.slane %v6449_v62, 7  ;;  %v8027_v17 = vrot.slane %v6477_v32, 7  ;;  %vm8029_vm8 = vmmov %vm7995_vm0 }
 0x140   : > { %v1193_v18 = vsel %vm8024_vm12, %v8023_v26, %v8022_v2  ;;  %v8026_v43 = vmov %v8022_v2  ;;  %v6766_v4 = vpack.c.bf16 %v6451_v24, %v6402_v20  ;;  %v8030_v42 = vand.u32 15, %v5798_v19  ;;  %vm8033_vm12 = vmmov %vm7995_vm0 }
 0x141   : > { %v6752_v58 = vpack.c.bf16 %v1193_v18, %v1191_v22  ;;  %v1195_v60 = vsel %vm7995_vm0, %v8026_v43, %v8025_v59  ;;  %v8028_v53 = vmov %v8025_v59  ;;  %v8031_v27 = vrot.slane %v6402_v20, 7 }
 0x142   : > { %v1197_v61 = vsel %vm8029_vm8, %v8028_v53, %v8027_v17  ;;  %vm1360_vm13 = vcmp.le.s32.totalorder %v8030_v42, 14  ;;  %v8032_v22 = vmov %v8027_v17  ;;  %v8034_v2 = vrot.slane %v6451_v24, 7  ;;  %vm6791_vm8 = vmpackc.low %vm6599_vm10, %vm7940_vm14 }
 0x143   : > { %v6773_v29 = vpack.c.bf16 %v1197_v61, %v1195_v60  ;;  %v1199_v62 = vsel %vm8033_vm12, %v8032_v22, %v8031_v27  ;;  %v8035_v26 = vmov %v8031_v27  ;;  %v8036_v19 = vmov 0  ;;  %vm6799_vm11 = vmpackc.low %vm1360_vm13, %vm7940_vm14  ;;  %5057 = vmatmul.mubr.msk.bf16.gmra.mrb[40].mxu0 %vm6791_vm8, %v6603_v56  ;;  %v5445_v27 = vld [vmem:[%s7659_s3 + $0x88] sm:$0xff]   ;;  %v5471_v22 = vld [vmem:[%s7659_s3 + $0x238] sm:$0xff]  }
 0x144   : > { %v1201_v18 = vsel %vm7995_vm0, %v8035_v26, %v8034_v2  ;;  %v8037_v19 = vsel %vm6791_vm8, 4294967295, %v8036_v19  ;;  %v8038_v32 = vand.u32 15, %v5808_v28  ;;  %v674_v24 = vadd.s32 128, %v5720_v45  ;;  %5060 = vmatprep.mubr.msk.bf16.mxu0 %vm6799_vm11, %v6619_v48  ;;  %v5448_v2 = vld [vmem:[%s7659_s3 + $0x90] sm:$0xff]  }
 0x145   : > { %v6786_v59 = vpack.c.bf16 %v1201_v18, %v1199_v62  ;;  %v8039_v20 = vmov 0  ;;  %v911_v43 = vand.u32 15, %v5830_v46  ;;  %v8043_v46 = vmov 0  ;;  %v5463_v18 = vld [vmem:[%s7659_s3 + $0xb8] sm:$0xff]  }
 0x146   : > { %vm1088_vm12 = vcmp.ge.s32.totalorder %v8038_v32, 1  ;;  %v8040_v20 = vsel %vm6799_vm11, 4294967295, %v8039_v20  ;;  %v806_v28 = vand.u32 15, %v674_v24  ;;  %v676_v60 = vadd.s32 144, %v5720_v45  ;;  %v8054_v24 = vld [vmem:[#allocation15_spill] sm:$0xff] }
 0x147   : > { %vm6808_vm10 = vmpackc.low %vm7940_vm14, %vm1088_vm12  ;;  %vm1362_vm13 = vcmp.le.s32.totalorder %v911_v43, 14  ;;  %v7765_v53 = vmov 0   ;;  %v678_v42 = vadd.s32 160, %v5720_v45  ;;  %v680_v26 = vadd.s32 176, %v5720_v45 }
 0x148   : > { %4277 = vmatmul.mubr.msk.bf16.gmra.mrb[44].mxu1 %vm6808_vm10, %v6621_v12  ;;  %vm6820_vm0 = vmpackc.low %vm1362_vm13, %vm7940_vm14  ;;  %vm1090_vm12 = vcmp.ge.s32.totalorder %v806_v28, 1  ;;  %v820_v61 = vand.u32 15, %v676_v60  ;;  %v5460_v28 = vld [vmem:[%s7659_s3 + $0xa0] sm:$0xff]   ;;  %v682_v60 = vadd.s32 192, %v5720_v45  ;;  %v8073_v33 = vmov 0  }
 0x149   : > { %2046 = vmatprep.mubr.bf16.mxu1 %v6625_v3  ;;  %v8044_v46 = vsel %vm6820_vm0, 4294967295, %v8043_v46  ;;  %vm6829_vm11 = vmpackc.low %vm7940_vm14, %vm1090_vm12  ;;  %v834_v62 = vand.u32 15, %v678_v42  ;;  %v848_v43 = vand.u32 15, %v680_v26  ;;  %v8055_v42 = vld [vmem:[#allocation20_spill] sm:$0xff] }
 0x14a   : > { %8045 = vst [vmem:[#allocation40_spill] sm:$0xff] %v8044_v46  ;;  %vm1092_vm13 = vcmp.ge.s32.totalorder %v820_v61, 1  ;;  %v5461_v61 = vld [vmem:[%s7659_s3 + $0xa8] sm:$0xff]   ;;  %v862_v26 = vand.u32 15, %v682_v60  ;;  %v8062_v60 = vmov 0  ;;  %v686_v46 = vadd.s32 224, %v5720_v45 }
 0x14b   : > { %5061 = vmatmul.mubr.msk.bf16.gmra.mrb[44].mxu0 %vm6820_vm0, %v6629_v37  ;;  %vm6844_vm12 = vmpackc.low %vm7940_vm14, %vm1092_vm13  ;;  %vm1094_vm13 = vcmp.ge.s32.totalorder %v834_v62, 1 }
 0x14c   : > { %2448 = vmatprep.mubr.bf16.mxu0 %v7765_v53  ;;  %vm6865_vm0 = vmpackc.low %vm7940_vm14, %vm1094_vm13  ;;  %vm1098_vm8 = vcmp.ge.s32.totalorder %v862_v26, 1 }
 0x150   : > { %4280 = vmatmul.mubr.msk.bf16.gmra.mrb[48].mxu1 %vm6829_vm11, %v6652_v8 }
 0x151   : > { %2054 = vmatprep.mubr.bf16.mxu1 %v6643_v57 }
 0x153   : > { %2449 = vmatmul.mubr.bf16.vlgmr.msra.gmra.mrb[48].mxu0 %v7765_v53  ;;  %v8064_v53 = vld [vmem:[#allocation33_spill] sm:$0xff] }
 0x154   : > { %5065 = vmatpush3.bf16.msra.mxu0 %v6472_v21  ;;  %2456 = vmatprep.mubr.bf16.mxu0 %v5861_v15  ;;  %v5454_v15 = vld [vmem:[%s7659_s3 + $0x98] sm:$0xff]  }
 0x155   : > { %5066 = vmatprep.subr.bf16.mxu0 %v5445_v27  ;;  %v8050_v21 = vld [vmem:[#allocation18_spill] sm:$0xff] }
 0x158   : > { %4283 = vmatmul.mubr.msk.bf16.gmra.mrb[52].mxu1 %vm6844_vm12, %v6675_v30  ;;  %5067 = vmatpush3.bf16.msra.mxu0 %v5445_v27  ;;  %v8090_v27 = vld [vmem:[#allocation34_spill] sm:$0xff] }
 0x159   : > { %2062 = vmatprep.mubr.bf16.mxu1 %v6666_v23  ;;  %5068 = vmatprep.subr.bf16.mxu0 %v5448_v2 }
 0x15b   : > { %4352 = vmatmul.mubr.msk.bf16.gmra.mrb[52].mxu0 %vm5868_vm9, %v8050_v21  ;;  %vm1096_vm9 = vcmp.ge.s32.totalorder %v848_v43, 1  ;;  %v684_v21 = vadd.s32 208, %v5720_v45  ;;  %v8060_v43 = vld [vmem:[#allocation29_spill] sm:$0xff] }
 0x15c   : > { %2464 = vmatprep.mubr.bf16.mxu0 %v8054_v24  ;;  %5069 = vmatpush3.bf16.msra.mxu0 %v5448_v2  ;;  %vm6885_vm13 = vmpackc.low %vm7940_vm14, %vm1096_vm9  ;;  %v8059_v2 = vld [vmem:[#allocation22_spill] sm:$0xff] }
 0x15d   : > { %5070 = vmatprep.subr.bf16.mxu0 %v5454_v15  ;;  %vm6905_vm9 = vmpackc.low %vm7940_vm14, %vm1098_vm8  ;;  %v876_v26 = vand.u32 15, %v684_v21  ;;  %v890_v21 = vand.u32 15, %v686_v46 }
 0x15e   : > { %v8063_v60 = vsel %vm6905_vm9, 4294967295, %v8062_v60 }
 0x15f   : > { %vm1100_vm8 = vcmp.ge.s32.totalorder %v876_v26, 1  ;;  %vm1102_vm4 = vcmp.ge.s32.totalorder %v890_v21, 1  ;;  %v8095_v21 = vld [vmem:[#allocation38_spill] sm:$0xff] }
 0x160   : > { %4286 = vmatmul.mubr.msk.bf16.gmra.mrb[56].mxu1 %vm6865_vm0, %v6691_v9  ;;  %5071 = vmatpush3.bf16.msra.mxu0 %v5454_v15  ;;  %v5462_v15 = vld [vmem:[%s7659_s3 + $0xb0] sm:$0xff]   ;;  %vm6925_vm6 = vmpackc.low %vm7940_vm14, %vm1100_vm8 }
 0x161   : > { %2070 = vmatprep.mubr.bf16.mxu1 %v6689_v13  ;;  %5072 = vmatprep.subr.bf16.mxu0 %v5460_v28  ;;  %vm6939_vm8 = vmpackc.low %vm7940_vm14, %vm1102_vm4 }
 0x163   : > { %4355 = vmatmul.mubr.msk.bf16.gmra.mrb[56].mxu0 %vm5984_vm15, %v8055_v42 }
 0x164   : > { %2472 = vmatprep.mubr.bf16.mxu0 %v8059_v2  ;;  %5073 = vmatpush3.bf16.msra.mxu0 %v5460_v28 }
 0x165   : > { %5074 = vmatprep.subr.bf16.mxu0 %v5461_v61 }
 0x168   : > { %4289 = vmatmul.mubr.msk.bf16.gmra.mrb[60].mxu1 %vm6885_vm13, %v6717_v41  ;;  %5075 = vmatpush3.bf16.msra.mxu0 %v5461_v61  ;;  %v6913_v61 = vld [vmem:[%s7659_s3 + $0x200] sm:$0xff]  }
 0x169   : > { %2078 = vmatprep.mubr.bf16.mxu1 %v6705_v55  ;;  %5076 = vmatprep.subr.bf16.mxu0 %v5462_v15 }
 0x16b   : > { %4358 = vmatmul.mubr.msk.bf16.gmra.mrb[60].mxu0 %vm6129_vm7, %v8060_v43 }
 0x16c   : > { %2480 = vmatprep.mubr.bf16.mxu0 %v8064_v53  ;;  %5077 = vmatpush3.bf16.msra.mxu0 %v5462_v15  ;;  %v8065_v15 = vmov 0 }
 0x16d   : > { %5078 = vmatprep.subr.bf16.mxu0 %v5463_v18  ;;  %v8066_v15 = vsel %vm6925_vm6, 4294967295, %v8065_v15 }
 0x170   : > { %4292 = vmatmul.mubr.msk.bf16.gmra.mrb[64].mxu1 %vm6905_vm9, %v6736_v54  ;;  %5079 = vmatpush3.bf16.msra.mxu0 %v5463_v18  ;;  %v688_v18 = vadd.s32 240, %v5720_v45 }
 0x171   : > { %2086 = vmatprep.mubr.bf16.mxu1 %v6731_v35  ;;  %5112 = vmatprep.subr.bf16.mxu0 %v6913_v61 }
 0x172   : > { %v904_v46 = vand.u32 15, %v688_v18  ;;  %v8096_v18 = vld [vmem:[#allocation37_spill] sm:$0xff] }
 0x173   : > { %4361 = vmatmul.mubr.msk.bf16.gmra.mrb[64].mxu0 %vm6272_vm5, %v6297_v11 }
 0x174   : > { %2488 = vmatprep.mubr.bf16.mxu0 %v6311_v1 }
 0x178   : > { %4295 = vmatmul.mubr.msk.bf16.gmra.mrb[68].mxu1 %vm6925_vm6, %v6752_v58  ;;  %vm1104_vm6 = vcmp.ge.s32.totalorder %v904_v46, 1 }
 0x179   : > { %2094 = vmatprep.mubr.bf16.mxu1 %v6750_v16  ;;  %vm6952_vm9 = vmpackc.low %vm7940_vm14, %vm1104_vm6  ;;  %vm8089_vm6 = vnez %v7868_v36  ;;  %v5475_v36 = vld [vmem:[%s7661_s5 + $0x18] sm:$0xff]  }
 0x17b   : > { %4364 = vmatmul.mubr.msk.bf16.gmra.mrb[68].mxu0 %vm6420_vm2, %v6424_v14 }
 0x17c   : > { %2496 = vmatprep.mubr.bf16.mxu0 %v6430_v50 }
 0x180   : > { %4298 = vmatmul.mubr.msk.bf16.gmra.mrb[72].mxu1 %vm6939_vm8, %v6773_v29 }
 0x181   : > { %2102 = vmatprep.mubr.bf16.mxu1 %v6766_v4 }
 0x183   : > { %4367 = vmatmul.mubr.msk.bf16.gmra.mrb[72].mxu0 %vm6566_vm1, %v6532_v44 }
 0x184   : > { %2504 = vmatprep.mubr.bf16.mxu0 %v6536_v52 }
 0x188   : > { %4301 = vmatmul.mubr.msk.bf16.gmra.mrb[76].mxu1 %vm6952_vm9, %v6786_v59 }
 0x189   : > { %3011 = vmatprep.mubr.bf16.mxu1 %v8054_v24 }
 0x18b   : > { %4370 = vmatmul.mubr.msk.bf16.gmra.mrb[76].mxu0 %vm6713_vm3, %v6586_v47 }
 0x18c   : > { %2512 = vmatprep.mubr.bf16.mxu0 %v6581_v63 }
 0x190   : > { %4442 = vmatmul.mubr.msk.bf16.vlgmr.msra.gmra.mrb[80].mxu1 %vm5984_vm15, %v8055_v42  ;;  %vm8071_vm15 = vnez %v8063_v60 }
 0x191   : > { %3019 = vmatprep.mubr.bf16.mxu1 %v8059_v2 }
 0x193   : > { %4373 = vmatmul.mubr.msk.bf16.gmra.mrb[80].mxu0 %vm6808_vm10, %v6621_v12 }
 0x194   : > { %2520 = vmatprep.mubr.bf16.mxu0 %v6625_v3 }
 0x198   : > { %4445 = vmatmul.mubr.msk.bf16.gmra.mrb[84].mxu1 %vm6129_vm7, %v8060_v43  ;;  %vm8076_vm7 = vnez %v8075_v34  ;;  %v8099_v34 = vld [vmem:[#allocation39_spill] sm:$0xff] }
 0x199   : > { %3027 = vmatprep.mubr.bf16.mxu1 %v8064_v53 }
 0x19b   : > { %4376 = vmatmul.mubr.msk.bf16.gmra.mrb[84].mxu0 %vm6829_vm11, %v6652_v8 }
 0x19c   : > { %2528 = vmatprep.mubr.bf16.mxu0 %v6643_v57 }
 0x1a0   : > { %4448 = vmatmul.mubr.msk.bf16.gmra.mrb[88].mxu1 %vm6272_vm5, %v6297_v11  ;;  %vm8072_vm5 = vnez %v8066_v15  ;;  %v5465_v11 = vld [vmem:[%s7659_s3 + $0x208] sm:$0xff]  }
 0x1a1   : > { %3035 = vmatprep.mubr.bf16.mxu1 %v6311_v1  ;;  %v8074_v1 = vld [vmem:[#allocation19_spill] sm:$0xff] }
 0x1a3   : > { %4379 = vmatmul.mubr.msk.bf16.gmra.mrb[88].mxu0 %vm6844_vm12, %v6675_v30 }
 0x1a4   : > { %2536 = vmatprep.mubr.bf16.mxu0 %v6666_v23 }
 0x1a8   : > { %4451 = vmatmul.mubr.msk.bf16.gmra.mrb[92].mxu1 %vm6420_vm2, %v6424_v14  ;;  %v8077_v14 = vld [vmem:[#allocation23_spill] sm:$0xff] }
 0x1a9   : > { %3043 = vmatprep.mubr.bf16.mxu1 %v6430_v50  ;;  %v8078_v50 = vld [vmem:[#allocation21_spill] sm:$0xff] }
 0x1aa   : > { %vm8079_vm2 = vnez %v8078_v50 }
 0x1ab   : > { %4382 = vmatmul.mubr.msk.bf16.gmra.mrb[92].mxu0 %vm6865_vm0, %v6691_v9 }
 0x1ac   : > { %2544 = vmatprep.mubr.bf16.mxu0 %v6689_v13 }
 0x1b0   : > { %4454 = vmatmul.mubr.msk.bf16.gmra.mrb[96].mxu1 %vm6566_vm1, %v6532_v44  ;;  %v5466_v44 = vld [vmem:[%s7659_s3 + $0x210] sm:$0xff]   ;;  %vm8088_vm1 = vnez %v8087_v38 }
 0x1b1   : > { %3051 = vmatprep.mubr.bf16.mxu1 %v6536_v52  ;;  %v5467_v52 = vld [vmem:[%s7659_s3 + $0x218] sm:$0xff]  }
 0x1b3   : > { %4385 = vmatmul.mubr.msk.bf16.gmra.mrb[96].mxu0 %vm6885_vm13, %v6717_v41 }
 0x1b4   : > { %2552 = vmatprep.mubr.bf16.mxu0 %v6705_v55 }
 0x1b8   : > { %4457 = vmatmul.mubr.msk.bf16.gmra.mrb[100].mxu1 %vm6713_vm3, %v6586_v47  ;;  %v8083_v47 = vld [vmem:[#allocation28_spill] sm:$0xff] }
 0x1b9   : > { %3059 = vmatprep.mubr.bf16.mxu1 %v6581_v63  ;;  %v8081_v63 = vld [vmem:[#allocation25_spill] sm:$0xff] }
 0x1ba   : > { %vm8082_vm14 = vnez %v8081_v63 }
 0x1bb   : > { %4388 = vmatmul.mubr.msk.bf16.gmra.mrb[100].mxu0 %vm8071_vm15, %v6736_v54 }
 0x1bc   : > { %2560 = vmatprep.mubr.bf16.mxu0 %v6731_v35 }
 0x1c0   : > { %4460 = vmatmul.mubr.msk.bf16.gmra.mrb[104].mxu1 %vm6808_vm10, %v6621_v12  ;;  %v8084_v12 = vld [vmem:[#allocation27_spill] sm:$0xff]  ;;  %vm8097_vm10 = vnez %v8096_v18 }
 0x1c1   : > { %3067 = vmatprep.mubr.bf16.mxu1 %v6625_v3  ;;  %vm8085_vm4 = vnez %v8084_v12  ;;  %v5468_v3 = vld [vmem:[%s7659_s3 + $0x220] sm:$0xff]  }
 0x1c3   : > { %4391 = vmatmul.mubr.msk.bf16.gmra.mrb[104].mxu0 %vm8072_vm5, %v6752_v58 }
 0x1c4   : > { %2568 = vmatprep.mubr.bf16.mxu0 %v6750_v16 }
 0x1c8   : > { %4463 = vmatmul.mubr.msk.bf16.gmra.mrb[108].mxu1 %vm6829_vm11, %v6652_v8  ;;  %vm8091_vm11 = vnez %v8090_v27 }
 0x1c9   : > { %3075 = vmatprep.mubr.bf16.mxu1 %v6643_v57  ;;  %v4564_v57 = vpop.f32.mrb[16].mxu1 }
 0x1ca   : > { %v4565_v8 = vpop.f32.mrb[17].mxu1 }
 0x1cb   : > { %4394 = vmatmul.mubr.msk.bf16.gmra.mrb[108].mxu0 %vm6939_vm8, %v6773_v29 }
 0x1cc   : > { %5080 = vmatprep.mubr.bf16.mxu0 %v8073_v33 }
 0x1d0   : > { %4466 = vmatmul.mubr.msk.bf16.gmra.mrb[112].mxu1 %vm6844_vm12, %v6675_v30  ;;  %v7069_v30 = vadd.f32 %v4565_v8, %v4564_v57  ;;  %vm8100_vm12 = vnez %v8099_v34 }
 0x1d1   : > { %3083 = vmatprep.mubr.bf16.mxu1 %v6666_v23  ;;  %v5469_v23 = vld [vmem:[%s7659_s3 + $0x228] sm:$0xff]  }
 0x1d3   : > { %5081 = vmatmul.mubr.msk.bf16.vlgmr.msra.gmra.mrb[16].mxu0 %vm8076_vm7, %v8074_v1  ;;  %vm3876_vm7 = vcmask 257024  }
 0x1d4   : > { %5113 = vmatpush3.bf16.msra.mxu0 %v6913_v61  ;;  %5084 = vmatprep.mubr.msk.bf16.mxu0 %vm8079_vm2, %v8077_v14 }
 0x1d5   : > { %5114 = vmatprep.subr.bf16.mxu0 %v5465_v11 }
 0x1d8   : > { %4469 = vmatmul.mubr.msk.bf16.gmra.mrb[116].mxu1 %vm6865_vm0, %v6691_v9  ;;  %5115 = vmatpush3.bf16.msra.mxu0 %v5465_v11  ;;  %vm8098_vm0 = vnez %v7942_v10 }
 0x1d9   : > { %3091 = vmatprep.mubr.bf16.mxu1 %v6689_v13  ;;  %5116 = vmatprep.subr.bf16.mxu0 %v5466_v44  ;;  %v4567_v13 = vpop.f32.mrb[18].mxu1 }
 0x1da   : > { %v4568_v9 = vpop.f32.mrb[19].mxu1 }
 0x1db   : > { %5085 = vmatmul.mubr.msk.bf16.gmra.mrb[20].mxu0 %vm8082_vm14, %v8080_v25  ;;  %v7074_v17 = vadd.f32 %v4568_v9, %v4567_v13 }
 0x1dc   : > { %5088 = vmatprep.mubr.msk.bf16.mxu0 %vm8085_vm4, %v8083_v47  ;;  %5117 = vmatpush3.bf16.msra.mxu0 %v5466_v44 }
 0x1dd   : > { %5118 = vmatprep.subr.bf16.mxu0 %v5467_v52 }
 0x1e0   : > { %4472 = vmatmul.mubr.msk.bf16.gmra.mrb[120].mxu1 %vm6885_vm13, %v6717_v41  ;;  %5119 = vmatpush3.bf16.msra.mxu0 %v5467_v52  ;;  %v4570_v41 = vpop.f32.mrb[20].mxu1  ;;  %vm8101_vm13 = vnez %v7992_v49 }
 0x1e1   : > { %3099 = vmatprep.mubr.bf16.mxu1 %v6705_v55  ;;  %5120 = vmatprep.subr.bf16.mxu0 %v5468_v3  ;;  %v5470_v55 = vld [vmem:[%s7659_s3 + $0x230] sm:$0xff]   ;;  %v4571_v53 = vpop.f32.mrb[21].mxu1 }
 0x1e2   : > { %v7089_v32 = vadd.f32 %v4571_v53, %v4570_v41  ;;  %v4573_v24 = vpop.f32.mrb[22].mxu1 }
 0x1e3   : > { %5089 = vmatmul.mubr.msk.bf16.gmra.mrb[24].mxu0 %vm8088_vm1, %v8086_v40  ;;  %v4574_v42 = vpop.f32.mrb[23].mxu1 }
 0x1e4   : > { %5092 = vmatprep.mubr.msk.bf16.mxu0 %vm8089_vm6, %v6252_v7  ;;  %5121 = vmatpush3.bf16.msra.mxu0 %v5468_v3  ;;  %v7094_v62 = vadd.f32 %v4574_v42, %v4573_v24  ;;  %v4576_v2 = vpop.f32.mrb[24].mxu1 }
 0x1e5   : > { %5122 = vmatprep.subr.bf16.mxu0 %v5469_v23  ;;  %v4577_v43 = vpop.f32.mrb[25].mxu1 }
 0x1e6   : > { %v7103_v28 = vadd.f32 %v4577_v43, %v4576_v2  ;;  %v4579_v60 = vpop.f32.mrb[26].mxu1 }
 0x1e7   : > { %v4580_v61 = vpop.f32.mrb[27].mxu1 }
 0x1e8   : > { %4475 = vmatmul.mubr.msk.bf16.gmra.mrb[124].mxu1 %vm8071_vm15, %v6736_v54  ;;  %5123 = vmatpush3.bf16.msra.mxu0 %v5469_v23  ;;  %v8092_v54 = vld [vmem:[#allocation35_spill] sm:$0xff]  ;;  %v7108_v46 = vadd.f32 %v4580_v61, %v4579_v60  ;;  %vm8103_vm15 = vnez %v8037_v19 }
 0x1e9   : > { %3107 = vmatprep.mubr.bf16.mxu1 %v6731_v35  ;;  %5124 = vmatprep.subr.bf16.mxu0 %v5470_v55  ;;  %v8093_v35 = vld [vmem:[#allocation36_spill] sm:$0xff] }
 0x1ea   : > { %vm8094_vm3 = vnez %v8093_v35 }
 0x1eb   : > { %5093 = vmatmul.mubr.msk.bf16.gmra.mrb[28].mxu0 %vm8091_vm11, %v6299_v51 }
 0x1ec   : > { %5096 = vmatprep.mubr.msk.bf16.mxu0 %vm8094_vm3, %v8092_v54  ;;  %5125 = vmatpush3.bf16.msra.mxu0 %v5470_v55 }
 0x1ed   : > { %5126 = vmatprep.subr.bf16.mxu0 %v5471_v22 }
 0x1f0   : > { %4478 = vmatmul.mubr.msk.bf16.gmra.mrb[128].mxu1 %vm8072_vm5, %v6752_v58  ;;  %5127 = vmatpush3.bf16.msra.mxu0 %v5471_v22  ;;  %v4582_v58 = vpop.f32.mrb[28].mxu1 }
 0x1f1   : > { %3115 = vmatprep.mubr.bf16.mxu1 %v6750_v16  ;;  %v5472_v16 = vld [vmem:[%s7661_s5] sm:$0xff]   ;;  %v4583_v15 = vpop.f32.mrb[29].mxu1 }
 0x1f2   : > { %5160 = vmatprep.subr.bf16.mxu1 %v5472_v16  ;;  %v7120_v11 = vadd.f32 %v4583_v15, %v4582_v58  ;;  %v4585_v1 = vpop.f32.mrb[30].mxu1 }
 0x1f3   : > { %5097 = vmatmul.mubr.msk.bf16.gmra.mrb[32].mxu0 %vm8097_vm10, %v8095_v21  ;;  %5161 = vmatpush3.bf16.msra.mxu1 %v5472_v16  ;;  %v4586_v44 = vpop.f32.mrb[31].mxu1 }
 0x1f4   : > { %5100 = vmatprep.mubr.msk.bf16.mxu0 %vm8098_vm0, %v6479_v5  ;;  %v7128_v26 = vadd.f32 %v4586_v44, %v4585_v1 }
 0x1f8   : > { %4481 = vmatmul.mubr.msk.bf16.gmra.mrb[132].mxu1 %vm6939_vm8, %v6773_v29  ;;  %vm8102_vm8 = vnez %v8000_v6 }
 0x1f9   : > { %3123 = vmatprep.mubr.bf16.mxu1 %v6766_v4  ;;  %v4588_v4 = vpop.f32.mrb[32].mxu1 }
 0x1fa   : > { %v4589_v29 = vpop.f32.mrb[33].mxu1 }
 0x1fb   : > { %5101 = vmatmul.mubr.msk.bf16.gmra.mrb[36].mxu0 %vm8100_vm12, %v6511_v0  ;;  %v7134_v52 = vadd.f32 %v4589_v29, %v4588_v4  ;;  %v4591_v3 = vpop.f32.mrb[34].mxu1 }
 0x1fc   : > { %5104 = vmatprep.mubr.msk.bf16.mxu0 %vm8101_vm13, %v6570_v31  ;;  %v4592_v57 = vpop.f32.mrb[35].mxu1 }
 0x1fd   : > { %v7145_v45 = vadd.f32 %v4592_v57, %v4591_v3 }
 0x1fe   : > { %v4594_v8 = vpop.f32.mrb[36].mxu1 }
 0x1ff   : > { %v4595_v23 = vpop.f32.mrb[37].mxu1 }
 0x200   : > { %4484 = vmatmul.mubr.msk.bf16.gmra.mrb[136].mxu1 %vm6952_vm9, %v6786_v59  ;;  %v5473_v59 = vld [vmem:[%s7661_s5 + $0x8] sm:$0xff]   ;;  %v7148_v13 = vadd.f32 %v4595_v23, %v4594_v8  ;;  %v4597_v9 = vpop.f32.mrb[38].mxu1  ;;  %vm8104_vm9 = vnez %v8040_v20 }
 0x201   : > { %3131 = vmatprep.mubr.bf16.mxu1 %v8073_v33  ;;  %5162 = vmatprep.subr.bf16.mxu1 %v5473_v59  ;;  %v4598_v55 = vpop.f32.mrb[39].mxu1 }
 0x202   : > { %5163 = vmatpush3.bf16.msra.mxu1 %v5473_v59  ;;  %v7156_v41 = vadd.f32 %v4598_v55, %v4597_v9 }
 0x203   : > { %5105 = vmatmul.mubr.msk.bf16.gmra.mrb[40].mxu0 %vm8102_vm8, %v6572_v39 }
 0x204   : > { %5108 = vmatprep.mubr.msk.bf16.mxu0 %vm8103_vm15, %v6603_v56 }
 0x208   : > { %3132 = vmatmul.mubr.bf16.gmra.mrb[140].mxu1 %v8073_v33 }
 0x20b   : > { %5109 = vmatmul.mubr.msk.bf16.gmra.mrb[44].mxu0 %vm8104_vm9, %v6619_v48 }
 0x20c   : > { %5128 = vmatprep.mubr.msk.bf16.mxu0 %vm8079_vm2, %v8077_v14  ;;  %v5474_v14 = vld [vmem:[%s7661_s5 + $0x10] sm:$0xff]  }
 0x20d   : > { %5164 = vmatprep.subr.bf16.mxu1 %v5474_v14 }
 0x20e   : > { %5165 = vmatpush3.bf16.msra.mxu1 %v5474_v14 }
 0x20f   : > { %v4600_v53 = vpop.f32.mrb[40].mxu1  ;;  %5166 = vmatprep.subr.bf16.mxu1 %v5475_v36 }
 0x210   : > { %v4601_v22 = vpop.f32.mrb[41].mxu1 }
 0x211   : > { %v7158_v24 = vadd.f32 %v4601_v22, %v4600_v53  ;;  %v4603_v42 = vpop.f32.mrb[42].mxu1 }
 0x212   : > { %v4604_v2 = vpop.f32.mrb[43].mxu1  ;;  %5167 = vmatpush3.bf16.msra.mxu1 %v5475_v36 }
 0x213   : > { %5129 = vmatmul.mubr.msk.bf16.vlgmr.msra.gmra.mrb[16].mxu0 %vm8082_vm14, %v8080_v25  ;;  %v7169_v50 = vadd.f32 %v4604_v2, %v4603_v42 }
 0x214   : > { %5132 = vmatprep.mubr.msk.bf16.mxu0 %vm8085_vm4, %v8083_v47 }
 0x21b   : > { %v4606_v43 = vpop.f32.mrb[44].mxu1  ;;  %5133 = vmatmul.mubr.msk.bf16.gmra.mrb[20].mxu0 %vm8088_vm1, %v8086_v40 }
 0x21c   : > { %v4607_v60 = vpop.f32.mrb[45].mxu1  ;;  %5136 = vmatprep.mubr.msk.bf16.mxu0 %vm8089_vm6, %v6252_v7 }
 0x21d   : > { %v7171_v61 = vadd.f32 %v4607_v60, %v4606_v43  ;;  %v4609_v16 = vpop.f32.mrb[46].mxu1 }
 0x21e   : > { %v4610_v25 = vpop.f32.mrb[47].mxu1 }
 0x21f   : > { %v7179_v63 = vadd.f32 %v4610_v25, %v4609_v16 }
 0x223   : > { %v4612_v47 = vpop.f32.mrb[48].mxu1  ;;  %5137 = vmatmul.mubr.msk.bf16.gmra.mrb[24].mxu0 %vm8091_vm11, %v6299_v51 }
 0x224   : > { %v4613_v12 = vpop.f32.mrb[49].mxu1  ;;  %5140 = vmatprep.mubr.msk.bf16.mxu0 %vm8094_vm3, %v8092_v54 }
 0x225   : > { %v7181_v58 = vadd.f32 %v4613_v12, %v4612_v47  ;;  %v4615_v15 = vpop.f32.mrb[50].mxu1 }
 0x226   : > { %v4616_v1 = vpop.f32.mrb[51].mxu1  ;;  %v4700_v40 = vpop.f32.mrb[48].mxu0 }
 0x227   : > { %v7192_v7 = vadd.f32 %v4616_v1, %v4615_v15  ;;  %v4701_v38 = vpop.f32.mrb[49].mxu0 }
 0x228   : > { %v4702_v44 = vadd.f32 %v4701_v38, %v4700_v40  ;;  %v4703_v4 = vpop.f32.mrb[50].mxu0 }
 0x229   : > { %v4704_v27 = vpop.f32.mrb[51].mxu0 }
 0x22a   : > { %v7195_v51 = vadd.f32 %v4702_v44, %v7069_v30  ;;  %v4705_v35 = vadd.f32 %v4704_v27, %v4703_v4 }
 0x22b   : > { %v4618_v29 = vpop.f32.mrb[52].mxu1  ;;  %5141 = vmatmul.mubr.msk.bf16.gmra.mrb[28].mxu0 %vm8097_vm10, %v8095_v21 }
 0x22c   : > { %v4619_v3 = vpop.f32.mrb[53].mxu1  ;;  %v7203_v59 = vadd.f32 %v4705_v35, %v7074_v17  ;;  %5144 = vmatprep.mubr.msk.bf16.mxu0 %vm8098_vm0, %v6479_v5  ;;  %v5476_v5 = vld [vmem:[%s7661_s5 + $0x20] sm:$0xff]  }
 0x22d   : > { %v7197_v54 = vadd.f32 %v4619_v3, %v4618_v29  ;;  %v4621_v57 = vpop.f32.mrb[54].mxu1  ;;  %5168 = vmatprep.subr.bf16.mxu1 %v5476_v5 }
 0x22e   : > { %v4622_v8 = vpop.f32.mrb[55].mxu1  ;;  %v4706_v30 = vpop.f32.mrb[52].mxu0  ;;  %5169 = vmatpush3.bf16.msra.mxu1 %v5476_v5 }
 0x22f   : > { %v7208_v23 = vadd.f32 %v4622_v8, %v4621_v57  ;;  %v4707_v9 = vpop.f32.mrb[53].mxu0 }
 0x230   : > { %v4708_v55 = vadd.f32 %v4707_v9, %v4706_v30  ;;  %v4709_v53 = vpop.f32.mrb[54].mxu0 }
 0x231   : > { %v4710_v42 = vpop.f32.mrb[55].mxu0 }
 0x232   : > { %v7211_v2 = vadd.f32 %v4708_v55, %v7089_v32  ;;  %v4711_v18 = vadd.f32 %v4710_v42, %v4709_v53 }
 0x233   : > { %v4624_v22 = vpop.f32.mrb[56].mxu1  ;;  %5145 = vmatmul.mubr.msk.bf16.gmra.mrb[32].mxu0 %vm8100_vm12, %v6511_v0 }
 0x234   : > { %v4625_v21 = vpop.f32.mrb[57].mxu1  ;;  %v7222_v10 = vadd.f32 %v4711_v18, %v7094_v62  ;;  %5148 = vmatprep.mubr.msk.bf16.mxu0 %vm8101_vm13, %v6570_v31 }
 0x235   : > { %v7213_v17 = vadd.f32 %v4625_v21, %v4624_v22  ;;  %v4627_v14 = vpop.f32.mrb[58].mxu1 }
 0x236   : > { %v4628_v43 = vpop.f32.mrb[59].mxu1  ;;  %v4712_v60 = vpop.f32.mrb[56].mxu0 }
 0x237   : > { %v7227_v32 = vadd.f32 %v4628_v43, %v4627_v14  ;;  %v4713_v16 = vpop.f32.mrb[57].mxu0 }
 0x238   : > { %v4714_v34 = vadd.f32 %v4713_v16, %v4712_v60  ;;  %v4715_v0 = vpop.f32.mrb[58].mxu0 }
 0x239   : > { %v4716_v47 = vpop.f32.mrb[59].mxu0 }
 0x23a   : > { %v7230_v12 = vadd.f32 %v4714_v34, %v7103_v28  ;;  %v4717_v15 = vadd.f32 %v4716_v47, %v4715_v0 }
 0x23b   : > { %v4630_v25 = vpop.f32.mrb[60].mxu1  ;;  %5149 = vmatmul.mubr.msk.bf16.gmra.mrb[36].mxu0 %vm8102_vm8, %v6572_v39 }
 0x23c   : > { %v4631_v62 = vpop.f32.mrb[61].mxu1  ;;  %v7238_v31 = vadd.f32 %v4717_v15, %v7108_v46  ;;  %5152 = vmatprep.mubr.msk.bf16.mxu0 %vm8103_vm15, %v6603_v56  ;;  %v5477_v56 = vld [vmem:[%s7661_s5 + $0x28] sm:$0xff]  }
 0x23d   : > { %v7232_v1 = vadd.f32 %v4631_v62, %v4630_v25  ;;  %v4633_v36 = vpop.f32.mrb[62].mxu1  ;;  %5170 = vmatprep.subr.bf16.mxu1 %v5477_v56 }
 0x23e   : > { %v4634_v49 = vpop.f32.mrb[63].mxu1  ;;  %v4718_v28 = vpop.f32.mrb[60].mxu0  ;;  %5171 = vmatpush3.bf16.msra.mxu1 %v5477_v56 }
 0x23f   : > { %v7243_v40 = vadd.f32 %v4634_v49, %v4633_v36  ;;  %v4719_v38 = vpop.f32.mrb[61].mxu0 }
 0x240   : > { %v4720_v44 = vadd.f32 %v4719_v38, %v4718_v28  ;;  %v4721_v4 = vpop.f32.mrb[62].mxu0 }
 0x241   : > { %v4722_v27 = vpop.f32.mrb[63].mxu0 }
 0x242   : > { %v7246_v3 = vadd.f32 %v4720_v44, %v7120_v11  ;;  %v4723_v6 = vadd.f32 %v4722_v27, %v4721_v4  ;;  %v8105_v11 = vld [vmem:[#allocation40_spill] sm:$0xff] }
 0x243   : > { %v4636_v29 = vpop.f32.mrb[64].mxu1  ;;  %5153 = vmatmul.mubr.msk.bf16.gmra.mrb[40].mxu0 %vm8104_vm9, %v6619_v48  ;;  %vm8106_vm5 = vnez %v8105_v11 }
 0x244   : > { %v4637_v39 = vpop.f32.mrb[65].mxu1  ;;  %v7257_v19 = vadd.f32 %v4723_v6, %v7128_v26  ;;  %5156 = vmatprep.mubr.msk.bf16.mxu0 %vm8106_vm5, %v6629_v37 }
 0x245   : > { %v7248_v46 = vadd.f32 %v4637_v39, %v4636_v29  ;;  %v4639_v35 = vpop.f32.mrb[66].mxu1 }
 0x246   : > { %v4640_v57 = vpop.f32.mrb[67].mxu1  ;;  %v4724_v30 = vpop.f32.mrb[64].mxu0 }
 0x247   : > { %v7262_v8 = vadd.f32 %v4640_v57, %v4639_v35  ;;  %v4725_v9 = vpop.f32.mrb[65].mxu0 }
 0x248   : > { %v4726_v20 = vadd.f32 %v4725_v9, %v4724_v30  ;;  %v4727_v48 = vpop.f32.mrb[66].mxu0  ;;  %v5479_v9 = vld [vmem:[%s7661_s5 + $0x38] sm:$0xff]  }
 0x249   : > { %v4728_v53 = vpop.f32.mrb[67].mxu0 }
 0x24a   : > { %v7265_v22 = vadd.f32 %v4726_v20, %v7134_v52  ;;  %v4729_v42 = vadd.f32 %v4728_v53, %v4727_v48 }
 0x24b   : > { %v4642_v55 = vpop.f32.mrb[68].mxu1  ;;  %5157 = vmatmul.mubr.bf16.gmra.mrb[44].mxu0 %v8073_v33 }
 0x24c   : > { %v4643_v26 = vpop.f32.mrb[69].mxu1  ;;  %v7271_v37 = vadd.f32 %v4729_v42, %v7145_v45  ;;  %v5478_v45 = vld [vmem:[%s7661_s5 + $0x30] sm:$0xff]  }
 0x24d   : > { %v7267_v21 = vadd.f32 %v4643_v26, %v4642_v55  ;;  %v4645_v18 = vpop.f32.mrb[70].mxu1  ;;  %5172 = vmatprep.subr.bf16.mxu1 %v5478_v45 }
 0x24e   : > { %v4646_v14 = vpop.f32.mrb[71].mxu1  ;;  %v4730_v43 = vpop.f32.mrb[68].mxu0  ;;  %5173 = vmatpush3.bf16.msra.mxu1 %v5478_v45 }
 0x24f   : > { %v7273_v5 = vadd.f32 %v4646_v14, %v4645_v18  ;;  %v4731_v60 = vpop.f32.mrb[69].mxu0  ;;  %5174 = vmatprep.subr.bf16.mxu1 %v5479_v9 }
 0x250   : > { %v4732_v16 = vadd.f32 %v4731_v60, %v4730_v43  ;;  %v4733_v34 = vpop.f32.mrb[70].mxu0 }
 0x251   : > { %v4734_v52 = vpop.f32.mrb[71].mxu0 }
 0x252   : > { %v7276_v25 = vadd.f32 %v4732_v16, %v7148_v13  ;;  %v4735_v62 = vadd.f32 %v4734_v52, %v4733_v34  ;;  %5175 = vmatpush3.bf16.msra.mxu1 %v5479_v9 }
 0x253   : > { %v4648_v0 = vpop.f32.mrb[72].mxu1 }
 0x254   : > { %v4649_v47 = vpop.f32.mrb[73].mxu1  ;;  %v7284_v36 = vadd.f32 %v4735_v62, %v7156_v41 }
 0x255   : > { %v7278_v15 = vadd.f32 %v4649_v47, %v4648_v0  ;;  %v4651_v33 = vpop.f32.mrb[74].mxu1 }
 0x256   : > { %v4652_v49 = vpop.f32.mrb[75].mxu1  ;;  %v4736_v38 = vpop.f32.mrb[72].mxu0 }
 0x257   : > { %v7286_v28 = vadd.f32 %v4652_v49, %v4651_v33  ;;  %v4737_v13 = vpop.f32.mrb[73].mxu0 }
 0x258   : > { %v4738_v44 = vadd.f32 %v4737_v13, %v4736_v38  ;;  %v4739_v4 = vpop.f32.mrb[74].mxu0 }
 0x259   : > { %v4740_v27 = vpop.f32.mrb[75].mxu0 }
 0x25a   : > { %v7289_v39 = vadd.f32 %v4738_v44, %v7158_v24  ;;  %v4741_v35 = vadd.f32 %v4740_v27, %v4739_v4 }
 0x25b   : > { %v4654_v29 = vpop.f32.mrb[76].mxu1 }
 0x25c   : > { %v4655_v6 = vpop.f32.mrb[77].mxu1  ;;  %v7294_v57 = vadd.f32 %v4741_v35, %v7169_v50 }
 0x25d   : > { %v7291_v56 = vadd.f32 %v4655_v6, %v4654_v29  ;;  %v4657_v41 = vpop.f32.mrb[78].mxu1 }
 0x25e   : > { %v4658_v11 = vpop.f32.mrb[79].mxu1  ;;  %v4742_v20 = vpop.f32.mrb[76].mxu0 }
 0x25f   : > { %v7296_v30 = vadd.f32 %v4658_v11, %v4657_v41  ;;  %v4743_v48 = vpop.f32.mrb[77].mxu0 }
 0x260   : > { %v4744_v24 = vadd.f32 %v4743_v48, %v4742_v20  ;;  %v4745_v55 = vpop.f32.mrb[78].mxu0 }
 0x261   : > { %v4746_v26 = vpop.f32.mrb[79].mxu0 }
 0x262   : > { %v7302_v42 = vadd.f32 %v4744_v24, %v7171_v61  ;;  %v4747_v50 = vadd.f32 %v4746_v26, %v4745_v55 }
 0x263   : > { %v4836_v53 = vpop.f32.mrb[80].mxu1 }
 0x264   : > { %v4837_v18 = vpop.f32.mrb[81].mxu1  ;;  %v7305_v60 = vadd.f32 %v4747_v50, %v7179_v63 }
 0x265   : > { %v4838_v14 = vadd.f32 %v4837_v18, %v4836_v53  ;;  %v4839_v43 = vpop.f32.mrb[82].mxu1 }
 0x266   : > { %v4840_v16 = vpop.f32.mrb[83].mxu1  ;;  %v4748_v52 = vpop.f32.mrb[80].mxu0 }
 0x267   : > { %v4841_v34 = vadd.f32 %v4840_v16, %v4839_v43  ;;  %v7308_v0 = vadd.f32 %v7195_v51, %v4838_v14  ;;  %v4749_v47 = vpop.f32.mrb[81].mxu0 }
 0x268   : > { %v4750_v33 = vadd.f32 %v4749_v47, %v4748_v52  ;;  %v4751_v61 = vpop.f32.mrb[82].mxu0 }
 0x269   : > { %v7311_v62 = vadd.f32 %v7203_v59, %v4841_v34  ;;  %v4752_v49 = vpop.f32.mrb[83].mxu0 }
 0x26a   : > { %v7314_v38 = vadd.f32 %v4750_v33, %v7181_v58  ;;  %v4753_v13 = vadd.f32 %v4752_v49, %v4751_v61 }
 0x26b   : > { %v4842_v45 = vpop.f32.mrb[84].mxu1 }
 0x26c   : > { %v4843_v63 = vpop.f32.mrb[85].mxu1  ;;  %v7317_v29 = vadd.f32 %v4753_v13, %v7192_v7 }
 0x26d   : > { %v4844_v44 = vadd.f32 %v4843_v63, %v4842_v45  ;;  %v4845_v4 = vpop.f32.mrb[86].mxu1 }
 0x26e   : > { %v4846_v51 = vpop.f32.mrb[87].mxu1  ;;  %v4754_v59 = vpop.f32.mrb[84].mxu0 }
 0x26f   : > { %v4847_v27 = vadd.f32 %v4846_v51, %v4845_v4  ;;  %v7320_v6 = vadd.f32 %v7211_v2, %v4844_v44  ;;  %v4755_v35 = vpop.f32.mrb[85].mxu0 }
 0x270   : > { %v4756_v11 = vadd.f32 %v4755_v35, %v4754_v59  ;;  %v4757_v58 = vpop.f32.mrb[86].mxu0 }
 0x271   : > { %v7323_v41 = vadd.f32 %v7222_v10, %v4847_v27  ;;  %v4758_v20 = vpop.f32.mrb[87].mxu0 }
 0x272   : > { %v7326_v48 = vadd.f32 %v4756_v11, %v7197_v54  ;;  %v4759_v24 = vadd.f32 %v4758_v20, %v4757_v58 }
 0x273   : > { %v4848_v9 = vpop.f32.mrb[88].mxu1 }
 0x274   : > { %v4849_v7 = vpop.f32.mrb[89].mxu1  ;;  %v7329_v26 = vadd.f32 %v4759_v24, %v7208_v23 }
 0x275   : > { %v4850_v55 = vadd.f32 %v4849_v7, %v4848_v9  ;;  %v4851_v53 = vpop.f32.mrb[90].mxu1 }
 0x276   : > { %v4852_v2 = vpop.f32.mrb[91].mxu1  ;;  %v4760_v10 = vpop.f32.mrb[88].mxu0 }
 0x277   : > { %v4853_v50 = vadd.f32 %v4852_v2, %v4851_v53  ;;  %v7332_v18 = vadd.f32 %v7230_v12, %v4850_v55  ;;  %v4761_v14 = vpop.f32.mrb[89].mxu0 }
 0x278   : > { %v4762_v16 = vadd.f32 %v4761_v14, %v4760_v10  ;;  %v4763_v54 = vpop.f32.mrb[90].mxu0 }
 0x279   : > { %v7335_v43 = vadd.f32 %v7238_v31, %v4853_v50  ;;  %v4764_v52 = vpop.f32.mrb[91].mxu0 }
 0x27a   : > { %v7338_v47 = vadd.f32 %v4762_v16, %v7213_v17  ;;  %v4765_v33 = vadd.f32 %v4764_v52, %v4763_v54 }
 0x27b   : > { %v4854_v34 = vpop.f32.mrb[92].mxu1 }
 0x27c   : > { %v4855_v23 = vpop.f32.mrb[93].mxu1  ;;  %v7341_v49 = vadd.f32 %v4765_v33, %v7227_v32 }
 0x27d   : > { %v4856_v61 = vadd.f32 %v4855_v23, %v4854_v34  ;;  %v4857_v45 = vpop.f32.mrb[94].mxu1 }
 0x27e   : > { %v4858_v12 = vpop.f32.mrb[95].mxu1  ;;  %v4766_v31 = vpop.f32.mrb[92].mxu0 }
 0x27f   : > { %v4859_v13 = vadd.f32 %v4858_v12, %v4857_v45  ;;  %v7344_v63 = vadd.f32 %v7246_v3, %v4856_v61  ;;  %v4767_v44 = vpop.f32.mrb[93].mxu0 }
 0x280   : > { %v4768_v51 = vadd.f32 %v4767_v44, %v4766_v31  ;;  %v4769_v17 = vpop.f32.mrb[94].mxu0 }
 0x281   : > { %v7347_v4 = vadd.f32 %v7257_v19, %v4859_v13  ;;  %v4770_v59 = vpop.f32.mrb[95].mxu0 }
 0x282   : > { %v7350_v35 = vadd.f32 %v4768_v51, %v7232_v1  ;;  %v4771_v11 = vadd.f32 %v4770_v59, %v4769_v17 }
 0x283   : > { %v4860_v27 = vpop.f32.mrb[96].mxu1 }
 0x284   : > { %v4861_v32 = vpop.f32.mrb[97].mxu1  ;;  %v7353_v20 = vadd.f32 %v4771_v11, %v7243_v40 }
 0x285   : > { %v4862_v58 = vadd.f32 %v4861_v32, %v4860_v27  ;;  %v4863_v9 = vpop.f32.mrb[98].mxu1 }
 0x286   : > { %v4864_v3 = vpop.f32.mrb[99].mxu1  ;;  %v4772_v19 = vpop.f32.mrb[96].mxu0 }
 0x287   : > { %v4865_v24 = vadd.f32 %v4864_v3, %v4863_v9  ;;  %v7356_v7 = vadd.f32 %v7265_v22, %v4862_v58  ;;  %v4773_v55 = vpop.f32.mrb[97].mxu0 }
 0x288   : > { %v4774_v2 = vadd.f32 %v4773_v55, %v4772_v19  ;;  %v4775_v1 = vpop.f32.mrb[98].mxu0 }
 0x289   : > { %v7359_v53 = vadd.f32 %v7271_v37, %v4865_v24  ;;  %v4776_v10 = vpop.f32.mrb[99].mxu0 }
 0x28a   : > { %v7362_v14 = vadd.f32 %v4774_v2, %v7248_v46  ;;  %v4777_v16 = vadd.f32 %v4776_v10, %v4775_v1 }
 0x28b   : > { %v4866_v50 = vpop.f32.mrb[100].mxu1 }
 0x28c   : > { %v4867_v40 = vpop.f32.mrb[101].mxu1  ;;  %v7365_v52 = vadd.f32 %v4777_v16, %v7262_v8 }
 0x28d   : > { %v4868_v54 = vadd.f32 %v4867_v40, %v4866_v50  ;;  %v4869_v34 = vpop.f32.mrb[102].mxu1 }
 0x28e   : > { %v4870_v22 = vpop.f32.mrb[103].mxu1  ;;  %v4778_v37 = vpop.f32.mrb[100].mxu0 }
 0x28f   : > { %v4871_v33 = vadd.f32 %v4870_v22, %v4869_v34  ;;  %v7368_v23 = vadd.f32 %v7276_v25, %v4868_v54  ;;  %v4779_v61 = vpop.f32.mrb[101].mxu0 }
 0x290   : > { %v4780_v12 = vadd.f32 %v4779_v61, %v4778_v37  ;;  %v4781_v46 = vpop.f32.mrb[102].mxu0 }
 0x291   : > { %v7371_v45 = vadd.f32 %v7284_v36, %v4871_v33  ;;  %v4782_v31 = vpop.f32.mrb[103].mxu0 }
 0x292   : > { %v7374_v44 = vadd.f32 %v4780_v12, %v7267_v21  ;;  %v4783_v51 = vadd.f32 %v4782_v31, %v4781_v46 }
 0x293   : > { %v4872_v13 = vpop.f32.mrb[104].mxu1 }
 0x294   : > { %v4873_v8 = vpop.f32.mrb[105].mxu1  ;;  %v7377_v59 = vadd.f32 %v4783_v51, %v7273_v5 }
 0x295   : > { %v4874_v17 = vadd.f32 %v4873_v8, %v4872_v13  ;;  %v4875_v27 = vpop.f32.mrb[106].mxu1 }
 0x296   : > { %v4876_v25 = vpop.f32.mrb[107].mxu1  ;;  %v4784_v36 = vpop.f32.mrb[104].mxu0 }
 0x297   : > { %v4877_v11 = vadd.f32 %v4876_v25, %v4875_v27  ;;  %v7380_v32 = vadd.f32 %v7289_v39, %v4874_v17  ;;  %v4785_v58 = vpop.f32.mrb[105].mxu0 }
 0x298   : > { %v4786_v3 = vadd.f32 %v4785_v58, %v4784_v36  ;;  %v4787_v21 = vpop.f32.mrb[106].mxu0 }
 0x299   : > { %v7383_v9 = vadd.f32 %v7294_v57, %v4877_v11  ;;  %v4788_v19 = vpop.f32.mrb[107].mxu0 }
 0x29a   : > { %v7386_v55 = vadd.f32 %v4786_v3, %v7278_v15  ;;  %v4789_v2 = vadd.f32 %v4788_v19, %v4787_v21 }
 0x29b   : > { %v4878_v24 = vpop.f32.mrb[108].mxu1 }
 0x29c   : > { %v4879_v5 = vpop.f32.mrb[109].mxu1  ;;  %v7389_v10 = vadd.f32 %v4789_v2, %v7286_v28 }
 0x29d   : > { %v4880_v1 = vadd.f32 %v4879_v5, %v4878_v24  ;;  %v4881_v50 = vpop.f32.mrb[110].mxu1 }
 0x29e   : > { %v4882_v39 = vpop.f32.mrb[111].mxu1  ;;  %v4790_v57 = vpop.f32.mrb[108].mxu0 }
 0x29f   : > { %v4883_v16 = vadd.f32 %v4882_v39, %v4881_v50  ;;  %v7392_v40 = vadd.f32 %v7302_v42, %v4880_v1  ;;  %v4791_v54 = vpop.f32.mrb[109].mxu0 }
 0x2a0   : > { %v4792_v22 = vadd.f32 %v4791_v54, %v4790_v57  ;;  %v4793_v15 = vpop.f32.mrb[110].mxu0 }
 0x2a1   : > { %v7395_v34 = vadd.f32 %v7305_v60, %v4883_v16  ;;  %v4794_v37 = vpop.f32.mrb[111].mxu0 }
 0x2a2   : > { %v7398_v61 = vadd.f32 %v4792_v22, %v7291_v56  ;;  %v4795_v12 = vadd.f32 %v4794_v37, %v4793_v15 }
 0x2a3   : > { %v4884_v33 = vpop.f32.mrb[112].mxu1 }
 0x2a4   : > { %v4885_v28 = vpop.f32.mrb[113].mxu1  ;;  %v5302_v31 = vadd.f32 %v4795_v12, %v7296_v30 }
 0x2a5   : > { %v4886_v46 = vadd.f32 %v4885_v28, %v4884_v33  ;;  %v4887_v13 = vpop.f32.mrb[114].mxu1 }
 0x2a6   : > { %v4888_v42 = vpop.f32.mrb[115].mxu1 }
 0x2a7   : > { %v4889_v51 = vadd.f32 %v4888_v42, %v4887_v13  ;;  %v7402_v8 = vadd.f32 %v7314_v38, %v4886_v46 }
 0x2a9   : > { %v7405_v60 = vadd.f32 %v7317_v29, %v4889_v51 }
 0x2ab   : > { %v4890_v17 = vpop.f32.mrb[116].mxu1 }
 0x2ac   : > { %v4891_v27 = vpop.f32.mrb[117].mxu1 }
 0x2ad   : > { %v4892_v25 = vadd.f32 %v4891_v27, %v4890_v17  ;;  %v4893_v11 = vpop.f32.mrb[118].mxu1 }
 0x2ae   : > { %v4894_v56 = vpop.f32.mrb[119].mxu1 }
 0x2af   : > { %v4895_v36 = vadd.f32 %v4894_v56, %v4893_v11  ;;  %v7408_v58 = vadd.f32 %v7326_v48, %v4892_v25 }
 0x2b1   : > { %v7411_v3 = vadd.f32 %v7329_v26, %v4895_v36 }
 0x2b3   : > { %v4896_v30 = vpop.f32.mrb[120].mxu1 }
 0x2b4   : > { %v4897_v21 = vpop.f32.mrb[121].mxu1 }
 0x2b5   : > { %v4898_v24 = vadd.f32 %v4897_v21, %v4896_v30  ;;  %v4899_v38 = vpop.f32.mrb[122].mxu1 }
 0x2b6   : > { %v4900_v19 = vpop.f32.mrb[123].mxu1 }
 0x2b7   : > { %v4901_v2 = vadd.f32 %v4900_v19, %v4899_v38  ;;  %v7414_v29 = vadd.f32 %v7338_v47, %v4898_v24 }
 0x2b9   : > { %v7417_v5 = vadd.f32 %v7341_v49, %v4901_v2 }
 0x2bb   : > { %v4902_v1 = vpop.f32.mrb[124].mxu1 }
 0x2bc   : > { %v4903_v50 = vpop.f32.mrb[125].mxu1 }
 0x2bd   : > { %v4904_v39 = vadd.f32 %v4903_v50, %v4902_v1  ;;  %v4905_v48 = vpop.f32.mrb[126].mxu1 }
 0x2be   : > { %v4906_v16 = vpop.f32.mrb[127].mxu1 }
 0x2bf   : > { %v4907_v57 = vadd.f32 %v4906_v16, %v4905_v48  ;;  %v7420_v26 = vadd.f32 %v7350_v35, %v4904_v39 }
 0x2c1   : > { %v7423_v54 = vadd.f32 %v7353_v20, %v4907_v57 }
 0x2c3   : > { %v4908_v22 = vpop.f32.mrb[128].mxu1 }
 0x2c4   : > { %v4909_v15 = vpop.f32.mrb[129].mxu1 }
 0x2c5   : > { %v4910_v33 = vadd.f32 %v4909_v15, %v4908_v22  ;;  %v4911_v47 = vpop.f32.mrb[130].mxu1 }
 0x2c6   : > { %v4912_v37 = vpop.f32.mrb[131].mxu1 }
 0x2c7   : > { %v4913_v12 = vadd.f32 %v4912_v37, %v4911_v47  ;;  %v7426_v49 = vadd.f32 %v7362_v14, %v4910_v33 }
 0x2c9   : > { %v7429_v28 = vadd.f32 %v7365_v52, %v4913_v12 }
 0x2cb   : > { %v4914_v46 = vpop.f32.mrb[132].mxu1 }
 0x2cc   : > { %v4915_v13 = vpop.f32.mrb[133].mxu1 }
 0x2cd   : > { %v4916_v42 = vadd.f32 %v4915_v13, %v4914_v46  ;;  %v4917_v35 = vpop.f32.mrb[134].mxu1 }
 0x2ce   : > { %v4918_v51 = vpop.f32.mrb[135].mxu1 }
 0x2cf   : > { %v4919_v17 = vadd.f32 %v4918_v51, %v4917_v35  ;;  %v7432_v20 = vadd.f32 %v7374_v44, %v4916_v42 }
 0x2d1   : > { %v7435_v27 = vadd.f32 %v7377_v59, %v4919_v17 }
 0x2d3   : > { %v4920_v25 = vpop.f32.mrb[136].mxu1 }
 0x2d4   : > { %v4921_v11 = vpop.f32.mrb[137].mxu1 }
 0x2d5   : > { %v4922_v56 = vadd.f32 %v4921_v11, %v4920_v25  ;;  %v4923_v14 = vpop.f32.mrb[138].mxu1 }
 0x2d6   : > { %v4924_v36 = vpop.f32.mrb[139].mxu1 }
 0x2d7   : > { %v4925_v30 = vadd.f32 %v4924_v36, %v4923_v14  ;;  %v7438_v52 = vadd.f32 %v7386_v55, %v4922_v56  ;;  %v7451_v55 = vld [vmem:[%s7660_s4] ss:$0 sm:$0xff] }
 0x2d9   : > { %v7441_v21 = vadd.f32 %v7389_v10, %v4925_v30 }
 0x2db   : > { %v4926_v24 = vpop.f32.mrb[140].mxu1 }
 0x2dc   : > { %v4927_v38 = vpop.f32.mrb[141].mxu1 }
 0x2dd   : > { %v4928_v19 = vadd.f32 %v4927_v38, %v4926_v24  ;;  %v4929_v44 = vpop.f32.mrb[142].mxu1 }
 0x2de   : > { %v4930_v2 = vpop.f32.mrb[143].mxu1 }
 0x2df   : > { %v4931_v1 = vadd.f32 %v4930_v2, %v4929_v44  ;;  %v7444_v59 = vadd.f32 %v7398_v61, %v4928_v19 }
 0x2e1   : > { %v7446_v50 = vadd.f32 %v5302_v31, %v4931_v1 }
 0x2e6   : > { %v5130_v39 = vpop.f32.mrb[16].mxu0 }
 0x2e7   : > { %v5214_v10 = vadd.f32 %v7320_v6, %v5130_v39  ;;  %v3174_v48 = vpop.f32.mrb[17].mxu0 }
 0x2e8   : > { %v5217_v16 = vadd.f32 %v7308_v0, %v3174_v48  ;;  %v5131_v57 = vpop.f32.mrb[18].mxu0 }
 0x2e9   : > { %v3342_v22 = vadd.f32 %v5214_v10, %v7451_v55  ;;  %v5220_v15 = vadd.f32 %v7323_v41, %v5131_v57  ;;  %v3177_v61 = vpop.f32.mrb[19].mxu0 }
 0x2ea   : > { %v3340_v31 = vadd.f32 %v5217_v16, %v7451_v55  ;;  %v5223_v33 = vadd.f32 %v7311_v62, %v3177_v61 }
 0x2eb   : > { %v3343_v47 = vadd.f32 %v5220_v15, %v7451_v55  ;;  %v3374_v12 = vmax.f32 %v3342_v22, 0.0 }
 0x2ec   : > { %v3341_v37 = vadd.f32 %v5223_v33, %v7451_v55  ;;  %v3372_v6 = vmax.f32 %v3340_v31, 0.0 }
 0x2ed   : > { %v3375_v46 = vmax.f32 %v3343_v47, 0.0 }
 0x2ee   : > { %v3373_v13 = vmax.f32 %v3341_v37, 0.0  ;;  %v5134_v42 = vpop.f32.mrb[20].mxu0 }
 0x2ef   : > { %v3405_v0 = vpack.c.bf16 %v3375_v46, %v3374_v12  ;;  %v5226_v35 = vadd.f32 %v7344_v63, %v5134_v42  ;;  %v3190_v51 = vpop.f32.mrb[21].mxu0 }
 0x2f0   : > { %v5229_v41 = vadd.f32 %v7332_v18, %v3190_v51  ;;  %v5135_v17 = vpop.f32.mrb[22].mxu0  ;;  %v3404_v25 = vpack.c.bf16 %v3373_v13, %v3372_v6 }
 0x2f1   : > { %v3346_v11 = vadd.f32 %v5226_v35, %v7451_v55  ;;  %v5232_v62 = vadd.f32 %v7347_v4, %v5135_v17  ;;  %v3193_v56 = vpop.f32.mrb[23].mxu0 }
 0x2f2   : > { %v3344_v14 = vadd.f32 %v5229_v41, %v7451_v55  ;;  %v5235_v36 = vadd.f32 %v7335_v43, %v3193_v56  ;;  %5176 = vmatprep.mubr.bf16.mxu1 %v3404_v25 }
 0x2f3   : > { %v3347_v30 = vadd.f32 %v5232_v62, %v7451_v55  ;;  %5177 = vmatmul.mubr.bf16.vlgmr.msra.gmra.mrb[144].mxu1 %v3405_v0  ;;  %v3378_v24 = vmax.f32 %v3346_v11, 0.0 }
 0x2f4   : > { %v3345_v63 = vadd.f32 %v5235_v36, %v7451_v55  ;;  %v3376_v18 = vmax.f32 %v3344_v14, 0.0 }
 0x2f5   : > { %v3379_v38 = vmax.f32 %v3347_v30, 0.0 }
 0x2f6   : > { %v3377_v19 = vmax.f32 %v3345_v63, 0.0  ;;  %v5138_v44 = vpop.f32.mrb[24].mxu0 }
 0x2f7   : > { %v5238_v2 = vadd.f32 %v7368_v23, %v5138_v44  ;;  %v3206_v1 = vpop.f32.mrb[25].mxu0  ;;  %v3407_v4 = vpack.c.bf16 %v3379_v38, %v3378_v24 }
 0x2f8   : > { %v5241_v39 = vadd.f32 %v7356_v7, %v3206_v1  ;;  %v5139_v10 = vpop.f32.mrb[26].mxu0  ;;  %v3406_v48 = vpack.c.bf16 %v3377_v19, %v3376_v18 }
 0x2f9   : > { %v3350_v43 = vadd.f32 %v5238_v2, %v7451_v55  ;;  %v5244_v16 = vadd.f32 %v7371_v45, %v5139_v10  ;;  %v3209_v57 = vpop.f32.mrb[27].mxu0 }
 0x2fa   : > { %v3348_v22 = vadd.f32 %v5241_v39, %v7451_v55  ;;  %v5247_v15 = vadd.f32 %v7359_v53, %v3209_v57  ;;  %5180 = vmatprep.mubr.bf16.mxu1 %v3406_v48 }
 0x2fb   : > { %v3351_v61 = vadd.f32 %v5244_v16, %v7451_v55  ;;  %5181 = vmatmul.mubr.bf16.gmra.mrb[148].mxu1 %v3407_v4  ;;  %v3382_v31 = vmax.f32 %v3350_v43, 0.0 }
 0x2fc   : > { %v3349_v23 = vadd.f32 %v5247_v15, %v7451_v55  ;;  %v3380_v7 = vmax.f32 %v3348_v22, 0.0 }
 0x2fd   : > { %v3383_v33 = vmax.f32 %v3351_v61, 0.0 }
 0x2fe   : > { %v3381_v47 = vmax.f32 %v3349_v23, 0.0  ;;  %v5142_v37 = vpop.f32.mrb[28].mxu0 }
 0x2ff   : > { %v5250_v12 = vadd.f32 %v7392_v40, %v5142_v37  ;;  %v3222_v46 = vpop.f32.mrb[29].mxu0  ;;  %v3409_v45 = vpack.c.bf16 %v3383_v33, %v3382_v31 }
 0x300   : > { %v5253_v6 = vadd.f32 %v7380_v32, %v3222_v46  ;;  %v5143_v13 = vpop.f32.mrb[30].mxu0  ;;  %v3408_v42 = vpack.c.bf16 %v3381_v47, %v3380_v7 }
 0x301   : > { %v3354_v53 = vadd.f32 %v5250_v12, %v7451_v55  ;;  %v5256_v0 = vadd.f32 %v7395_v34, %v5143_v13  ;;  %v3225_v35 = vpop.f32.mrb[31].mxu0 }
 0x302   : > { %v3352_v51 = vadd.f32 %v5253_v6, %v7451_v55  ;;  %v5259_v41 = vadd.f32 %v7383_v9, %v3225_v35  ;;  %5184 = vmatprep.mubr.bf16.mxu1 %v3408_v42 }
 0x303   : > { %v3355_v17 = vadd.f32 %v5256_v0, %v7451_v55  ;;  %5185 = vmatmul.mubr.bf16.gmra.mrb[152].mxu1 %v3409_v45  ;;  %v3386_v25 = vmax.f32 %v3354_v53, 0.0 }
 0x304   : > { %v3353_v40 = vadd.f32 %v5259_v41, %v7451_v55  ;;  %v3384_v32 = vmax.f32 %v3352_v51, 0.0 }
 0x305   : > { %v3387_v11 = vmax.f32 %v3355_v17, 0.0 }
 0x306   : > { %v3385_v62 = vmax.f32 %v3353_v40, 0.0  ;;  %v5146_v56 = vpop.f32.mrb[32].mxu0 }
 0x307   : > { %v5262_v14 = vadd.f32 %v7408_v58, %v5146_v56  ;;  %v3238_v36 = vpop.f32.mrb[33].mxu0  ;;  %v3411_v34 = vpack.c.bf16 %v3387_v11, %v3386_v25 }
 0x308   : > { %v5265_v30 = vadd.f32 %v7402_v8, %v3238_v36  ;;  %v5147_v63 = vpop.f32.mrb[34].mxu0  ;;  %v3410_v24 = vpack.c.bf16 %v3385_v62, %v3384_v32 }
 0x309   : > { %v3358_v9 = vadd.f32 %v5262_v14, %v7451_v55  ;;  %v5268_v38 = vadd.f32 %v7411_v3, %v5147_v63  ;;  %v3241_v18 = vpop.f32.mrb[35].mxu0 }
 0x30a   : > { %v3356_v19 = vadd.f32 %v5265_v30, %v7451_v55  ;;  %v5271_v44 = vadd.f32 %v7405_v60, %v3241_v18  ;;  %5188 = vmatprep.mubr.bf16.mxu1 %v3410_v24 }
 0x30b   : > { %v3359_v2 = vadd.f32 %v5268_v38, %v7451_v55  ;;  %5189 = vmatmul.mubr.bf16.gmra.mrb[156].mxu1 %v3411_v34  ;;  %v3390_v1 = vmax.f32 %v3358_v9, 0.0 }
 0x30c   : > { %v3357_v58 = vadd.f32 %v5271_v44, %v7451_v55  ;;  %v3388_v8 = vmax.f32 %v3356_v19, 0.0 }
 0x30d   : > { %v3391_v4 = vmax.f32 %v3359_v2, 0.0 }
 0x30e   : > { %v3389_v39 = vmax.f32 %v3357_v58, 0.0  ;;  %v5150_v10 = vpop.f32.mrb[36].mxu0 }
 0x30f   : > { %v5274_v48 = vadd.f32 %v7420_v26, %v5150_v10  ;;  %v3254_v43 = vpop.f32.mrb[37].mxu0  ;;  %v3413_v3 = vpack.c.bf16 %v3391_v4, %v3390_v1  ;;  %v5497_v4 = vld [vmem:[%s5575_s12] sm:$0xff]  }
 0x310   : > { %v5277_v16 = vadd.f32 %v7414_v29, %v3254_v43  ;;  %v5151_v57 = vpop.f32.mrb[38].mxu0  ;;  %v3412_v22 = vpack.c.bf16 %v3389_v39, %v3388_v8  ;;  %v3652_v8 = vunpack.c.l.bf16 %v5497_v4 }
 0x311   : > { %v3362_v60 = vadd.f32 %v5274_v48, %v7451_v55  ;;  %v5280_v15 = vadd.f32 %v7423_v54, %v5151_v57  ;;  %v3257_v61 = vpop.f32.mrb[39].mxu0 }
 0x312   : > { %v3360_v23 = vadd.f32 %v5277_v16, %v7451_v55  ;;  %v5283_v31 = vadd.f32 %v7417_v5, %v3257_v61  ;;  %5192 = vmatprep.mubr.bf16.mxu1 %v3412_v22 }
 0x313   : > { %v3363_v33 = vadd.f32 %v5280_v15, %v7451_v55  ;;  %5193 = vmatmul.mubr.bf16.gmra.mrb[160].mxu1 %v3413_v3  ;;  %v3394_v7 = vmax.f32 %v3362_v60, 0.0  ;;  %v3653_v3 = vunpack.c.h.bf16 %v5497_v4 }
 0x314   : > { %v3361_v26 = vadd.f32 %v5283_v31, %v7451_v55  ;;  %v3392_v29 = vmax.f32 %v3360_v23, 0.0 }
 0x315   : > { %v3395_v47 = vmax.f32 %v3363_v33, 0.0 }
 0x316   : > { %v3393_v37 = vmax.f32 %v3361_v26, 0.0  ;;  %v5154_v12 = vpop.f32.mrb[40].mxu0 }
 0x317   : > { %v5286_v46 = vadd.f32 %v7432_v20, %v5154_v12  ;;  %v3270_v45 = vpop.f32.mrb[41].mxu0  ;;  %v3415_v54 = vpack.c.bf16 %v3395_v47, %v3394_v7  ;;  %v5498_v47 = vld [vmem:[%s5575_s12 + $0x18] sm:$0xff]  }
 0x318   : > { %v5289_v6 = vadd.f32 %v7426_v49, %v3270_v45  ;;  %v5155_v13 = vpop.f32.mrb[42].mxu0  ;;  %v3414_v42 = vpack.c.bf16 %v3393_v37, %v3392_v29  ;;  %v3658_v29 = vunpack.c.l.bf16 %v5498_v47  ;;  %v5499_v45 = vld [vmem:[%s5575_s12 + $0x10] sm:$0xff]  }
 0x319   : > { %v3366_v5 = vadd.f32 %v5286_v46, %v7451_v55  ;;  %v5292_v53 = vadd.f32 %v7435_v27, %v5155_v13  ;;  %v3273_v0 = vpop.f32.mrb[43].mxu0 }
 0x31a   : > { %v3364_v35 = vadd.f32 %v5289_v6, %v7451_v55  ;;  %v5295_v51 = vadd.f32 %v7429_v28, %v3273_v0  ;;  %5196 = vmatprep.mubr.bf16.mxu1 %v3414_v42 }
 0x31b   : > { %v3367_v41 = vadd.f32 %v5292_v53, %v7451_v55  ;;  %5197 = vmatmul.mubr.bf16.gmra.mrb[164].mxu1 %v3415_v54  ;;  %v3398_v17 = vmax.f32 %v3366_v5, 0.0  ;;  %v3656_v54 = vunpack.c.l.bf16 %v5499_v45  ;;  %v3659_v5 = vunpack.c.h.bf16 %v5498_v47 }
 0x31c   : > { %v3365_v20 = vadd.f32 %v5295_v51, %v7451_v55  ;;  %v3396_v49 = vmax.f32 %v3364_v35, 0.0  ;;  %v3657_v51 = vunpack.c.h.bf16 %v5499_v45 }
 0x31d   : > { %v3399_v40 = vmax.f32 %v3367_v41, 0.0 }
 0x31e   : > { %v3397_v25 = vmax.f32 %v3365_v20, 0.0  ;;  %v5158_v11 = vpop.f32.mrb[44].mxu0 }
 0x31f   : > { %v5298_v32 = vadd.f32 %v7444_v59, %v5158_v11  ;;  %v3286_v62 = vpop.f32.mrb[45].mxu0  ;;  %v3417_v27 = vpack.c.bf16 %v3399_v40, %v3398_v17 }
 0x320   : > { %v5301_v56 = vadd.f32 %v7438_v52, %v3286_v62  ;;  %v5159_v14 = vpop.f32.mrb[46].mxu0  ;;  %v3416_v36 = vpack.c.bf16 %v3397_v25, %v3396_v49 }
 0x321   : > { %v3370_v28 = vadd.f32 %v5298_v32, %v7451_v55  ;;  %v5304_v34 = vadd.f32 %v7446_v50, %v5159_v14  ;;  %v3289_v30 = vpop.f32.mrb[47].mxu0  ;;  %v7520_v50 = vld [vmem:[%s7662_s6] ss:$0 sm:$0xff]  ;;  %v8107_v14 = vld [vmem:[#allocation9_spill] sm:$0xff] }
 0x322   : > { %v3368_v63 = vadd.f32 %v5301_v56, %v7451_v55  ;;  %v5307_v24 = vadd.f32 %v7441_v21, %v3289_v30  ;;  %5200 = vmatprep.mubr.bf16.mxu1 %v3416_v36  ;;  %v5496_v21 = vld [vmem:[%s5575_s12 + $0x8] sm:$0xff]   ;;  %v3662_v36 = vunpack.c.l.bf16 %v8107_v14 }
 0x323   : > { %v3371_v59 = vadd.f32 %v5304_v34, %v7451_v55  ;;  %5201 = vmatmul.mubr.bf16.gmra.mrb[168].mxu1 %v3417_v27  ;;  %v3402_v52 = vmax.f32 %v3370_v28, 0.0  ;;  %v3654_v58 = vunpack.c.l.bf16 %v5496_v21  ;;  %v3655_v10 = vunpack.c.h.bf16 %v5496_v21 }
 0x324   : > { %v3369_v9 = vadd.f32 %v5307_v24, %v7451_v55  ;;  %v3400_v18 = vmax.f32 %v3368_v63, 0.0  ;;  %v8108_v63 = vld [vmem:[#allocation6_spill] sm:$0xff] }
 0x325   : > { %v3403_v38 = vmax.f32 %v3371_v59, 0.0  ;;  %v3660_v24 = vunpack.c.l.bf16 %v8108_v63 }
 0x326   : > { %v3401_v19 = vmax.f32 %v3369_v9, 0.0 }
 0x327   : > { %v3419_v44 = vpack.c.bf16 %v3403_v38, %v3402_v52  ;;  %v3663_v38 = vunpack.c.h.bf16 %v8107_v14 }
 0x328   : > { %v3418_v2 = vpack.c.bf16 %v3401_v19, %v3400_v18 }
 0x32a   : > { %5204 = vmatprep.mubr.bf16.mxu1 %v3418_v2  ;;  %v3661_v2 = vunpack.c.h.bf16 %v8108_v63 }
 0x32b   : > { %5205 = vmatmul.mubr.bf16.gmra.mrb[172].mxu1 %v3419_v44 }
 0x3c6   : > { %v5178_v1 = vpop.f32.mrb[144].mxu1 }
 0x3c7   : > { %v3534_v55 = vadd.f32 %v5178_v1, %v7520_v50  ;;  %v3525_v39 = vpop.f32.mrb[145].mxu1 }
 0x3c8   : > { %v3526_v48 = vadd.f32 %v7520_v50, %v3525_v39  ;;  %v5179_v43 = vpop.f32.mrb[146].mxu1 }
 0x3c9   : > { %v3686_v16 = vadd.f32 %v3654_v58, %v3534_v55  ;;  %v3537_v57 = vadd.f32 %v5179_v43, %v7520_v50  ;;  %v3528_v22 = vpop.f32.mrb[147].mxu1 }
 0x3ca   : > { %v3684_v60 = vadd.f32 %v3652_v8, %v3526_v48  ;;  %v3529_v15 = vadd.f32 %v7520_v50, %v3528_v22 }
 0x3cb   : > { %v3718_v61 = vmax.f32 %v3686_v16, 0.0  ;;  %v3687_v23 = vadd.f32 %v3655_v10, %v3537_v57  ;;  %v8109_v16 = vld [vmem:[#allocation13_spill] sm:$0xff] }
 0x3cc   : > { %v3716_v31 = vmax.f32 %v3684_v60, 0.0  ;;  %v3685_v33 = vadd.f32 %v3653_v3, %v3529_v15  ;;  %v3666_v57 = vunpack.c.l.bf16 %v8109_v16 }
 0x3cd   : > { %v4224_v26 = vpack.c.bf16 %v3718_v61, %v3718_v61  ;;  %v3719_v7 = vmax.f32 %v3687_v23, 0.0  ;;  %v8110_v61 = vld [vmem:[#allocation10_spill] sm:$0xff] }
 0x3ce   : > { %v4222_v37 = vpack.c.bf16 %v3716_v31, %v3716_v31  ;;  %v3717_v12 = vmax.f32 %v3685_v33, 0.0  ;;  %v5182_v46 = vpop.f32.mrb[148].mxu1  ;;  %v3664_v23 = vunpack.c.l.bf16 %v8110_v61 }
 0x3cf   : > { %3879 = vst.msk [vmem:[%s7533_s29 + $0x8] sm:$0xf] %vm3876_vm7, %v4224_v26  ;;  %v4225_v6 = vpack.c.bf16 %v3719_v7, %v3719_v7  ;;  %v3550_v13 = vadd.f32 %v5182_v46, %v7520_v50  ;;  %v3541_v42 = vpop.f32.mrb[149].mxu1  ;;  %v3667_v7 = vunpack.c.h.bf16 %v8109_v16 }
 0x3d0   : > { %3877 = vst.msk [vmem:[%s7533_s29] sm:$0xf] %vm3876_vm7, %v4222_v37  ;;  %v4223_v53 = vpack.c.bf16 %v3717_v12, %v3717_v12  ;;  %v3542_v0 = vadd.f32 %v7520_v50, %v3541_v42  ;;  %v5183_v35 = vpop.f32.mrb[150].mxu1  ;;  %v3665_v12 = vunpack.c.h.bf16 %v8110_v61 }
 0x3d1   : > { %3880 = vst.msk [vmem:[%s7533_s29 + $0xc] sm:$0xf] %vm3876_vm7, %v4225_v6  ;;  %v3690_v41 = vadd.f32 %v3658_v29, %v3550_v13  ;;  %v3553_v20 = vadd.f32 %v5183_v35, %v7520_v50  ;;  %v3544_v17 = vpop.f32.mrb[151].mxu1 }
 0x3d2   : > { %3878 = vst.msk [vmem:[%s7533_s29 + $0x4] sm:$0xf] %vm3876_vm7, %v4223_v53  ;;  %v3688_v40 = vadd.f32 %v3656_v54, %v3542_v0  ;;  %v3545_v49 = vadd.f32 %v7520_v50, %v3544_v17 }
 0x3d3   : > { %v3722_v25 = vmax.f32 %v3690_v41, 0.0  ;;  %v3691_v11 = vadd.f32 %v3659_v5, %v3553_v20  ;;  %v8111_v41 = vld [vmem:[#allocation4_spill] sm:$0xff] }
 0x3d4   : > { %v3720_v32 = vmax.f32 %v3688_v40, 0.0  ;;  %v3689_v62 = vadd.f32 %v3657_v51, %v3545_v49  ;;  %v3670_v20 = vunpack.c.l.bf16 %v8111_v41 }
 0x3d5   : > { %v4228_v27 = vpack.c.bf16 %v3722_v25, %v3722_v25  ;;  %v3723_v56 = vmax.f32 %v3691_v11, 0.0  ;;  %v8112_v25 = vld [vmem:[#allocation3_spill] sm:$0xff] }
 0x3d6   : > { %v4226_v28 = vpack.c.bf16 %v3720_v32, %v3720_v32  ;;  %v3721_v34 = vmax.f32 %v3689_v62, 0.0  ;;  %v5186_v30 = vpop.f32.mrb[152].mxu1  ;;  %v3668_v11 = vunpack.c.l.bf16 %v8112_v25 }
 0x3d7   : > { %3883 = vst.msk [vmem:[%s7533_s29 + $0x18] sm:$0xf] %vm3876_vm7, %v4228_v27  ;;  %v4229_v59 = vpack.c.bf16 %v3723_v56, %v3723_v56  ;;  %v3566_v9 = vadd.f32 %v5186_v30, %v7520_v50  ;;  %v3557_v52 = vpop.f32.mrb[153].mxu1  ;;  %v3671_v56 = vunpack.c.h.bf16 %v8111_v41 }
 0x3d8   : > { %3881 = vst.msk [vmem:[%s7533_s29 + $0x10] sm:$0xf] %vm3876_vm7, %v4226_v28  ;;  %v4227_v18 = vpack.c.bf16 %v3721_v34, %v3721_v34  ;;  %v3558_v19 = vadd.f32 %v7520_v50, %v3557_v52  ;;  %v5187_v44 = vpop.f32.mrb[154].mxu1  ;;  %v3669_v34 = vunpack.c.h.bf16 %v8112_v25 }
 0x3d9   : > { %3884 = vst.msk [vmem:[%s7533_s29 + $0x1c] sm:$0xf] %vm3876_vm7, %v4229_v59  ;;  %v3694_v21 = vadd.f32 %v3662_v36, %v3566_v9  ;;  %v3569_v58 = vadd.f32 %v5187_v44, %v7520_v50  ;;  %v3560_v1 = vpop.f32.mrb[155].mxu1 }
 0x3da   : > { %3882 = vst.msk [vmem:[%s7533_s29 + $0x14] sm:$0xf] %vm3876_vm7, %v4227_v18  ;;  %v3692_v4 = vadd.f32 %v3660_v24, %v3558_v19  ;;  %v3561_v8 = vadd.f32 %v7520_v50, %v3560_v1 }
 0x3db   : > { %v3726_v55 = vmax.f32 %v3694_v21, 0.0  ;;  %v3695_v39 = vadd.f32 %v3663_v38, %v3569_v58  ;;  %v8113_v21 = vld [vmem:[#allocation7_spill] sm:$0xff] }
 0x3dc   : > { %v3724_v10 = vmax.f32 %v3692_v4, 0.0  ;;  %v3693_v48 = vadd.f32 %v3661_v2, %v3561_v8  ;;  %v3674_v58 = vunpack.c.l.bf16 %v8113_v21 }
 0x3dd   : > { %v4232_v43 = vpack.c.bf16 %v3726_v55, %v3726_v55  ;;  %v3727_v3 = vmax.f32 %v3695_v39, 0.0  ;;  %v8114_v55 = vld [vmem:[#allocation5_spill] sm:$0xff] }
 0x3de   : > { %v4230_v22 = vpack.c.bf16 %v3724_v10, %v3724_v10  ;;  %v3725_v60 = vmax.f32 %v3693_v48, 0.0  ;;  %v5190_v15 = vpop.f32.mrb[156].mxu1  ;;  %v3672_v39 = vunpack.c.l.bf16 %v8114_v55 }
 0x3df   : > { %3887 = vst.msk [vmem:[%s7533_s29 + $0x28] sm:$0xf] %vm3876_vm7, %v4232_v43  ;;  %v4233_v31 = vpack.c.bf16 %v3727_v3, %v3727_v3  ;;  %v3582_v33 = vadd.f32 %v5190_v15, %v7520_v50  ;;  %v3573_v26 = vpop.f32.mrb[157].mxu1  ;;  %v3675_v3 = vunpack.c.h.bf16 %v8113_v21 }
 0x3e0   : > { %3885 = vst.msk [vmem:[%s7533_s29 + $0x20] sm:$0xf] %vm3876_vm7, %v4230_v22  ;;  %v4231_v47 = vpack.c.bf16 %v3725_v60, %v3725_v60  ;;  %v3574_v29 = vadd.f32 %v7520_v50, %v3573_v26  ;;  %v5191_v37 = vpop.f32.mrb[158].mxu1  ;;  %v3673_v60 = vunpack.c.h.bf16 %v8114_v55 }
 0x3e1   : > { %3888 = vst.msk [vmem:[%s7533_s29 + $0x2c] sm:$0xf] %vm3876_vm7, %v4233_v31  ;;  %v3698_v46 = vadd.f32 %v3666_v57, %v3582_v33  ;;  %v3585_v45 = vadd.f32 %v5191_v37, %v7520_v50  ;;  %v3576_v54 = vpop.f32.mrb[159].mxu1 }
 0x3e2   : > { %3886 = vst.msk [vmem:[%s7533_s29 + $0x24] sm:$0xf] %vm3876_vm7, %v4231_v47  ;;  %v3696_v6 = vadd.f32 %v3664_v23, %v3574_v29  ;;  %v3577_v13 = vadd.f32 %v7520_v50, %v3576_v54 }
 0x3e3   : > { %v3730_v42 = vmax.f32 %v3698_v46, 0.0  ;;  %v3699_v5 = vadd.f32 %v3667_v7, %v3585_v45  ;;  %v8115_v46 = vld [vmem:[#allocation11_spill] sm:$0xff] }
 0x3e4   : > { %v3728_v53 = vmax.f32 %v3696_v6, 0.0  ;;  %v3697_v0 = vadd.f32 %v3665_v12, %v3577_v13  ;;  %v3678_v45 = vunpack.c.l.bf16 %v8115_v46 }
 0x3e5   : > { %v4236_v35 = vpack.c.bf16 %v3730_v42, %v3730_v42  ;;  %v3731_v51 = vmax.f32 %v3699_v5, 0.0  ;;  %v8116_v42 = vld [vmem:[#allocation8_spill] sm:$0xff] }
 0x3e6   : > { %v4234_v17 = vpack.c.bf16 %v3728_v53, %v3728_v53  ;;  %v3729_v40 = vmax.f32 %v3697_v0, 0.0  ;;  %v5194_v49 = vpop.f32.mrb[160].mxu1  ;;  %v3676_v5 = vunpack.c.l.bf16 %v8116_v42 }
 0x3e7   : > { %3891 = vst.msk [vmem:[%s7533_s29 + $0x38] sm:$0xf] %vm3876_vm7, %v4236_v35  ;;  %v4237_v32 = vpack.c.bf16 %v3731_v51, %v3731_v51  ;;  %v3598_v62 = vadd.f32 %v5194_v49, %v7520_v50  ;;  %v3589_v27 = vpop.f32.mrb[161].mxu1  ;;  %v3679_v51 = vunpack.c.h.bf16 %v8115_v46 }
 0x3e8   : > { %3889 = vst.msk [vmem:[%s7533_s29 + $0x30] sm:$0xf] %vm3876_vm7, %v4234_v17  ;;  %v4235_v14 = vpack.c.bf16 %v3729_v40, %v3729_v40  ;;  %v3590_v36 = vadd.f32 %v7520_v50, %v3589_v27  ;;  %v5195_v28 = vpop.f32.mrb[162].mxu1  ;;  %v3677_v40 = vunpack.c.h.bf16 %v8116_v42 }
 0x3e9   : > { %3892 = vst.msk [vmem:[%s7533_s29 + $0x3c] sm:$0xf] %vm3876_vm7, %v4237_v32  ;;  %v3702_v30 = vadd.f32 %v3670_v20, %v3598_v62  ;;  %v3601_v63 = vadd.f32 %v5195_v28, %v7520_v50  ;;  %v3592_v24 = vpop.f32.mrb[163].mxu1 }
 0x3ea   : > { %3890 = vst.msk [vmem:[%s7533_s29 + $0x34] sm:$0xf] %vm3876_vm7, %v4235_v14  ;;  %v3700_v59 = vadd.f32 %v3668_v11, %v3590_v36  ;;  %v3593_v9 = vadd.f32 %v7520_v50, %v3592_v24 }
 0x3eb   : > { %v3734_v52 = vmax.f32 %v3702_v30, 0.0  ;;  %v3703_v38 = vadd.f32 %v3671_v56, %v3601_v63  ;;  %v8117_v30 = vld [vmem:[#allocation14_spill] sm:$0xff] }
 0x3ec   : > { %v3732_v18 = vmax.f32 %v3700_v59, 0.0  ;;  %v3701_v19 = vadd.f32 %v3669_v34, %v3593_v9  ;;  %v3682_v63 = vunpack.c.l.bf16 %v8117_v30 }
 0x3ed   : > { %v4240_v44 = vpack.c.bf16 %v3734_v52, %v3734_v52  ;;  %v3735_v2 = vmax.f32 %v3703_v38, 0.0  ;;  %v8118_v52 = vld [vmem:[#allocation12_spill] sm:$0xff] }
 0x3ee   : > { %v4238_v1 = vpack.c.bf16 %v3732_v18, %v3732_v18  ;;  %v3733_v4 = vmax.f32 %v3701_v19, 0.0  ;;  %v5198_v8 = vpop.f32.mrb[164].mxu1  ;;  %v3680_v38 = vunpack.c.l.bf16 %v8118_v52 }
 0x3ef   : > { %3895 = vst.msk [vmem:[%s7533_s29 + $0x48] sm:$0xf] %vm3876_vm7, %v4240_v44  ;;  %v4241_v10 = vpack.c.bf16 %v3735_v2, %v3735_v2  ;;  %v3614_v48 = vadd.f32 %v5198_v8, %v7520_v50  ;;  %v3605_v43 = vpop.f32.mrb[165].mxu1  ;;  %v3683_v2 = vunpack.c.h.bf16 %v8117_v30 }
 0x3f0   : > { %3893 = vst.msk [vmem:[%s7533_s29 + $0x40] sm:$0xf] %vm3876_vm7, %v4238_v1  ;;  %v4239_v16 = vpack.c.bf16 %v3733_v4, %v3733_v4  ;;  %v3606_v57 = vadd.f32 %v7520_v50, %v3605_v43  ;;  %v5199_v22 = vpop.f32.mrb[166].mxu1  ;;  %v3681_v4 = vunpack.c.h.bf16 %v8118_v52 }
 0x3f1   : > { %3896 = vst.msk [vmem:[%s7533_s29 + $0x4c] sm:$0xf] %vm3876_vm7, %v4241_v10  ;;  %v3706_v15 = vadd.f32 %v3674_v58, %v3614_v48  ;;  %v3617_v61 = vadd.f32 %v5199_v22, %v7520_v50  ;;  %v3608_v23 = vpop.f32.mrb[167].mxu1 }
 0x3f2   : > { %3894 = vst.msk [vmem:[%s7533_s29 + $0x44] sm:$0xf] %vm3876_vm7, %v4239_v16  ;;  %v3704_v31 = vadd.f32 %v3672_v39, %v3606_v57  ;;  %v3609_v33 = vadd.f32 %v7520_v50, %v3608_v23 }
 0x3f3   : > { %v3738_v26 = vmax.f32 %v3706_v15, 0.0  ;;  %v3707_v7 = vadd.f32 %v3675_v3, %v3617_v61 }
 0x3f4   : > { %v3736_v47 = vmax.f32 %v3704_v31, 0.0  ;;  %v3705_v29 = vadd.f32 %v3673_v60, %v3609_v33 }
 0x3f5   : > { %v4244_v37 = vpack.c.bf16 %v3738_v26, %v3738_v26  ;;  %v3739_v12 = vmax.f32 %v3707_v7, 0.0 }
 0x3f6   : > { %v4242_v54 = vpack.c.bf16 %v3736_v47, %v3736_v47  ;;  %v3737_v6 = vmax.f32 %v3705_v29, 0.0  ;;  %v5202_v13 = vpop.f32.mrb[168].mxu1 }
 0x3f7   : > { %3899 = vst.msk [vmem:[%s7533_s29 + $0x58] sm:$0xf] %vm3876_vm7, %v4244_v37  ;;  %v4245_v53 = vpack.c.bf16 %v3739_v12, %v3739_v12  ;;  %v3630_v0 = vadd.f32 %v5202_v13, %v7520_v50  ;;  %v3621_v35 = vpop.f32.mrb[169].mxu1 }
 0x3f8   : > { %3897 = vst.msk [vmem:[%s7533_s29 + $0x50] sm:$0xf] %vm3876_vm7, %v4242_v54  ;;  %v4243_v41 = vpack.c.bf16 %v3737_v6, %v3737_v6  ;;  %v3622_v20 = vadd.f32 %v7520_v50, %v3621_v35  ;;  %v5203_v17 = vpop.f32.mrb[170].mxu1 }
 0x3f9   : > { %3900 = vst.msk [vmem:[%s7533_s29 + $0x5c] sm:$0xf] %vm3876_vm7, %v4245_v53  ;;  %v3710_v49 = vadd.f32 %v3678_v45, %v3630_v0  ;;  %v3633_v25 = vadd.f32 %v5203_v17, %v7520_v50  ;;  %v3624_v11 = vpop.f32.mrb[171].mxu1 }
 0x3fa   : > { %3898 = vst.msk [vmem:[%s7533_s29 + $0x54] sm:$0xf] %vm3876_vm7, %v4243_v41  ;;  %v3708_v32 = vadd.f32 %v3676_v5, %v3622_v20  ;;  %v3625_v62 = vadd.f32 %v7520_v50, %v3624_v11 }
 0x3fb   : > { %v3742_v27 = vmax.f32 %v3710_v49, 0.0  ;;  %v3711_v56 = vadd.f32 %v3679_v51, %v3633_v25 }
 0x3fc   : > { %v3740_v14 = vmax.f32 %v3708_v32, 0.0  ;;  %v3709_v36 = vadd.f32 %v3677_v40, %v3625_v62 }
 0x3fd   : > { %v4248_v28 = vpack.c.bf16 %v3742_v27, %v3742_v27  ;;  %v3743_v34 = vmax.f32 %v3711_v56, 0.0 }
 0x3fe   : > { %v4246_v24 = vpack.c.bf16 %v3740_v14, %v3740_v14  ;;  %v3741_v59 = vmax.f32 %v3709_v36, 0.0  ;;  %v5206_v9 = vpop.f32.mrb[172].mxu1 }
 0x3ff   : > { %3903 = vst.msk [vmem:[%s7533_s29 + $0x68] sm:$0xf] %vm3876_vm7, %v4248_v28  ;;  %v4249_v18 = vpack.c.bf16 %v3743_v34, %v3743_v34  ;;  %v3646_v19 = vadd.f32 %v5206_v9, %v7520_v50  ;;  %v3637_v44 = vpop.f32.mrb[173].mxu1 }
 0x400   : > { %3901 = vst.msk [vmem:[%s7533_s29 + $0x60] sm:$0xf] %vm3876_vm7, %v4246_v24  ;;  %v4247_v21 = vpack.c.bf16 %v3741_v59, %v3741_v59  ;;  %v3638_v58 = vadd.f32 %v7520_v50, %v3637_v44  ;;  %v5207_v1 = vpop.f32.mrb[174].mxu1 }
 0x401   : > { %3904 = vst.msk [vmem:[%s7533_s29 + $0x6c] sm:$0xf] %vm3876_vm7, %v4249_v18  ;;  %v3714_v8 = vadd.f32 %v3682_v63, %v3646_v19  ;;  %v3649_v55 = vadd.f32 %v5207_v1, %v7520_v50  ;;  %v3640_v39 = vpop.f32.mrb[175].mxu1 }
 0x402   : > { %3902 = vst.msk [vmem:[%s7533_s29 + $0x64] sm:$0xf] %vm3876_vm7, %v4247_v21  ;;  %v3712_v10 = vadd.f32 %v3680_v38, %v3638_v58  ;;  %v3641_v48 = vadd.f32 %v7520_v50, %v3640_v39 }
 0x403   : > { %v3746_v43 = vmax.f32 %v3714_v8, 0.0  ;;  %v3715_v3 = vadd.f32 %v3683_v2, %v3649_v55 }
 0x404   : > { %v3744_v16 = vmax.f32 %v3712_v10, 0.0  ;;  %v3713_v57 = vadd.f32 %v3681_v4, %v3641_v48 }
 0x405   : > { %v4252_v22 = vpack.c.bf16 %v3746_v43, %v3746_v43  ;;  %v3747_v60 = vmax.f32 %v3715_v3, 0.0 }
 0x406   : > { %v4250_v15 = vpack.c.bf16 %v3744_v16, %v3744_v16  ;;  %v3745_v61 = vmax.f32 %v3713_v57, 0.0 }
 0x407   : > { %3907 = vst.msk [vmem:[%s7533_s29 + $0x78] sm:$0xf] %vm3876_vm7, %v4252_v22  ;;  %v4253_v23 = vpack.c.bf16 %v3747_v60, %v3747_v60 }
 0x408   : > { %3905 = vst.msk [vmem:[%s7533_s29 + $0x70] sm:$0xf] %vm3876_vm7, %v4250_v15  ;;  %v4251_v31 = vpack.c.bf16 %v3745_v61, %v3745_v61 }
 0x409   : > { %3908 = vst.msk [vmem:[%s7533_s29 + $0x7c] sm:$0xf] %vm3876_vm7, %v4253_v23 }
 0x40a   : > { %3906 = vst.msk [vmem:[%s7533_s29 + $0x74] sm:$0xf] %vm3876_vm7, %v4251_v31 }
 0x40b PF: > { %s17_s24 = sadd.s32 1, %s5506_s24  }
 0x40c   : > { %p14_p4 = scmp.ge.s32.totalorder %s17_s24, 4  }
 0x40e   :  { %16 = sbr.rel (!%p14_p4) target bundleno = 1 (0x1), region = 80 }

// kernel: mul.56
= control target key start
LH: loop header
LB: loop body
LE: loop exit
PB: predicated region body
PF: predicated region fallthrough
CT: control target
= control target key end

     0   :  { %s34_s0 = inlined_call_operand.vmem [shape: f32[8,32,1,1], index: 0, kind: input, shape index: {}]   ;;  %s35_s1 = inlined_call_operand.vmem [shape: f32[8,32,1,1], index: 1, kind: input, shape index: {}]   ;;  %s36_s2 = inlined_call_operand.vmem [shape: f32[8,32,1,1], index: 2, kind: output, shape index: {}]  }
   0x1   :  { %v3_v0 = vld [vmem:[%s34_s0] sm:$0xff] }
   0x2   :  { %v4_v1 = vld [vmem:[%s35_s1] sm:$0xff] }
   0x3   :  { %v7_v2 = vmul.f32 %v4_v1, %v3_v0 }
   0x5   :  { %9 = vst [vmem:[%s36_s2] sm:$0xff] %v7_v2 }

// kernel: bottleneck_mtl_forward.1
= control target key start
LH: loop header
LB: loop body
LE: loop exit
PB: predicated region body
PF: predicated region fallthrough
CT: control target
= control target key end

     0   :  { %s5550_s24 = smov 0   ;;  %s7656_s0 = inlined_call_operand.vmem [shape: bf16[2,256,32], index: 0, kind: input, shape index: {}, may-alias: {0,7}]   ;;  %s7657_s1 = inlined_call_operand.vmem [shape: bf16[32,128], index: 1, kind: input, shape index: {}]   ;;  %s7658_s2 = inlined_call_operand.vmem [shape: f32[1,128], index: 2, kind: input, shape index: {}]   ;;  %s7659_s3 = inlined_call_operand.vmem [shape: bf16[3,384,128], index: 3, kind: input, shape index: {}]   ;;  %s7660_s4 = inlined_call_operand.vmem [shape: f32[1,128], index: 4, kind: input, shape index: {}]   ;;  %s7661_s5 = inlined_call_operand.vmem [shape: bf16[128,32], index: 5, kind: input, shape index: {}]   ;;  %s7662_s6 = inlined_call_operand.vmem [shape: f32[1,32], index: 6, kind: input, shape index: {}]   ;;  %s7663_s7 = inlined_call_operand.vmem [shape: bf16[2,256,32], index: 7, kind: output, shape index: {}, may-alias: {0,7}]  }
   0x1 LB: > { %s3964_s25 = sadd.s32 4294967295, %s5506_s24   ;;  %p3968_p0 = scmp.ge.s32.totalorder %s5506_s24, 1  ;;  %s5506_s24 = sphi %s5550_s24, %s17_s24  }
   0x2   : > { %p237_p1 = scmp.lt.s32.totalorder %s5506_s24, 3 }
   0x4   : > { %p238_p2 = pnand %p3968_p0, %p237_p1 }
   0x6   : > { %241 = sbr.rel (%p238_p2) target bundleno = 1035 (0x40b), region = 48 }
   0xd   : > { %v5382_v0 = vld [vmem:[%s7657_s1] sm:$0xff]   ;;  %p269_p3 = scmp.lt.s32.totalorder %s3964_s25, 1  ;;  %v5383_v1 = vld [vmem:[%s7657_s1 + $0x8] sm:$0xff]   ;;  %vm415_vm0 = vcmask 261120   ;;  %v5405_v17 = vld [vmem:[%s7659_s3 + $0x110] sm:$0xff]   ;;  %v657_v44 = vlaneseq  ;;  %vm7721_vm1 = vcmask 1040384  }
   0xe   : > { %4980 = vmatprep.subr.bf16.mxu0 %v5382_v0  ;;  %5208 = vmatprep.subr.bf16.mxu1 %v5382_v0  ;;  %v5400_v2 = vld [vmem:[%s7659_s3 + $0x100] sm:$0xff]   ;;  %v5402_v12 = vld [vmem:[%s7659_s3 + $0x108] sm:$0xff]   ;;  %v5406_v19 = vld [vmem:[%s7659_s3 + $0xd0] sm:$0xff]   ;;  %vm7726_vm2 = vcmask 1046528   ;;  %vm7737_vm8 = vmmov 1  }
   0xf   : > { %s8120_s25 = smov (!%p269_p3, %s3964_s25), 1  ;;  %4981 = vmatpush3.bf16.msra.mxu0 %v5382_v0  ;;  %5210 = vmatpush3.bf16.msra.mxu1 %v5382_v0  ;;  %v5401_v9 = vld [vmem:[%s7659_s3 + $0xc0] sm:$0xff]   ;;  %v5403_v14 = vld [vmem:[%s7659_s3 + $0xc8] sm:$0xff]   ;;  %v5408_v21 = vld [vmem:[%s7659_s3 + $0x118] sm:$0xff]   ;;  %v5720_v45 = vshrl.u32 %v657_v44, 7 }
  0x10   : > { %4982 = vmatprep.subr.bf16.mxu0 %v5383_v1  ;;  %s4220_s30 = sshll.u32 %s8120_s25, 7  ;;  %5209 = vmatprep.subr.bf16.mxu1 %v5383_v1  ;;  %v5404_v15 = vld [vmem:[%s7659_s3 + $0x140] sm:$0xff]   ;;  %v5407_v18 = vld [vmem:[%s7659_s3 + $0x148] sm:$0xff]   ;;  %v5410_v23 = vld [vmem:[%s7659_s3 + $0x150] sm:$0xff]  }
  0x11   : > { %s5575_s12 = scalar_lea.vmem %s7656_s0, %s4220_s30  ;;  %v5409_v25 = vld [vmem:[%s7659_s3 + $0xd8] sm:$0xff]   ;;  %v5411_v27 = vld [vmem:[%s7659_s3 + $0x120] sm:$0xff]   ;;  %v5414_v32 = vld [vmem:[%s7659_s3 + $0x128] sm:$0xff]   ;;  %v659_v46 = vadd.s32 8, %v5720_v45  ;;  %v5724_v47 = vadd.s32 24, %v5720_v45  ;;  %v5727_v48 = vadd.s32 16, %v5720_v45  ;;  %s7533_s29 = scalar_lea.vmem %s7663_s7, %s4220_s30 }
  0x12   : > { %v280_v3 = vld [vmem:[%s5575_s12] sm:$0xff]   ;;  %v282_v4 = vld [vmem:[%s5575_s12 + $0x8] sm:$0xff]   ;;  %v284_v5 = vld [vmem:[%s5575_s12 + $0x10] sm:$0xff]   ;;  %v5730_v49 = vadd.s32 40, %v5720_v45  ;;  %v5733_v50 = vadd.s32 56, %v5720_v45  ;;  %v5736_v51 = vadd.s32 32, %v5720_v45 }
  0x13   : > { %4983 = vmatpush3.bf16.msra.mxu0 %v5383_v1  ;;  %5211 = vmatpush3.bf16.msra.mxu1 %v5383_v1  ;;  %v5581_v6 = vld [vmem:[%s5575_s12 + $0x40] sm:$0xff]   ;;  %v5584_v7 = vld [vmem:[%s5575_s12 + $0x48] sm:$0xff]   ;;  %v5588_v8 = vld [vmem:[%s5575_s12 + $0x50] sm:$0xff]   ;;  %v694_v52 = vand.u32 15, %v5720_v45  ;;  %v701_v53 = vand.u32 15, %v659_v46  ;;  %v715_v54 = vand.u32 15, %v5724_v47 }
  0x14   : > { %7776 = vst [vmem:[#allocation3_spill] sm:$0xff] %v5581_v6  ;;  %7777 = vst [vmem:[#allocation4_spill] sm:$0xff] %v5584_v7  ;;  %4548 = vmatprep.subr.bf16.mxu1 %v5400_v2  ;;  %4984 = vmatprep.mubr.msk.bf16.mxu0 %vm415_vm0, %v280_v3  ;;  %v286_v10 = vld [vmem:[%s5575_s12 + $0x18] sm:$0xff]   ;;  %v5596_v11 = vld [vmem:[%s5575_s12 + $0x20] sm:$0xff]   ;;  %v5741_v55 = vadd.s32 72, %v5720_v45  ;;  %v708_v56 = vand.u32 15, %v5727_v48 }
  0x15   : > { %7778 = vst [vmem:[#allocation5_spill] sm:$0xff] %v5588_v8  ;;  %7779 = vst [vmem:[#allocation6_spill] sm:$0xff] %v5596_v11  ;;  %5000 = vmatprep.mubr.msk.bf16.mxu1 %vm415_vm0, %v5581_v6  ;;  %v5605_v13 = vld [vmem:[%s5575_s12 + $0x58] sm:$0xff]   ;;  %v5618_v16 = vld [vmem:[%s5575_s12 + $0x60] sm:$0xff]   ;;  %5016 = vmatprep.subr.bf16.mxu0 %v5404_v15  ;;  %v729_v57 = vand.u32 15, %v5730_v49  ;;  %v5747_v59 = vadd.s32 88, %v5720_v45 }
  0x16   : > { %4985 = vmatmul.mubr.msk.bf16.vlgmr.msra.gmra.mrb[0].mxu0 %vm415_vm0, %v282_v4  ;;  %7780 = vst [vmem:[#allocation7_spill] sm:$0xff] %v5605_v13  ;;  %5001 = vmatmul.mubr.msk.bf16.vlgmr.msra.gmra.mrb[0].mxu1 %vm415_vm0, %v5584_v7  ;;  %7781 = vst [vmem:[#allocation8_spill] sm:$0xff] %v5618_v16  ;;  %v5630_v20 = vld [vmem:[%s5575_s12 + $0x28] sm:$0xff]   ;;  %v5637_v22 = vld [vmem:[%s5575_s12 + $0x30] sm:$0xff]   ;;  %v5751_v61 = vadd.s32 48, %v5720_v45  ;;  %v5754_v62 = vadd.s32 104, %v5720_v45 }
  0x17   : > { %4988 = vmatprep.mubr.msk.bf16.mxu0 %vm415_vm0, %v284_v5  ;;  %5004 = vmatprep.mubr.msk.bf16.mxu1 %vm415_vm0, %v5588_v8  ;;  %7782 = vst [vmem:[#allocation9_spill] sm:$0xff] %v5630_v20  ;;  %7783 = vst [vmem:[#allocation10_spill] sm:$0xff] %v5637_v22  ;;  %v5645_v24 = vld [vmem:[%s5575_s12 + $0x68] sm:$0xff]   ;;  %v5653_v26 = vld [vmem:[%s5575_s12 + $0x70] sm:$0xff]   ;;  %v5757_v63 = vadd.s32 120, %v5720_v45  ;;  %v5760_v0 = vadd.s32 136, %v5720_v45 }
  0x18   : > { %4549 = vmatpush3.bf16.msra.mxu1 %v5401_v9  ;;  %5017 = vmatpush3.bf16.msra.mxu0 %v5404_v15  ;;  %7784 = vst [vmem:[#allocation11_spill] sm:$0xff] %v5645_v24  ;;  %7785 = vst [vmem:[#allocation12_spill] sm:$0xff] %v5653_v26  ;;  %v5413_v28 = vld [vmem:[%s7659_s3 + $0x158] sm:$0xff]   ;;  %v5412_v29 = vld [vmem:[%s7659_s3 + $0xe0] sm:$0xff]   ;;  %v5763_v1 = vadd.s32 64, %v5720_v45  ;;  %v5766_v2 = vadd.s32 152, %v5720_v45 }
  0x19   : > { %4550 = vmatprep.subr.bf16.mxu1 %v5402_v12  ;;  %5018 = vmatprep.subr.bf16.mxu0 %v5407_v18  ;;  %v5667_v30 = vld [vmem:[%s5575_s12 + $0x38] sm:$0xff]   ;;  %v5415_v33 = vld [vmem:[%s7659_s3 + $0xe8] sm:$0xff]   ;;  %v5416_v34 = vld [vmem:[%s7659_s3 + $0x160] sm:$0xff]   ;;  %v5769_v3 = vadd.s32 168, %v5720_v45  ;;  %v5773_v5 = vadd.s32 80, %v5720_v45  ;;  %v5776_v9 = vadd.s32 184, %v5720_v45 }
  0x1a   : > { %7786 = vst [vmem:[#allocation13_spill] sm:$0xff] %v5667_v30  ;;  %v5674_v31 = vld [vmem:[%s5575_s12 + $0x78] sm:$0xff]   ;;  %v5417_v35 = vld [vmem:[%s7659_s3 + $0x130] sm:$0xff]   ;;  %v5419_v37 = vld [vmem:[%s7659_s3 + $0x168] sm:$0xff]   ;;  %vm5786_vm3 = vcmp.ge.s32.totalorder %v694_v52, 1  ;;  %vm5800_vm4 = vcmp.le.s32.totalorder %v701_v53, 14 }
  0x1b   : > { %7787 = vst [vmem:[#allocation14_spill] sm:$0xff] %v5674_v31  ;;  %v5418_v36 = vld [vmem:[%s7659_s3 + $0xf0] sm:$0xff]   ;;  %v5420_v38 = vld [vmem:[%s7659_s3 + $0x138] sm:$0xff]   ;;  %v5424_v42 = vld [vmem:[%s7659_s3 + $0x40] sm:$0xff]   ;;  %v5830_v46 = vadd.s32 248, %v5720_v45  ;;  %vm5834_vm5 = vcmp.le.s32.totalorder %v715_v54, 14 }
  0x1c   : > { %4551 = vmatpush3.bf16.msra.mxu1 %v5403_v14  ;;  %5019 = vmatpush3.bf16.msra.mxu0 %v5407_v18  ;;  %v5421_v39 = vld [vmem:[%s7659_s3 + $0xf8] sm:$0xff]   ;;  %v5422_v40 = vld [vmem:[%s7659_s3 + $0x170] sm:$0xff]   ;;  %v5440_v43 = vld [vmem:[%s7659_s3 + $0x1c0] sm:$0xff]   ;;  %v5795_v18 = vadd.s32 216, %v5720_v45  ;;  %vm5842_vm6 = vcmp.ge.s32.totalorder %v708_v56, 1  ;;  %vm5855_vm7 = vcmp.le.s32.totalorder %v729_v57, 14 }
  0x1d   : > { %4552 = vmatprep.subr.bf16.mxu1 %v5405_v17  ;;  %5020 = vmatprep.subr.bf16.mxu0 %v5410_v23  ;;  %v5423_v41 = vld [vmem:[%s7659_s3 + $0x178] sm:$0xff]   ;;  %v5784_v12 = vld [vmem:[%s7658_s2] ss:$0 sm:$0xff]  ;;  %v5792_v17 = vadd.s32 96, %v5720_v45  ;;  %vm5868_vm9 = vmpackc.low %vm7737_vm8, %vm5786_vm3  ;;  %v7799_v49 = vmov 0  ;;  %v7822_v7 = vmov 0 }
  0x1e   : > { %4989 = vmatmul.mubr.msk.bf16.gmra.mrb[4].mxu0 %vm415_vm0, %v286_v10  ;;  %5005 = vmatmul.mubr.msk.bf16.gmra.mrb[4].mxu1 %vm415_vm0, %v5605_v13  ;;  %v5779_v10 = vadd.s32 200, %v5720_v45  ;;  %v7800_v49 = vsel %vm5868_vm9, 4294967295, %v7799_v49  ;;  %vm5884_vm10 = vmpackc.low %vm5800_vm4, %vm7737_vm8 }
  0x1f   : > { %4992 = vmatprep.mubr.msk.bf16.mxu0 %vm415_vm0, %v5596_v11  ;;  %5008 = vmatprep.mubr.msk.bf16.mxu1 %vm415_vm0, %v5618_v16  ;;  %7801 = vst [vmem:[#allocation16_spill] sm:$0xff] %v7800_v49  ;;  %vm5961_vm13 = vmpackc.low %vm5834_vm5, %vm7737_vm8 }
  0x20   : > { %4553 = vmatpush3.bf16.msra.mxu1 %v5406_v19  ;;  %5021 = vmatpush3.bf16.msra.mxu0 %v5410_v23  ;;  %v5798_v19 = vadd.s32 232, %v5720_v45  ;;  %vm5984_vm15 = vmpackc.low %vm7737_vm8, %vm5842_vm6 }
  0x21   : > { %4554 = vmatprep.subr.bf16.mxu1 %v5408_v21  ;;  %5022 = vmatprep.subr.bf16.mxu0 %v5413_v28  ;;  %v7823_v7 = vsel %vm5984_vm15, 4294967295, %v7822_v7 }
  0x22   : > { %7824 = vst [vmem:[#allocation24_spill] sm:$0xff] %v7823_v7 }
  0x24   : > { %4555 = vmatpush3.bf16.msra.mxu1 %v5409_v25  ;;  %5023 = vmatpush3.bf16.msra.mxu0 %v5413_v28  ;;  %v5808_v28 = vadd.s32 112, %v5720_v45 }
  0x25   : > { %4556 = vmatprep.subr.bf16.mxu1 %v5411_v27  ;;  %5024 = vmatprep.subr.bf16.mxu0 %v5416_v34 }
  0x26   : > { %4993 = vmatmul.mubr.msk.bf16.gmra.mrb[8].mxu0 %vm415_vm0, %v5630_v20  ;;  %5009 = vmatmul.mubr.msk.bf16.gmra.mrb[8].mxu1 %vm415_vm0, %v5645_v24 }
  0x27   : > { %4996 = vmatprep.mubr.msk.bf16.mxu0 %vm415_vm0, %v5637_v22  ;;  %5012 = vmatprep.mubr.msk.bf16.mxu1 %vm415_vm0, %v5653_v26  ;;  %v7802_v26 = vmov 0 }
  0x28   : > { %4557 = vmatpush3.bf16.msra.mxu1 %v5412_v29  ;;  %5025 = vmatpush3.bf16.msra.mxu0 %v5416_v34  ;;  %v7803_v26 = vsel %vm5884_vm10, 4294967295, %v7802_v26 }
  0x29   : > { %4558 = vmatprep.subr.bf16.mxu1 %v5414_v32  ;;  %5026 = vmatprep.subr.bf16.mxu0 %v5419_v37  ;;  %7804 = vst [vmem:[#allocation17_spill] sm:$0xff] %v7803_v26 }
  0x2c   : > { %4559 = vmatpush3.bf16.msra.mxu1 %v5415_v33  ;;  %5027 = vmatpush3.bf16.msra.mxu0 %v5419_v37 }
  0x2d   : > { %4560 = vmatprep.subr.bf16.mxu1 %v5417_v35  ;;  %5028 = vmatprep.subr.bf16.mxu0 %v5422_v40 }
  0x2e   : > { %4997 = vmatmul.mubr.msk.bf16.gmra.mrb[12].mxu0 %vm415_vm0, %v5667_v30  ;;  %5013 = vmatmul.mubr.msk.bf16.gmra.mrb[12].mxu1 %vm415_vm0, %v5674_v31  ;;  %v5443_v31 = vld [vmem:[%s7659_s3 + $0x1c8] sm:$0xff]   ;;  %vm5998_vm0 = vmpackc.low %vm5855_vm7, %vm7737_vm8 }
  0x30   : > { %4561 = vmatpush3.bf16.msra.mxu1 %v5418_v36  ;;  %5029 = vmatpush3.bf16.msra.mxu0 %v5422_v40 }
  0x31   : > { %4562 = vmatprep.subr.bf16.mxu1 %v5420_v38  ;;  %5030 = vmatprep.subr.bf16.mxu0 %v5423_v41 }
  0x34   : > { %4563 = vmatpush3.bf16.msra.mxu1 %v5421_v39  ;;  %5031 = vmatpush3.bf16.msra.mxu0 %v5423_v41 }
  0x35   : > { %4684 = vmatprep.subr.bf16.mxu0 %v5424_v42  ;;  %4820 = vmatprep.subr.bf16.mxu1 %v5440_v43 }
  0xe9   : > { %v4986_v29 = vpop.f32.mrb[0].mxu0  ;;  %v5002_v43 = vpop.f32.mrb[0].mxu1 }
  0xea   : > { %v507_v36 = vadd.f32 %v4986_v29, %v5784_v12  ;;  %v498_v37 = vpop.f32.mrb[1].mxu0  ;;  %v571_v38 = vadd.f32 %v5002_v43, %v5784_v12  ;;  %v562_v35 = vpop.f32.mrb[1].mxu1 }
  0xeb   : > { %v499_v41 = vadd.f32 %v5784_v12, %v498_v37  ;;  %v4987_v42 = vpop.f32.mrb[2].mxu0  ;;  %v563_v34 = vadd.f32 %v5784_v12, %v562_v35  ;;  %v5827_v33 = vpop.f32.mrb[2].mxu1  ;;  %v7825_v35 = vmov 0 }
  0xec   : > { %v627_v52 = vmax.f32 %v507_v36, 0.0  ;;  %v510_v53 = vadd.f32 %v4987_v42, %v5784_v12  ;;  %v501_v29 = vpop.f32.mrb[3].mxu0  ;;  %v5838_v43 = vmax.f32 %v571_v38, 0.0  ;;  %v7826_v35 = vsel %vm5998_vm0, 4294967295, %v7825_v35 }
  0xed   : > { %v625_v40 = vmax.f32 %v499_v41, 0.0  ;;  %v502_v37 = vadd.f32 %v5784_v12, %v501_v29  ;;  %v565_v41 = vpop.f32.mrb[3].mxu1  ;;  %v5846_v27 = vmax.f32 %v563_v34, 0.0  ;;  %7827 = vst [vmem:[#allocation25_spill] sm:$0xff] %v7826_v35 }
  0xee   : > { %v1142_v47 = vrot.slane %v627_v52, 7  ;;  %v1367_v36 = vrot.slane %v627_v52, 1  ;;  %v5832_v44 = vmax.f32 %v510_v53, 0.0 }
  0xef   : > { %v1139_v39 = vrot.slane %v625_v40, 7  ;;  %v1364_v29 = vrot.slane %v625_v40, 1  ;;  %v626_v32 = vmax.f32 %v502_v37, 0.0 }
  0xf0   : > { %v7666_v53 = vrot.slane %v5832_v44, 7  ;;  %v1369_v54 = vrot.slane %v5832_v44, 1  ;;  %v5851_v25 = vpack.c.bf16 %v5832_v44, %v627_v52 }
  0xf1   : > { %v1234_v56 = vsel %vm7721_vm1, 0.0, %v1139_v39  ;;  %v1140_v37 = vrot.slane %v626_v32, 7  ;;  %v1365_v34 = vrot.slane %v626_v32, 1  ;;  %v4990_v23 = vpop.f32.mrb[4].mxu0  ;;  %v5861_v15 = vpack.c.bf16 %v626_v32, %v625_v40 }
  0xf2   : > { %7796 = vst [vmem:[#allocation15_spill] sm:$0xff] %v5851_v25  ;;  %v1370_v4 = vsel %vm7726_vm2, %v1367_v36, %v1369_v54  ;;  %v523_v52 = vadd.f32 %v4990_v23, %v5784_v12  ;;  %v514_v60 = vpop.f32.mrb[5].mxu0  ;;  %v1145_v57 = vsel %vm7721_vm1, %v1142_v47, %v7666_v53  ;;  %v5888_v53 = vpop.f32.mrb[4].mxu1 }
  0xf3   : > { %v1141_v40 = vsel %vm7721_vm1, %v1139_v39, %v1140_v37  ;;  %v515_v48 = vadd.f32 %v5784_v12, %v514_v60  ;;  %v4991_v23 = vpop.f32.mrb[6].mxu0  ;;  %1982 = vmatprep.mubr.bf16.mxu1 %v5861_v15  ;;  %v1366_v14 = vsel %vm7726_vm2, %v1364_v29, %v1365_v34  ;;  %v1368_v58 = vsel %vm7726_vm2, %v1365_v34, %v1367_v36  ;;  %v5441_v60 = vld [vmem:[%s7659_s3 + $0x180] sm:$0xff]   ;;  %v5900_v21 = vpop.f32.mrb[5].mxu1 }
  0xf4   : > { %v5893_v39 = vpack.c.bf16 %v1141_v40, %v1234_v56  ;;  %v5895_v32 = vmax.f32 %v523_v52, 0.0  ;;  %v526_v29 = vadd.f32 %v4991_v23, %v5784_v12  ;;  %v517_v36 = vpop.f32.mrb[7].mxu0  ;;  %v5898_v34 = vpack.c.bf16 %v1368_v58, %v1366_v14  ;;  %v5910_v40 = vpop.f32.mrb[6].mxu1 }
  0xf5   : > { %v5905_v16 = vmax.f32 %v515_v48, 0.0  ;;  %v518_v24 = vadd.f32 %v5784_v12, %v517_v36  ;;  %v1143_v56 = vsel %vm7721_vm1, %v1140_v37, %v1142_v47  ;;  %v7808_v47 = vand.u32 15, %v5733_v50  ;;  %v5930_v36 = vpop.f32.mrb[7].mxu1  ;;  %v5444_v50 = vld [vmem:[%s7659_s3 + $0x188] sm:$0xff]   ;;  %v5451_v37 = vld [vmem:[%s7659_s3 + $0x1e0] sm:$0xff]  }
  0xf6   : > { %7805 = vst [vmem:[#allocation18_spill] sm:$0xff] %v5893_v39  ;;  %7806 = vst [vmem:[#allocation19_spill] sm:$0xff] %v5898_v34  ;;  %v1375_v58 = vrot.slane %v5895_v32, 1  ;;  %v5914_v14 = vmax.f32 %v526_v29, 0.0  ;;  %4256 = vmatmul.mubr.msk.bf16.vlgmr.msra.gmra.mrb[16].mxu1 %vm5868_vm9, %v5893_v39  ;;  %5032 = vmatprep.mubr.msk.bf16.mxu0 %vm5884_vm10, %v5898_v34  ;;  %v5922_v48 = vpack.c.bf16 %v1145_v57, %v1143_v56 }
  0xf7   : > { %vm5926_vm11 = vcmp.le.s32.totalorder %v7808_v47, 14  ;;  %v1371_v52 = vrot.slane %v5905_v16, 1  ;;  %v5934_v23 = vmax.f32 %v518_v24, 0.0  ;;  %1990 = vmatprep.mubr.bf16.mxu1 %v5851_v25  ;;  %4821 = vmatpush3.bf16.msra.mxu1 %v5441_v60  ;;  %v574_v47 = vadd.f32 %v5827_v33, %v5784_v12  ;;  %v5446_v60 = vld [vmem:[%s7659_s3 + $0x1d0] sm:$0xff]  }
  0xf8   : > { %7807 = vst [vmem:[#allocation20_spill] sm:$0xff] %v5922_v48  ;;  %v566_v29 = vadd.f32 %v5784_v12, %v565_v41  ;;  %v7811_v24 = vand.u32 15, %v5736_v51  ;;  %4822 = vmatprep.subr.bf16.mxu1 %v5443_v31  ;;  %v7814_v51 = vmov 0  ;;  %v5425_v31 = vld [vmem:[%s7659_s3] sm:$0xff]   ;;  %vm6095_vm5 = vmpackc.low %vm5926_vm11, %vm7737_vm8  ;;  %v579_v7 = vadd.f32 %v5784_v12, %v5900_v21 }
  0xf9   : > { %v1372_v8 = vsel %vm7726_vm2, %v1369_v54, %v1371_v52  ;;  %v1373_v56 = vrot.slane %v5934_v23, 1  ;;  %v4994_v33 = vpop.f32.mrb[8].mxu0  ;;  %v7815_v51 = vsel %vm5961_vm13, 4294967295, %v7814_v51  ;;  %v5970_v41 = vpack.c.bf16 %v5934_v23, %v5905_v16 }
  0xfa   : > { %vm5948_vm12 = vcmp.ge.s32.totalorder %v7811_v24, 1  ;;  %7816 = vst [vmem:[#allocation21_spill] sm:$0xff] %v7815_v51  ;;  %v7818_v54 = vand.u32 15, %v5741_v55  ;;  %v5978_v57 = vpack.c.bf16 %v1372_v8, %v1370_v4  ;;  %v539_v42 = vadd.f32 %v4994_v33, %v5784_v12  ;;  %v530_v6 = vpop.f32.mrb[9].mxu0  ;;  %v6008_v33 = vpop.f32.mrb[8].mxu1 }
  0xfb   : > { %7817 = vst [vmem:[#allocation22_spill] sm:$0xff] %v5970_v41  ;;  %v5988_v22 = vmax.f32 %v574_v47, 0.0  ;;  %v5990_v30 = vmax.f32 %v566_v29, 0.0  ;;  %v531_v55 = vadd.f32 %v5784_v12, %v530_v6  ;;  %v1374_v8 = vsel %vm7726_vm2, %v1371_v52, %v1373_v56  ;;  %v5426_v47 = vld [vmem:[%s7659_s3 + $0x48] sm:$0xff]   ;;  %4823 = vmatpush3.bf16.msra.mxu1 %v5444_v50  ;;  %v6019_v26 = vpop.f32.mrb[9].mxu1  ;;  %vm6129_vm7 = vmpackc.low %vm7737_vm8, %vm5948_vm12 }
  0xfc   : > { %vm5974_vm14 = vcmp.le.s32.totalorder %v7818_v54, 14  ;;  %7821 = vst [vmem:[#allocation23_spill] sm:$0xff] %v5978_v57  ;;  %v4995_v54 = vpop.f32.mrb[10].mxu0  ;;  %v1376_v4 = vsel %vm7726_vm2, %v1373_v56, %v1375_v58  ;;  %v7828_v29 = vrot.slane %v5914_v14, 1  ;;  %v6010_v52 = vmax.f32 %v539_v42, 0.0  ;;  %5033 = vmatmul.mubr.msk.bf16.vlgmr.msra.gmra.mrb[16].mxu0 %vm5961_vm13, %v5978_v57  ;;  %4824 = vmatprep.subr.bf16.mxu1 %v5446_v60  ;;  %v5449_v60 = vld [vmem:[%s7659_s3 + $0x1d8] sm:$0xff]  }
  0xfd   : > { %v542_v56 = vadd.f32 %v4995_v54, %v5784_v12  ;;  %v533_v38 = vpop.f32.mrb[11].mxu0  ;;  %v6016_v11 = vpack.c.bf16 %v1376_v4, %v1374_v8  ;;  %v6024_v50 = vmax.f32 %v531_v55, 0.0  ;;  %4685 = vmatpush3.bf16.msra.mxu0 %v5425_v31  ;;  %v5427_v8 = vld [vmem:[%s7659_s3 + $0x8] sm:$0xff]   ;;  %v6032_v4 = vpop.f32.mrb[10].mxu1  ;;  %v7830_v55 = vand.u32 15, %v5747_v59  ;;  %v5450_v59 = vld [vmem:[%s7659_s3 + $0x198] sm:$0xff]   ;;  %vm6148_vm11 = vmpackc.low %vm5974_vm14, %vm7737_vm8 }
  0xfe   : > { %v1378_v6 = vsel %vm7726_vm2, %v1375_v58, %v7828_v29  ;;  %v5447_v58 = vld [vmem:[%s7659_s3 + $0x190] sm:$0xff]   ;;  %v534_v42 = vadd.f32 %v5784_v12, %v533_v38  ;;  %4259 = vmatmul.mubr.msk.bf16.gmra.mrb[20].mxu1 %vm5984_vm15, %v5922_v48  ;;  %4686 = vmatprep.subr.bf16.mxu0 %v5426_v47  ;;  %v587_v31 = vadd.f32 %v5888_v53, %v5784_v12  ;;  %v7834_v57 = vrot.slane %v5832_v44, 7  ;;  %v5435_v44 = vld [vmem:[%s7659_s3 + $0x28] sm:$0xff]  }
  0xff   : > { %7829 = vst [vmem:[#allocation26_spill] sm:$0xff] %v6016_v11  ;;  %v6039_v38 = vmax.f32 %v542_v56, 0.0  ;;  %5036 = vmatprep.mubr.msk.bf16.mxu0 %vm5998_vm0, %v6016_v11  ;;  %v5428_v29 = vld [vmem:[%s7659_s3 + $0x50] sm:$0xff]   ;;  %vm6053_vm3 = vcmp.le.s32.totalorder %v7830_v55, 14  ;;  %v6057_v56 = vpop.f32.mrb[11].mxu1  ;;  %v1379_v51 = vrot.slane %v6024_v50, 1  ;;  %1998 = vmatprep.mubr.bf16.mxu1 %v5970_v41  ;;  %v6166_v24 = vpack.c.bf16 %v5914_v14, %v5895_v32 }
 0x100   : > { %v6061_v35 = vmax.f32 %v534_v42, 0.0  ;;  %v7833_v11 = vrot.slane %v5905_v16, 7  ;;  %v7835_v34 = vrot.slane %v5934_v23, 7  ;;  %v7837_v47 = vand.u32 15, %v5751_v61  ;;  %4825 = vmatpush3.bf16.msra.mxu1 %v5447_v58  ;;  %v5456_v54 = vld [vmem:[%s7659_s3 + $0x1f0] sm:$0xff]  }
 0x101   : > { %v7840_v16 = vrot.slane %v5914_v14, 1  ;;  %v7841_v61 = vmov 0  ;;  %4687 = vmatpush3.bf16.msra.mxu0 %v5427_v8  ;;  %v6099_v58 = vmax.f32 %v587_v31, 0.0  ;;  %4826 = vmatprep.subr.bf16.mxu1 %v5449_v60  ;;  %v7852_v13 = vrot.slane %v6010_v52, 1  ;;  %7857 = vst [vmem:[#allocation33_spill] sm:$0xff] %v6166_v24 }
 0x102   : > { %v1147_v20 = vsel %vm7721_vm1, %v7834_v57, %v7833_v11  ;;  %v7836_v42 = vmov %v7833_v11  ;;  %vm6080_vm4 = vcmp.ge.s32.totalorder %v7837_v47, 1  ;;  %v1381_v11 = vrot.slane %v6061_v35, 1  ;;  %v4998_v57 = vpop.f32.mrb[12].mxu0  ;;  %4688 = vmatprep.subr.bf16.mxu0 %v5428_v29 }
 0x103   : > { %v1149_v41 = vsel %vm7721_vm1, %v7836_v42, %v7835_v34  ;;  %v1380_v34 = vsel %vm7726_vm2, %v7840_v16, %v1379_v51  ;;  %v7842_v61 = vsel %vm6095_vm5, 4294967295, %v7841_v61  ;;  %v5429_v42 = vld [vmem:[%s7659_s3 + $0x10] sm:$0xff]   ;;  %v7844_v47 = vand.u32 15, %v5754_v62  ;;  %v546_v8 = vpop.f32.mrb[13].mxu0  ;;  %v5430_v62 = vld [vmem:[%s7659_s3 + $0x58] sm:$0xff]   ;;  %vm6232_vm1 = vmpackc.low %vm6053_vm3, %vm7737_vm8 }
 0x104   : > { %7843 = vst [vmem:[#allocation27_spill] sm:$0xff] %v7842_v61  ;;  %v555_v16 = vadd.f32 %v4998_v57, %v5784_v12  ;;  %v6114_v31 = vpack.c.bf16 %v1380_v34, %v1378_v6  ;;  %v6116_v55 = vpack.c.bf16 %v1149_v41, %v1147_v20  ;;  %v547_v60 = vadd.f32 %v5784_v12, %v546_v8  ;;  %v6134_v41 = vpop.f32.mrb[12].mxu1 }
 0x105   : > { %vm6106_vm6 = vcmp.le.s32.totalorder %v7844_v47, 14  ;;  %v4999_v47 = vpop.f32.mrb[14].mxu0  ;;  %v7849_v20 = vmov 0  ;;  %v1382_v21 = vsel %vm7726_vm2, %v1379_v51, %v1381_v11  ;;  %v1384_v8 = vsel %vm7726_vm2, %v1381_v11, %v7852_v13  ;;  %v6154_v48 = vpop.f32.mrb[13].mxu1  ;;  %4827 = vmatpush3.bf16.msra.mxu1 %v5450_v59  ;;  %4689 = vmatpush3.bf16.msra.mxu0 %v5429_v42 }
 0x106   : > { %7847 = vst [vmem:[#allocation28_spill] sm:$0xff] %v6114_v31  ;;  %7848 = vst [vmem:[#allocation29_spill] sm:$0xff] %v6116_v55  ;;  %v7850_v20 = vsel %vm6129_vm7, 4294967295, %v7849_v20  ;;  %v6136_v6 = vmax.f32 %v555_v16, 0.0  ;;  %v558_v29 = vadd.f32 %v4999_v47, %v5784_v12  ;;  %v549_v34 = vpop.f32.mrb[15].mxu0  ;;  %5037 = vmatmul.mubr.msk.bf16.gmra.mrb[20].mxu0 %vm6095_vm5, %v6114_v31  ;;  %v7853_v51 = vmov 0  ;;  %4828 = vmatprep.subr.bf16.mxu1 %v5451_v37 }
 0x107   : > { %7851 = vst [vmem:[#allocation30_spill] sm:$0xff] %v7850_v20  ;;  %v7854_v51 = vsel %vm6148_vm11, 4294967295, %v7853_v51  ;;  %v6152_v16 = vmax.f32 %v579_v7, 0.0  ;;  %v5452_v47 = vld [vmem:[%s7659_s3 + $0x1a0] sm:$0xff]   ;;  %v6159_v57 = vmax.f32 %v547_v60, 0.0  ;;  %v550_v11 = vadd.f32 %v5784_v12, %v549_v34  ;;  %v5431_v7 = vld [vmem:[%s7659_s3 + $0x18] sm:$0xff]   ;;  %4262 = vmatmul.mubr.msk.bf16.gmra.mrb[24].mxu1 %vm6129_vm7, %v6116_v55  ;;  %4690 = vmatprep.subr.bf16.mxu0 %v5430_v62  ;;  %vm6272_vm5 = vmpackc.low %vm7737_vm8, %vm6080_vm4 }
 0x108   : > { %7855 = vst [vmem:[#allocation31_spill] sm:$0xff] %v7854_v51  ;;  %v6162_v13 = vpack.c.bf16 %v1384_v8, %v1382_v21  ;;  %v6171_v59 = vpop.f32.mrb[14].mxu1  ;;  %v5453_v60 = vld [vmem:[%s7659_s3 + $0x1e8] sm:$0xff]   ;;  %v1391_v21 = vrot.slane %v6136_v6, 1  ;;  %v6178_v8 = vmax.f32 %v558_v29, 0.0  ;;  %v7858_v61 = vand.u32 15, %v5757_v63  ;;  %2006 = vmatprep.mubr.bf16.mxu1 %v6166_v24 }
 0x109   : > { %v6190_v31 = vpop.f32.mrb[15].mxu1  ;;  %v5432_v29 = vld [vmem:[%s7659_s3 + $0x60] sm:$0xff]   ;;  %v1387_v20 = vrot.slane %v6159_v57, 1  ;;  %v6197_v55 = vmax.f32 %v550_v11, 0.0  ;;  %v590_v11 = vadd.f32 %v5910_v40, %v5784_v12  ;;  %v582_v51 = vadd.f32 %v5784_v12, %v5930_v36  ;;  %4829 = vmatpush3.bf16.msra.mxu1 %v5452_v47  ;;  %v5455_v63 = vld [vmem:[%s7659_s3 + $0x1a8] sm:$0xff]   ;;  %4691 = vmatpush3.bf16.msra.mxu0 %v5431_v7  ;;  %v5437_v37 = vld [vmem:[%s7659_s3 + $0x30] sm:$0xff]  }
 0x10a   : > { %7856 = vst [vmem:[#allocation32_spill] sm:$0xff] %v6162_v13  ;;  %vm6186_vm12 = vcmp.le.s32.totalorder %v7858_v61, 14  ;;  %5040 = vmatprep.mubr.msk.bf16.mxu0 %vm6148_vm11, %v6162_v13  ;;  %v7861_v61 = vand.u32 15, %v5760_v0  ;;  %v1393_v34 = vrot.slane %v6178_v8, 1  ;;  %v7864_v13 = vrot.slane %v6039_v38, 1  ;;  %4830 = vmatprep.subr.bf16.mxu1 %v5453_v60 }
 0x10b   : > { %v7865_v42 = vrot.slane %v6010_v52, 1  ;;  %v7867_v36 = vmov 0  ;;  %v7869_v47 = vand.u32 15, %v5763_v1  ;;  %v603_v1 = vadd.f32 %v6008_v33, %v5784_v12  ;;  %4692 = vmatprep.subr.bf16.mxu0 %v5432_v29 }
 0x10c   : > { %vm6206_vm14 = vcmp.le.s32.totalorder %v7861_v61, 14  ;;  %v1389_v61 = vrot.slane %v6197_v55, 1  ;;  %v7866_v40 = vmov %v7864_v13  ;;  %v7868_v36 = vsel %vm6232_vm1, 4294967295, %v7867_v36 }
 0x10d   : > { %v1386_v24 = vsel %vm7726_vm2, %v7865_v42, %v7864_v13  ;;  %v1388_v25 = vsel %vm7726_vm2, %v7866_v40, %v1387_v20  ;;  %vm6238_vm11 = vcmp.ge.s32.totalorder %v7869_v47, 1  ;;  %v5433_v13 = vld [vmem:[%s7659_s3 + $0x20] sm:$0xff]   ;;  %v6248_v42 = vmax.f32 %v590_v11, 0.0  ;;  %v5434_v47 = vld [vmem:[%s7659_s3 + $0x68] sm:$0xff]   ;;  %4831 = vmatpush3.bf16.msra.mxu1 %v5455_v63  ;;  %v5458_v63 = vld [vmem:[%s7659_s3 + $0x1f8] sm:$0xff]  }
 0x10e   : > { %v6250_v40 = vmax.f32 %v582_v51, 0.0  ;;  %v6252_v7 = vpack.c.bf16 %v1388_v25, %v1386_v24  ;;  %v7872_v60 = vrot.slane %v5895_v32, 7  ;;  %v7873_v49 = vrot.slane %v5934_v23, 7  ;;  %4693 = vmatpush3.bf16.msra.mxu0 %v5433_v13  ;;  %4832 = vmatprep.subr.bf16.mxu1 %v5456_v54 }
 0x10f   : > { %vm7874_vm3 = vcmask 1040384   ;;  %v7875_v11 = vrot.slane %v5914_v14, 7  ;;  %vm7880_vm0 = vcmask 1046528   ;;  %v7882_v53 = vmov 0  ;;  %4694 = vmatprep.subr.bf16.mxu0 %v5434_v47 }
 0x110   : > { %v1151_v39 = vsel %vm7874_vm3, %v7873_v49, %v7872_v60  ;;  %v7876_v51 = vmov %v7872_v60  ;;  %vm7877_vm2 = vmmov %vm7874_vm3  ;;  %v1390_v24 = vsel %vm7880_vm0, %v1387_v20, %v1389_v61  ;;  %5041 = vmatmul.mubr.msk.bf16.gmra.mrb[24].mxu0 %vm6232_vm1, %v6252_v7  ;;  %v5457_v20 = vld [vmem:[%s7659_s3 + $0x1b0] sm:$0xff]   ;;  %v595_v23 = vadd.f32 %v5784_v12, %v6019_v26 }
 0x111   : > { %v1153_v25 = vsel %vm7877_vm2, %v7876_v51, %v7875_v11  ;;  %vm7881_vm13 = vmmov %vm7880_vm0  ;;  %v598_v26 = vadd.f32 %v5784_v12, %v6057_v56  ;;  %v7889_v56 = vrot.slane %v5846_v27, 1  ;;  %v7891_v47 = vand.u32 15, %v5769_v3  ;;  %4833 = vmatpush3.bf16.msra.mxu1 %v5457_v20 }
 0x112   : > { %v1392_v29 = vsel %vm7881_vm13, %v1389_v61, %v1391_v21  ;;  %vm6288_vm2 = vmpackc.low %vm6106_vm6, %vm7737_vm8  ;;  %v6295_v61 = vmax.f32 %v603_v1, 0.0  ;;  %v6297_v11 = vpack.c.bf16 %v1153_v25, %v1151_v39  ;;  %v6311_v1 = vpack.c.bf16 %v6061_v35, %v6024_v50  ;;  %4695 = vmatpush3.bf16.msra.mxu0 %v5435_v44  ;;  %4834 = vmatprep.subr.bf16.mxu1 %v5458_v63  ;;  %v5438_v44 = vld [vmem:[%s7659_s3 + $0x78] sm:$0xff]  }
 0x113   : > { %v7883_v53 = vsel %vm6288_vm2, 4294967295, %v7882_v53  ;;  %v6299_v51 = vpack.c.bf16 %v1392_v29, %v1390_v24  ;;  %v606_v39 = vadd.f32 %v6032_v4, %v5784_v12  ;;  %vm7885_vm13 = vmmov %vm7880_vm0  ;;  %v7886_v25 = vand.u32 15, %v5766_v2  ;;  %v5436_v24 = vld [vmem:[%s7659_s3 + $0x70] sm:$0xff]   ;;  %v5459_v63 = vld [vmem:[%s7659_s3 + $0x1b8] sm:$0xff]  }
 0x114   : > { %7884 = vst [vmem:[#allocation34_spill] sm:$0xff] %v7883_v53  ;;  %v1394_v13 = vsel %vm7885_vm13, %v1391_v21, %v1393_v34  ;;  %4265 = vmatmul.mubr.msk.bf16.gmra.mrb[28].mxu1 %vm6272_vm5, %v6297_v11  ;;  %v6335_v2 = vmax.f32 %v595_v23, 0.0  ;;  %vm7890_vm4 = vmmov %vm7885_vm13  ;;  %vm6342_vm6 = vcmp.le.s32.totalorder %v7891_v47, 14  ;;  %v6349_v60 = vmax.f32 %v598_v26, 0.0  ;;  %4696 = vmatprep.subr.bf16.mxu0 %v5436_v24 }
 0x115   : > { %vm6320_vm0 = vcmp.le.s32.totalorder %v7886_v25, 14  ;;  %5044 = vmatprep.mubr.msk.bf16.mxu0 %vm6288_vm2, %v6299_v51  ;;  %v1396_v21 = vsel %vm7890_vm4, %v1393_v34, %v7889_v56  ;;  %2014 = vmatprep.mubr.bf16.mxu1 %v6311_v1  ;;  %v6347_v29 = vmax.f32 %v606_v39, 0.0  ;;  %v7895_v23 = vrot.slane %v5990_v30, 1  ;;  %vm7897_vm3 = vmmov %vm7890_vm4 }
 0x116   : > { %v6351_v4 = vpack.c.bf16 %v1396_v21, %v1394_v13  ;;  %v7896_v49 = vmov %v7889_v56  ;;  %vm6363_vm13 = vmpackc.low %vm6186_vm12, %vm7737_vm8  ;;  %v7898_v39 = vmov 0  ;;  %v7901_v26 = vrot.slane %v5838_v43, 1  ;;  %4697 = vmatpush3.bf16.msra.mxu0 %v5437_v37  ;;  %4835 = vmatpush3.bf16.msra.mxu1 %v5459_v63 }
 0x117   : > { %v1398_v34 = vsel %vm7897_vm3, %v7896_v49, %v7895_v23  ;;  %v7899_v39 = vsel %vm6363_vm13, 4294967295, %v7898_v39  ;;  %v7902_v13 = vmov %v7895_v23  ;;  %vm7903_vm4 = vmmov %vm7897_vm3  ;;  %v619_v49 = vadd.f32 %v6134_v41, %v5784_v12  ;;  %4698 = vmatprep.subr.bf16.mxu0 %v5438_v44 }
 0x118   : > { %7894 = vst [vmem:[#allocation35_spill] sm:$0xff] %v6351_v4  ;;  %7900 = vst [vmem:[#allocation36_spill] sm:$0xff] %v7899_v39  ;;  %v1400_v21 = vsel %vm7903_vm4, %v7902_v13, %v7901_v26  ;;  %v7904_v20 = vand.u32 15, %v5773_v5  ;;  %v1413_v41 = vrot.slane %v6349_v60, 1  ;;  %v7907_v5 = vmov 0  ;;  %5045 = vmatmul.mubr.msk.bf16.gmra.mrb[28].mxu0 %vm6363_vm13, %v6351_v4 }
 0x119   : > { %vm6390_vm12 = vmpackc.low %vm6206_vm14, %vm7737_vm8  ;;  %v6400_v13 = vpack.c.bf16 %v1400_v21, %v1398_v34  ;;  %v7911_v23 = vrot.slane %v6024_v50, 7  ;;  %v7912_v62 = vrot.slane %v5914_v14, 7  ;;  %vm7913_vm14 = vcmask 1040384   ;;  %v8075_v34 = vld [vmem:[#allocation17_spill] sm:$0xff] }
 0x11a   : > { %vm6376_vm3 = vcmp.ge.s32.totalorder %v7904_v20, 1  ;;  %v7908_v5 = vsel %vm6390_vm12, 4294967295, %v7907_v5  ;;  %v6402_v20 = vmax.f32 %v619_v49, 0.0  ;;  %v7914_v24 = vrot.slane %v6061_v35, 7  ;;  %vm7916_vm4 = vmmov %vm7913_vm14 }
 0x11b   : > { %7909 = vst [vmem:[#allocation37_spill] sm:$0xff] %v7908_v5  ;;  %7910 = vst [vmem:[#allocation38_spill] sm:$0xff] %v6400_v13  ;;  %v1155_v26 = vsel %vm7913_vm14, %v7912_v62, %v7911_v23  ;;  %v7915_v3 = vmov %v7911_v23  ;;  %v611_v21 = vadd.f32 %v5784_v12, %v6154_v48  ;;  %v6430_v50 = vpack.c.bf16 %v6039_v38, %v6010_v52 }
 0x11c   : > { %v1157_v56 = vsel %vm7916_vm4, %v7915_v3, %v7914_v24  ;;  %vm6420_vm2 = vmpackc.low %vm7737_vm8, %vm6238_vm11  ;;  %v622_v3 = vadd.f32 %v6171_v59, %v5784_v12  ;;  %5048 = vmatprep.mubr.msk.bf16.mxu0 %vm6390_vm12, %v6400_v13  ;;  %v1423_v49 = vrot.slane %v6402_v20, 1  ;;  %v7919_v48 = vrot.slane %v5988_v22, 1  ;;  %v5439_v59 = vld [vmem:[%s7659_s3 + $0x38] sm:$0xff]  }
 0x11d   : > { %v6424_v14 = vpack.c.bf16 %v1157_v56, %v1155_v26  ;;  %v614_v56 = vadd.f32 %v5784_v12, %v6190_v31  ;;  %v7920_v23 = vrot.slane %v5838_v43, 1  ;;  %vm7921_vm11 = vcmask 1046528   ;;  %4699 = vmatpush3.bf16.msra.mxu0 %v5439_v59 }
 0x11e   : > { %v6449_v62 = vmax.f32 %v611_v21, 0.0  ;;  %v6451_v24 = vmax.f32 %v622_v3, 0.0  ;;  %v7922_v0 = vrot.slane %v6152_v16, 1  ;;  %v7923_v32 = vmov %v7919_v48  ;;  %vm7924_vm14 = vmmov %vm7921_vm11  ;;  %v6472_v21 = vld [vmem:[%s7659_s3 + $0x80] sm:$0xff]  }
 0x11f   : > { %v1402_v26 = vsel %vm7921_vm11, %v7920_v23, %v7919_v48  ;;  %v7925_v31 = vrot.slane %v6250_v40, 1  ;;  %vm7927_vm4 = vmmov %vm7921_vm11  ;;  %v7928_v48 = vand.u32 15, %v5776_v9  ;;  %4268 = vmatmul.mubr.msk.bf16.gmra.mrb[32].mxu1 %vm6420_vm2, %v6424_v14  ;;  %v7931_v9 = vrot.slane %v6099_v58, 1  ;;  %5064 = vmatprep.subr.bf16.mxu0 %v6472_v21 }
 0x120   : > { %v1404_v12 = vsel %vm7924_vm14, %v7923_v32, %v7922_v0  ;;  %v7926_v5 = vmov %v7922_v0  ;;  %v6477_v32 = vmax.f32 %v614_v56, 0.0  ;;  %vm7933_vm14 = vmmov %vm7927_vm4  ;;  %v7934_v0 = vrot.slane %v6010_v52, 7  ;;  %2022 = vmatprep.mubr.bf16.mxu1 %v6430_v50 }
 0x121   : > { %v1406_v37 = vsel %vm7927_vm4, %v7926_v5, %v7925_v31  ;;  %vm6465_vm11 = vcmp.le.s32.totalorder %v7928_v48, 14  ;;  %v6479_v5 = vpack.c.bf16 %v1404_v12, %v1402_v26  ;;  %v7932_v3 = vmov %v7925_v31 }
 0x122   : > { %v1408_v44 = vsel %vm7933_vm14, %v7932_v3, %v7931_v9  ;;  %v7935_v31 = vrot.slane %v6061_v35, 7  ;;  %vm7936_vm4 = vcmask 1040384   ;;  %v7937_v48 = vand.u32 15, %v5779_v10 }
 0x123   : > { %v1419_v26 = vrot.slane %v6449_v62, 1  ;;  %v1425_v9 = vrot.slane %v6451_v24, 1  ;;  %v1421_v3 = vrot.slane %v6477_v32, 1  ;;  %vm7940_vm14 = vmmov 1  }
 0x124   : > { %v1159_v63 = vsel %vm7936_vm4, %v7935_v31, %v7934_v0  ;;  %vm6493_vm8 = vcmp.le.s32.totalorder %v7937_v48, 14  ;;  %vm6507_vm4 = vmpackc.low %vm6320_vm0, %vm7940_vm14  ;;  %v7941_v10 = vmov 0  ;;  %v6511_v0 = vpack.c.bf16 %v1408_v44, %v1406_v37 }
 0x125   : > { %v7942_v10 = vsel %vm6507_vm4, 4294967295, %v7941_v10  ;;  %v7943_v31 = vrot.slane %v6039_v38, 7  ;;  %v7944_v48 = vrot.slane %v6010_v52, 7  ;;  %vm7945_vm12 = vcmask 1040384   ;;  %vm6528_vm0 = vmpackc.low %vm6342_vm6, %vm7940_vm14  ;;  %5049 = vmatmul.mubr.msk.bf16.gmra.mrb[32].mxu0 %vm6507_vm4, %v6479_v5 }
 0x126   : > { %v7946_v56 = vand.u32 15, %v5792_v17  ;;  %vm7949_vm1 = vcmask 1046528   ;;  %v7950_v37 = vmov 0  ;;  %v6536_v52 = vpack.c.bf16 %v6197_v55, %v6159_v57  ;;  %5052 = vmatprep.mubr.msk.bf16.mxu0 %vm6528_vm0, %v6511_v0 }
 0x127   : > { %v1161_v12 = vsel %vm7945_vm12, %v7944_v48, %v7943_v31  ;;  %v1459_v54 = vsel %vm7949_vm1, %v1425_v9, 0.0  ;;  %v7951_v37 = vsel %vm6528_vm0, 4294967295, %v7950_v37  ;;  %v7953_v17 = vrot.slane %v6248_v42, 1  ;;  %vm7955_vm12 = vmmov %vm7949_vm1 }
 0x128   : > { %vm6520_vm13 = vcmp.ge.s32.totalorder %v7946_v56, 1  ;;  %7952 = vst [vmem:[#allocation39_spill] sm:$0xff] %v7951_v37  ;;  %v6532_v44 = vpack.c.bf16 %v1161_v12, %v1159_v63  ;;  %v7954_v56 = vrot.slane %v6099_v58, 1  ;;  %v7956_v25 = vrot.slane %v6335_v2, 1  ;;  %vm7959_vm6 = vmmov %vm7949_vm1 }
 0x129   : > { %v7957_v31 = vmov %v7953_v17  ;;  %v7960_v39 = vrot.slane %v6295_v61, 1  ;;  %vm7961_vm10 = vmmov %vm7949_vm1  ;;  %v7962_v53 = vrot.slane %v6159_v57, 7  ;;  %v7980_v37 = vrot.slane %v6136_v6, 7 }
 0x12a   : > { %v1410_v59 = vsel %vm7955_vm12, %v7954_v56, %v7953_v17  ;;  %v1412_v48 = vsel %vm7949_vm1, %v7957_v31, %v7956_v25  ;;  %v7958_v63 = vmov %v7956_v25  ;;  %v7963_v17 = vrot.slane %v6039_v38, 7  ;;  %vm6566_vm1 = vmpackc.low %vm7940_vm14, %vm6376_vm3  ;;  %v8080_v25 = vld [vmem:[#allocation26_spill] sm:$0xff] }
 0x12b   : > { %v1414_v12 = vsel %vm7959_vm6, %v7958_v63, %v1413_v41  ;;  %v1416_v4 = vsel %vm7961_vm10, %v1413_v41, %v7960_v39  ;;  %vm7964_vm12 = vcmask 1040384   ;;  %v6570_v31 = vpack.c.bf16 %v1412_v48, %v1410_v59  ;;  %vm7972_vm3 = vmmov %vm7959_vm6  ;;  %4271 = vmatmul.mubr.msk.bf16.gmra.mrb[36].mxu1 %vm6566_vm1, %v6532_v44 }
 0x12c   : > { %v1163_v56 = vsel %vm7964_vm12, %v7963_v17, %v7962_v53  ;;  %v6572_v39 = vpack.c.bf16 %v1416_v4, %v1414_v12  ;;  %v7967_v41 = vrot.slane %v6197_v55, 7  ;;  %v7968_v38 = vmov %v7962_v53  ;;  %vm7969_vm10 = vmmov %vm7964_vm12  ;;  %2030 = vmatprep.mubr.bf16.mxu1 %v6536_v52 }
 0x12d   : > { %v6581_v63 = vpack.c.bf16 %v6178_v8, %v6136_v6  ;;  %v7970_v59 = vrot.slane %v6347_v29, 1  ;;  %v7971_v4 = vrot.slane %v6295_v61, 1  ;;  %vm7974_vm6 = vmmov %vm7972_vm3  ;;  %v7986_v6 = vrot.slane %v5846_v27, 7 }
 0x12e   : > { %v1165_v53 = vsel %vm7969_vm10, %v7968_v38, %v7967_v41  ;;  %vm7975_vm12 = vmmov %vm7972_vm3  ;;  %v7976_v41 = vand.u32 15, %v5795_v18  ;;  %v6666_v23 = vpack.c.bf16 %v6250_v40, %v6152_v16  ;;  %v6689_v13 = vpack.c.bf16 %v6248_v42, %v6099_v58  ;;  %v8087_v38 = vld [vmem:[#allocation31_spill] sm:$0xff] }
 0x12f   : > { %v6586_v47 = vpack.c.bf16 %v1165_v53, %v1163_v56  ;;  %v1418_v48 = vsel %vm7972_vm3, %v7971_v4, %v7970_v59  ;;  %v7973_v57 = vmov %v7970_v59  ;;  %v1422_v17 = vsel %vm7975_vm12, %v1419_v26, %v1421_v3  ;;  %vm7979_vm0 = vmmov %vm7972_vm3 }
 0x130   : > { %v1420_v12 = vsel %vm7974_vm6, %v7973_v57, %v1419_v26  ;;  %vm6599_vm10 = vcmp.le.s32.totalorder %v7976_v41, 14  ;;  %v1424_v53 = vsel %vm7979_vm0, %v1421_v3, %v1423_v49  ;;  %v7981_v59 = vrot.slane %v6197_v55, 7 }
 0x131   : > { %v6603_v56 = vpack.c.bf16 %v1420_v12, %v1418_v48  ;;  %vm7982_vm3 = vcmask 1040384   ;;  %v7983_v57 = vrot.slane %v6178_v8, 7  ;;  %v7984_v26 = vmov %v7980_v37 }
 0x132   : > { %v1167_v4 = vsel %vm7982_vm3, %v7981_v59, %v7980_v37  ;;  %vm7985_vm6 = vmmov %vm7982_vm3  ;;  %v6619_v48 = vpack.c.bf16 %v1424_v53, %v1422_v17  ;;  %v6625_v3 = vpack.c.bf16 %v5990_v30, %v5846_v27  ;;  %v1426_v55 = vsel %vm7979_vm0, %v1423_v49, %v1425_v9 }
 0x133   : > { %v1169_v18 = vsel %vm7985_vm6, %v7984_v26, %v7983_v57  ;;  %v6629_v37 = vpack.c.bf16 %v1459_v54, %v1426_v55  ;;  %v7987_v41 = vmov %v7983_v57  ;;  %vm7988_vm12 = vmmov %vm7982_vm3  ;;  %v7989_v17 = vrot.slane %v5990_v30, 7 }
 0x134   : > { %v6621_v12 = vpack.c.bf16 %v1169_v18, %v1167_v4  ;;  %v1171_v59 = vsel %vm7988_vm12, %v7987_v41, %v7986_v6  ;;  %v7990_v53 = vmov %v7986_v6  ;;  %v6643_v57 = vpack.c.bf16 %v5988_v22, %v5838_v43  ;;  %vm6648_vm6 = vmpackc.low %vm6465_vm11, %vm7940_vm14 }
 0x135   : > { %v1173_v4 = vsel %vm7982_vm3, %v7990_v53, %v7989_v17  ;;  %v7991_v49 = vmov 0  ;;  %v7993_v9 = vrot.slane %v5838_v43, 7  ;;  %v7994_v54 = vmov %v7989_v17  ;;  %vm7995_vm0 = vmmov %vm7982_vm3  ;;  %5053 = vmatmul.mubr.msk.bf16.gmra.mrb[36].mxu0 %vm6648_vm6, %v6570_v31 }
 0x136   : > { %v7992_v49 = vsel %vm6648_vm6, 4294967295, %v7991_v49  ;;  %v6652_v8 = vpack.c.bf16 %v1173_v4, %v1171_v59  ;;  %v7996_v26 = vrot.slane %v5988_v22, 7  ;;  %vm7998_vm12 = vmmov %vm7995_vm0  ;;  %v7999_v6 = vmov 0 }
 0x137   : > { %v1175_v27 = vsel %vm7995_vm0, %v7994_v54, %v7993_v9  ;;  %v7997_v18 = vmov %v7993_v9  ;;  %vm6671_vm11 = vmpackc.low %vm6493_vm8, %vm7940_vm14  ;;  %v8001_v41 = vrot.slane %v6152_v16, 7  ;;  %v8004_v17 = vrot.slane %v6250_v40, 7  ;;  %v8086_v40 = vld [vmem:[#allocation32_spill] sm:$0xff] }
 0x138   : > { %v1177_v55 = vsel %vm7998_vm12, %v7997_v18, %v7996_v26  ;;  %v8000_v6 = vsel %vm6671_vm11, 4294967295, %v7999_v6  ;;  %v8002_v59 = vmov %v7996_v26  ;;  %vm8003_vm3 = vmmov %vm7995_vm0  ;;  %v8006_v54 = vrot.slane %v6099_v58, 7  ;;  %5056 = vmatprep.mubr.msk.bf16.mxu0 %vm6671_vm11, %v6572_v39 }
 0x139   : > { %v6675_v30 = vpack.c.bf16 %v1177_v55, %v1175_v27  ;;  %v1179_v43 = vsel %vm8003_vm3, %v8002_v59, %v8001_v41  ;;  %v8005_v53 = vmov %v8001_v41  ;;  %v8007_v27 = vmov %v8004_v17  ;;  %vm8008_vm8 = vmmov %vm7995_vm0 }
 0x13a   : > { %v1181_v4 = vsel %vm7995_vm0, %v8005_v53, %v8004_v17  ;;  %v1183_v22 = vsel %vm8008_vm8, %v8007_v27, %v8006_v54  ;;  %v8009_v26 = vrot.slane %v6248_v42, 7  ;;  %v8010_v18 = vmov %v8006_v54  ;;  %vm8011_vm12 = vmmov %vm7995_vm0 }
 0x13b   : > { %v6691_v9 = vpack.c.bf16 %v1181_v4, %v1179_v43  ;;  %v6705_v55 = vpack.c.bf16 %v6349_v60, %v6335_v2  ;;  %vm6713_vm3 = vmpackc.low %vm7940_vm14, %vm6520_vm13  ;;  %v8014_v58 = vrot.slane %v6335_v2, 7  ;;  %v8016_v17 = vrot.slane %v6349_v60, 7 }
 0x13c   : > { %v1185_v16 = vsel %vm8011_vm12, %v8010_v18, %v8009_v26  ;;  %v8015_v59 = vmov %v8009_v26  ;;  %vm8018_vm8 = vmmov %vm7995_vm0  ;;  %v6731_v35 = vpack.c.bf16 %v6347_v29, %v6295_v61  ;;  %v8019_v42 = vrot.slane %v6295_v61, 7  ;;  %4274 = vmatmul.mubr.msk.bf16.gmra.mrb[40].mxu1 %vm6713_vm3, %v6586_v47 }
 0x13d   : > { %v6717_v41 = vpack.c.bf16 %v1185_v16, %v1183_v22  ;;  %v1187_v43 = vsel %vm7995_vm0, %v8015_v59, %v8014_v58  ;;  %v8017_v53 = vmov %v8014_v58  ;;  %v8020_v27 = vmov %v8016_v17  ;;  %vm8021_vm13 = vmmov %vm7995_vm0  ;;  %2038 = vmatprep.mubr.bf16.mxu1 %v6581_v63 }
 0x13e   : > { %v1189_v4 = vsel %vm8018_vm8, %v8017_v53, %v8016_v17  ;;  %v1191_v22 = vsel %vm8021_vm13, %v8020_v27, %v8019_v42  ;;  %v8022_v2 = vrot.slane %v6347_v29, 7  ;;  %v8023_v26 = vmov %v8019_v42  ;;  %vm8024_vm12 = vmmov %vm7995_vm0 }
 0x13f   : > { %v6736_v54 = vpack.c.bf16 %v1189_v4, %v1187_v43  ;;  %v6750_v16 = vpack.c.bf16 %v6477_v32, %v6449_v62  ;;  %v8025_v59 = vrot.slane %v6449_v62, 7  ;;  %v8027_v17 = vrot.slane %v6477_v32, 7  ;;  %vm8029_vm8 = vmmov %vm7995_vm0 }
 0x140   : > { %v1193_v18 = vsel %vm8024_vm12, %v8023_v26, %v8022_v2  ;;  %v8026_v43 = vmov %v8022_v2  ;;  %v6766_v4 = vpack.c.bf16 %v6451_v24, %v6402_v20  ;;  %v8030_v42 = vand.u32 15, %v5798_v19  ;;  %vm8033_vm12 = vmmov %vm7995_vm0 }
 0x141   : > { %v6752_v58 = vpack.c.bf16 %v1193_v18, %v1191_v22  ;;  %v1195_v60 = vsel %vm7995_vm0, %v8026_v43, %v8025_v59  ;;  %v8028_v53 = vmov %v8025_v59  ;;  %v8031_v27 = vrot.slane %v6402_v20, 7 }
 0x142   : > { %v1197_v61 = vsel %vm8029_vm8, %v8028_v53, %v8027_v17  ;;  %vm1360_vm13 = vcmp.le.s32.totalorder %v8030_v42, 14  ;;  %v8032_v22 = vmov %v8027_v17  ;;  %v8034_v2 = vrot.slane %v6451_v24, 7  ;;  %vm6791_vm8 = vmpackc.low %vm6599_vm10, %vm7940_vm14 }
 0x143   : > { %v6773_v29 = vpack.c.bf16 %v1197_v61, %v1195_v60  ;;  %v1199_v62 = vsel %vm8033_vm12, %v8032_v22, %v8031_v27  ;;  %v8035_v26 = vmov %v8031_v27  ;;  %v8036_v19 = vmov 0  ;;  %vm6799_vm11 = vmpackc.low %vm1360_vm13, %vm7940_vm14  ;;  %5057 = vmatmul.mubr.msk.bf16.gmra.mrb[40].mxu0 %vm6791_vm8, %v6603_v56  ;;  %v5445_v27 = vld [vmem:[%s7659_s3 + $0x88] sm:$0xff]   ;;  %v5471_v22 = vld [vmem:[%s7659_s3 + $0x238] sm:$0xff]  }
 0x144   : > { %v1201_v18 = vsel %vm7995_vm0, %v8035_v26, %v8034_v2  ;;  %v8037_v19 = vsel %vm6791_vm8, 4294967295, %v8036_v19  ;;  %v8038_v32 = vand.u32 15, %v5808_v28  ;;  %v674_v24 = vadd.s32 128, %v5720_v45  ;;  %5060 = vmatprep.mubr.msk.bf16.mxu0 %vm6799_vm11, %v6619_v48  ;;  %v5448_v2 = vld [vmem:[%s7659_s3 + $0x90] sm:$0xff]  }
 0x145   : > { %v6786_v59 = vpack.c.bf16 %v1201_v18, %v1199_v62  ;;  %v8039_v20 = vmov 0  ;;  %v911_v43 = vand.u32 15, %v5830_v46  ;;  %v8043_v46 = vmov 0  ;;  %v5463_v18 = vld [vmem:[%s7659_s3 + $0xb8] sm:$0xff]  }
 0x146   : > { %vm1088_vm12 = vcmp.ge.s32.totalorder %v8038_v32, 1  ;;  %v8040_v20 = vsel %vm6799_vm11, 4294967295, %v8039_v20  ;;  %v806_v28 = vand.u32 15, %v674_v24  ;;  %v676_v60 = vadd.s32 144, %v5720_v45  ;;  %v8054_v24 = vld [vmem:[#allocation15_spill] sm:$0xff] }
 0x147   : > { %vm6808_vm10 = vmpackc.low %vm7940_vm14, %vm1088_vm12  ;;  %vm1362_vm13 = vcmp.le.s32.totalorder %v911_v43, 14  ;;  %v7765_v53 = vmov 0   ;;  %v678_v42 = vadd.s32 160, %v5720_v45  ;;  %v680_v26 = vadd.s32 176, %v5720_v45 }
 0x148   : > { %4277 = vmatmul.mubr.msk.bf16.gmra.mrb[44].mxu1 %vm6808_vm10, %v6621_v12  ;;  %vm6820_vm0 = vmpackc.low %vm1362_vm13, %vm7940_vm14  ;;  %vm1090_vm12 = vcmp.ge.s32.totalorder %v806_v28, 1  ;;  %v820_v61 = vand.u32 15, %v676_v60  ;;  %v5460_v28 = vld [vmem:[%s7659_s3 + $0xa0] sm:$0xff]   ;;  %v682_v60 = vadd.s32 192, %v5720_v45  ;;  %v8073_v33 = vmov 0  }
 0x149   : > { %2046 = vmatprep.mubr.bf16.mxu1 %v6625_v3  ;;  %v8044_v46 = vsel %vm6820_vm0, 4294967295, %v8043_v46  ;;  %vm6829_vm11 = vmpackc.low %vm7940_vm14, %vm1090_vm12  ;;  %v834_v62 = vand.u32 15, %v678_v42  ;;  %v848_v43 = vand.u32 15, %v680_v26  ;;  %v8055_v42 = vld [vmem:[#allocation20_spill] sm:$0xff] }
 0x14a   : > { %8045 = vst [vmem:[#allocation40_spill] sm:$0xff] %v8044_v46  ;;  %vm1092_vm13 = vcmp.ge.s32.totalorder %v820_v61, 1  ;;  %v5461_v61 = vld [vmem:[%s7659_s3 + $0xa8] sm:$0xff]   ;;  %v862_v26 = vand.u32 15, %v682_v60  ;;  %v8062_v60 = vmov 0  ;;  %v686_v46 = vadd.s32 224, %v5720_v45 }
 0x14b   : > { %5061 = vmatmul.mubr.msk.bf16.gmra.mrb[44].mxu0 %vm6820_vm0, %v6629_v37  ;;  %vm6844_vm12 = vmpackc.low %vm7940_vm14, %vm1092_vm13  ;;  %vm1094_vm13 = vcmp.ge.s32.totalorder %v834_v62, 1 }
 0x14c   : > { %2448 = vmatprep.mubr.bf16.mxu0 %v7765_v53  ;;  %vm6865_vm0 = vmpackc.low %vm7940_vm14, %vm1094_vm13  ;;  %vm1098_vm8 = vcmp.ge.s32.totalorder %v862_v26, 1 }
 0x150   : > { %4280 = vmatmul.mubr.msk.bf16.gmra.mrb[48].mxu1 %vm6829_vm11, %v6652_v8 }
 0x151   : > { %2054 = vmatprep.mubr.bf16.mxu1 %v6643_v57 }
 0x153   : > { %2449 = vmatmul.mubr.bf16.vlgmr.msra.gmra.mrb[48].mxu0 %v7765_v53  ;;  %v8064_v53 = vld [vmem:[#allocation33_spill] sm:$0xff] }
 0x154   : > { %5065 = vmatpush3.bf16.msra.mxu0 %v6472_v21  ;;  %2456 = vmatprep.mubr.bf16.mxu0 %v5861_v15  ;;  %v5454_v15 = vld [vmem:[%s7659_s3 + $0x98] sm:$0xff]  }
 0x155   : > { %5066 = vmatprep.subr.bf16.mxu0 %v5445_v27  ;;  %v8050_v21 = vld [vmem:[#allocation18_spill] sm:$0xff] }
 0x158   : > { %4283 = vmatmul.mubr.msk.bf16.gmra.mrb[52].mxu1 %vm6844_vm12, %v6675_v30  ;;  %5067 = vmatpush3.bf16.msra.mxu0 %v5445_v27  ;;  %v8090_v27 = vld [vmem:[#allocation34_spill] sm:$0xff] }
 0x159   : > { %2062 = vmatprep.mubr.bf16.mxu1 %v6666_v23  ;;  %5068 = vmatprep.subr.bf16.mxu0 %v5448_v2 }
 0x15b   : > { %4352 = vmatmul.mubr.msk.bf16.gmra.mrb[52].mxu0 %vm5868_vm9, %v8050_v21  ;;  %vm1096_vm9 = vcmp.ge.s32.totalorder %v848_v43, 1  ;;  %v684_v21 = vadd.s32 208, %v5720_v45  ;;  %v8060_v43 = vld [vmem:[#allocation29_spill] sm:$0xff] }
 0x15c   : > { %2464 = vmatprep.mubr.bf16.mxu0 %v8054_v24  ;;  %5069 = vmatpush3.bf16.msra.mxu0 %v5448_v2  ;;  %vm6885_vm13 = vmpackc.low %vm7940_vm14, %vm1096_vm9  ;;  %v8059_v2 = vld [vmem:[#allocation22_spill] sm:$0xff] }
 0x15d   : > { %5070 = vmatprep.subr.bf16.mxu0 %v5454_v15  ;;  %vm6905_vm9 = vmpackc.low %vm7940_vm14, %vm1098_vm8  ;;  %v876_v26 = vand.u32 15, %v684_v21  ;;  %v890_v21 = vand.u32 15, %v686_v46 }
 0x15e   : > { %v8063_v60 = vsel %vm6905_vm9, 4294967295, %v8062_v60 }
 0x15f   : > { %vm1100_vm8 = vcmp.ge.s32.totalorder %v876_v26, 1  ;;  %vm1102_vm4 = vcmp.ge.s32.totalorder %v890_v21, 1  ;;  %v8095_v21 = vld [vmem:[#allocation38_spill] sm:$0xff] }
 0x160   : > { %4286 = vmatmul.mubr.msk.bf16.gmra.mrb[56].mxu1 %vm6865_vm0, %v6691_v9  ;;  %5071 = vmatpush3.bf16.msra.mxu0 %v5454_v15  ;;  %v5462_v15 = vld [vmem:[%s7659_s3 + $0xb0] sm:$0xff]   ;;  %vm6925_vm6 = vmpackc.low %vm7940_vm14, %vm1100_vm8 }
 0x161   : > { %2070 = vmatprep.mubr.bf16.mxu1 %v6689_v13  ;;  %5072 = vmatprep.subr.bf16.mxu0 %v5460_v28  ;;  %vm6939_vm8 = vmpackc.low %vm7940_vm14, %vm1102_vm4 }
 0x163   : > { %4355 = vmatmul.mubr.msk.bf16.gmra.mrb[56].mxu0 %vm5984_vm15, %v8055_v42 }
 0x164   : > { %2472 = vmatprep.mubr.bf16.mxu0 %v8059_v2  ;;  %5073 = vmatpush3.bf16.msra.mxu0 %v5460_v28 }
 0x165   : > { %5074 = vmatprep.subr.bf16.mxu0 %v5461_v61 }
 0x168   : > { %4289 = vmatmul.mubr.msk.bf16.gmra.mrb[60].mxu1 %vm6885_vm13, %v6717_v41  ;;  %5075 = vmatpush3.bf16.msra.mxu0 %v5461_v61  ;;  %v6913_v61 = vld [vmem:[%s7659_s3 + $0x200] sm:$0xff]  }
 0x169   : > { %2078 = vmatprep.mubr.bf16.mxu1 %v6705_v55  ;;  %5076 = vmatprep.subr.bf16.mxu0 %v5462_v15 }
 0x16b   : > { %4358 = vmatmul.mubr.msk.bf16.gmra.mrb[60].mxu0 %vm6129_vm7, %v8060_v43 }
 0x16c   : > { %2480 = vmatprep.mubr.bf16.mxu0 %v8064_v53  ;;  %5077 = vmatpush3.bf16.msra.mxu0 %v5462_v15  ;;  %v8065_v15 = vmov 0 }
 0x16d   : > { %5078 = vmatprep.subr.bf16.mxu0 %v5463_v18  ;;  %v8066_v15 = vsel %vm6925_vm6, 4294967295, %v8065_v15 }
 0x170   : > { %4292 = vmatmul.mubr.msk.bf16.gmra.mrb[64].mxu1 %vm6905_vm9, %v6736_v54  ;;  %5079 = vmatpush3.bf16.msra.mxu0 %v5463_v18  ;;  %v688_v18 = vadd.s32 240, %v5720_v45 }
 0x171   : > { %2086 = vmatprep.mubr.bf16.mxu1 %v6731_v35  ;;  %5112 = vmatprep.subr.bf16.mxu0 %v6913_v61 }
 0x172   : > { %v904_v46 = vand.u32 15, %v688_v18  ;;  %v8096_v18 = vld [vmem:[#allocation37_spill] sm:$0xff] }
 0x173   : > { %4361 = vmatmul.mubr.msk.bf16.gmra.mrb[64].mxu0 %vm6272_vm5, %v6297_v11 }
 0x174   : > { %2488 = vmatprep.mubr.bf16.mxu0 %v6311_v1 }
 0x178   : > { %4295 = vmatmul.mubr.msk.bf16.gmra.mrb[68].mxu1 %vm6925_vm6, %v6752_v58  ;;  %vm1104_vm6 = vcmp.ge.s32.totalorder %v904_v46, 1 }
 0x179   : > { %2094 = vmatprep.mubr.bf16.mxu1 %v6750_v16  ;;  %vm6952_vm9 = vmpackc.low %vm7940_vm14, %vm1104_vm6  ;;  %vm8089_vm6 = vnez %v7868_v36  ;;  %v5475_v36 = vld [vmem:[%s7661_s5 + $0x18] sm:$0xff]  }
 0x17b   : > { %4364 = vmatmul.mubr.msk.bf16.gmra.mrb[68].mxu0 %vm6420_vm2, %v6424_v14 }
 0x17c   : > { %2496 = vmatprep.mubr.bf16.mxu0 %v6430_v50 }
 0x180   : > { %4298 = vmatmul.mubr.msk.bf16.gmra.mrb[72].mxu1 %vm6939_vm8, %v6773_v29 }
 0x181   : > { %2102 = vmatprep.mubr.bf16.mxu1 %v6766_v4 }
 0x183   : > { %4367 = vmatmul.mubr.msk.bf16.gmra.mrb[72].mxu0 %vm6566_vm1, %v6532_v44 }
 0x184   : > { %2504 = vmatprep.mubr.bf16.mxu0 %v6536_v52 }
 0x188   : > { %4301 = vmatmul.mubr.msk.bf16.gmra.mrb[76].mxu1 %vm6952_vm9, %v6786_v59 }
 0x189   : > { %3011 = vmatprep.mubr.bf16.mxu1 %v8054_v24 }
 0x18b   : > { %4370 = vmatmul.mubr.msk.bf16.gmra.mrb[76].mxu0 %vm6713_vm3, %v6586_v47 }
 0x18c   : > { %2512 = vmatprep.mubr.bf16.mxu0 %v6581_v63 }
 0x190   : > { %4442 = vmatmul.mubr.msk.bf16.vlgmr.msra.gmra.mrb[80].mxu1 %vm5984_vm15, %v8055_v42  ;;  %vm8071_vm15 = vnez %v8063_v60 }
 0x191   : > { %3019 = vmatprep.mubr.bf16.mxu1 %v8059_v2 }
 0x193   : > { %4373 = vmatmul.mubr.msk.bf16.gmra.mrb[80].mxu0 %vm6808_vm10, %v6621_v12 }
 0x194   : > { %2520 = vmatprep.mubr.bf16.mxu0 %v6625_v3 }
 0x198   : > { %4445 = vmatmul.mubr.msk.bf16.gmra.mrb[84].mxu1 %vm6129_vm7, %v8060_v43  ;;  %vm8076_vm7 = vnez %v8075_v34  ;;  %v8099_v34 = vld [vmem:[#allocation39_spill] sm:$0xff] }
 0x199   : > { %3027 = vmatprep.mubr.bf16.mxu1 %v8064_v53 }
 0x19b   : > { %4376 = vmatmul.mubr.msk.bf16.gmra.mrb[84].mxu0 %vm6829_vm11, %v6652_v8 }
 0x19c   : > { %2528 = vmatprep.mubr.bf16.mxu0 %v6643_v57 }
 0x1a0   : > { %4448 = vmatmul.mubr.msk.bf16.gmra.mrb[88].mxu1 %vm6272_vm5, %v6297_v11  ;;  %vm8072_vm5 = vnez %v8066_v15  ;;  %v5465_v11 = vld [vmem:[%s7659_s3 + $0x208] sm:$0xff]  }
 0x1a1   : > { %3035 = vmatprep.mubr.bf16.mxu1 %v6311_v1  ;;  %v8074_v1 = vld [vmem:[#allocation19_spill] sm:$0xff] }
 0x1a3   : > { %4379 = vmatmul.mubr.msk.bf16.gmra.mrb[88].mxu0 %vm6844_vm12, %v6675_v30 }
 0x1a4   : > { %2536 = vmatprep.mubr.bf16.mxu0 %v6666_v23 }
 0x1a8   : > { %4451 = vmatmul.mubr.msk.bf16.gmra.mrb[92].mxu1 %vm6420_vm2, %v6424_v14  ;;  %v8077_v14 = vld [vmem:[#allocation23_spill] sm:$0xff] }
 0x1a9   : > { %3043 = vmatprep.mubr.bf16.mxu1 %v6430_v50  ;;  %v8078_v50 = vld [vmem:[#allocation21_spill] sm:$0xff] }
 0x1aa   : > { %vm8079_vm2 = vnez %v8078_v50 }
 0x1ab   : > { %4382 = vmatmul.mubr.msk.bf16.gmra.mrb[92].mxu0 %vm6865_vm0, %v6691_v9 }
 0x1ac   : > { %2544 = vmatprep.mubr.bf16.mxu0 %v6689_v13 }
 0x1b0   : > { %4454 = vmatmul.mubr.msk.bf16.gmra.mrb[96].mxu1 %vm6566_vm1, %v6532_v44  ;;  %v5466_v44 = vld [vmem:[%s7659_s3 + $0x210] sm:$0xff]   ;;  %vm8088_vm1 = vnez %v8087_v38 }
 0x1b1   : > { %3051 = vmatprep.mubr.bf16.mxu1 %v6536_v52  ;;  %v5467_v52 = vld [vmem:[%s7659_s3 + $0x218] sm:$0xff]  }
 0x1b3   : > { %4385 = vmatmul.mubr.msk.bf16.gmra.mrb[96].mxu0 %vm6885_vm13, %v6717_v41 }
 0x1b4   : > { %2552 = vmatprep.mubr.bf16.mxu0 %v6705_v55 }
 0x1b8   : > { %4457 = vmatmul.mubr.msk.bf16.gmra.mrb[100].mxu1 %vm6713_vm3, %v6586_v47  ;;  %v8083_v47 = vld [vmem:[#allocation28_spill] sm:$0xff] }
 0x1b9   : > { %3059 = vmatprep.mubr.bf16.mxu1 %v6581_v63  ;;  %v8081_v63 = vld [vmem:[#allocation25_spill] sm:$0xff] }
 0x1ba   : > { %vm8082_vm14 = vnez %v8081_v63 }
 0x1bb   : > { %4388 = vmatmul.mubr.msk.bf16.gmra.mrb[100].mxu0 %vm8071_vm15, %v6736_v54 }
 0x1bc   : > { %2560 = vmatprep.mubr.bf16.mxu0 %v6731_v35 }
 0x1c0   : > { %4460 = vmatmul.mubr.msk.bf16.gmra.mrb[104].mxu1 %vm6808_vm10, %v6621_v12  ;;  %v8084_v12 = vld [vmem:[#allocation27_spill] sm:$0xff]  ;;  %vm8097_vm10 = vnez %v8096_v18 }
 0x1c1   : > { %3067 = vmatprep.mubr.bf16.mxu1 %v6625_v3  ;;  %vm8085_vm4 = vnez %v8084_v12  ;;  %v5468_v3 = vld [vmem:[%s7659_s3 + $0x220] sm:$0xff]  }
 0x1c3   : > { %4391 = vmatmul.mubr.msk.bf16.gmra.mrb[104].mxu0 %vm8072_vm5, %v6752_v58 }
 0x1c4   : > { %2568 = vmatprep.mubr.bf16.mxu0 %v6750_v16 }
 0x1c8   : > { %4463 = vmatmul.mubr.msk.bf16.gmra.mrb[108].mxu1 %vm6829_vm11, %v6652_v8  ;;  %vm8091_vm11 = vnez %v8090_v27 }
 0x1c9   : > { %3075 = vmatprep.mubr.bf16.mxu1 %v6643_v57  ;;  %v4564_v57 = vpop.f32.mrb[16].mxu1 }
 0x1ca   : > { %v4565_v8 = vpop.f32.mrb[17].mxu1 }
 0x1cb   : > { %4394 = vmatmul.mubr.msk.bf16.gmra.mrb[108].mxu0 %vm6939_vm8, %v6773_v29 }
 0x1cc   : > { %5080 = vmatprep.mubr.bf16.mxu0 %v8073_v33 }
 0x1d0   : > { %4466 = vmatmul.mubr.msk.bf16.gmra.mrb[112].mxu1 %vm6844_vm12, %v6675_v30  ;;  %v7069_v30 = vadd.f32 %v4565_v8, %v4564_v57  ;;  %vm8100_vm12 = vnez %v8099_v34 }
 0x1d1   : > { %3083 = vmatprep.mubr.bf16.mxu1 %v6666_v23  ;;  %v5469_v23 = vld [vmem:[%s7659_s3 + $0x228] sm:$0xff]  }
 0x1d3   : > { %5081 = vmatmul.mubr.msk.bf16.vlgmr.msra.gmra.mrb[16].mxu0 %vm8076_vm7, %v8074_v1  ;;  %vm3876_vm7 = vcmask 257024  }
 0x1d4   : > { %5113 = vmatpush3.bf16.msra.mxu0 %v6913_v61  ;;  %5084 = vmatprep.mubr.msk.bf16.mxu0 %vm8079_vm2, %v8077_v14 }
 0x1d5   : > { %5114 = vmatprep.subr.bf16.mxu0 %v5465_v11 }
 0x1d8   : > { %4469 = vmatmul.mubr.msk.bf16.gmra.mrb[116].mxu1 %vm6865_vm0, %v6691_v9  ;;  %5115 = vmatpush3.bf16.msra.mxu0 %v5465_v11  ;;  %vm8098_vm0 = vnez %v7942_v10 }
 0x1d9   : > { %3091 = vmatprep.mubr.bf16.mxu1 %v6689_v13  ;;  %5116 = vmatprep.subr.bf16.mxu0 %v5466_v44  ;;  %v4567_v13 = vpop.f32.mrb[18].mxu1 }
 0x1da   : > { %v4568_v9 = vpop.f32.mrb[19].mxu1 }
 0x1db   : > { %5085 = vmatmul.mubr.msk.bf16.gmra.mrb[20].mxu0 %vm8082_vm14, %v8080_v25  ;;  %v7074_v17 = vadd.f32 %v4568_v9, %v4567_v13 }
 0x1dc   : > { %5088 = vmatprep.mubr.msk.bf16.mxu0 %vm8085_vm4, %v8083_v47  ;;  %5117 = vmatpush3.bf16.msra.mxu0 %v5466_v44 }
 0x1dd   : > { %5118 = vmatprep.subr.bf16.mxu0 %v5467_v52 }
 0x1e0   : > { %4472 = vmatmul.mubr.msk.bf16.gmra.mrb[120].mxu1 %vm6885_vm13, %v6717_v41  ;;  %5119 = vmatpush3.bf16.msra.mxu0 %v5467_v52  ;;  %v4570_v41 = vpop.f32.mrb[20].mxu1  ;;  %vm8101_vm13 = vnez %v7992_v49 }
 0x1e1   : > { %3099 = vmatprep.mubr.bf16.mxu1 %v6705_v55  ;;  %5120 = vmatprep.subr.bf16.mxu0 %v5468_v3  ;;  %v5470_v55 = vld [vmem:[%s7659_s3 + $0x230] sm:$0xff]   ;;  %v4571_v53 = vpop.f32.mrb[21].mxu1 }
 0x1e2   : > { %v7089_v32 = vadd.f32 %v4571_v53, %v4570_v41  ;;  %v4573_v24 = vpop.f32.mrb[22].mxu1 }
 0x1e3   : > { %5089 = vmatmul.mubr.msk.bf16.gmra.mrb[24].mxu0 %vm8088_vm1, %v8086_v40  ;;  %v4574_v42 = vpop.f32.mrb[23].mxu1 }
 0x1e4   : > { %5092 = vmatprep.mubr.msk.bf16.mxu0 %vm8089_vm6, %v6252_v7  ;;  %5121 = vmatpush3.bf16.msra.mxu0 %v5468_v3  ;;  %v7094_v62 = vadd.f32 %v4574_v42, %v4573_v24  ;;  %v4576_v2 = vpop.f32.mrb[24].mxu1 }
 0x1e5   : > { %5122 = vmatprep.subr.bf16.mxu0 %v5469_v23  ;;  %v4577_v43 = vpop.f32.mrb[25].mxu1 }
 0x1e6   : > { %v7103_v28 = vadd.f32 %v4577_v43, %v4576_v2  ;;  %v4579_v60 = vpop.f32.mrb[26].mxu1 }
 0x1e7   : > { %v4580_v61 = vpop.f32.mrb[27].mxu1 }
 0x1e8   : > { %4475 = vmatmul.mubr.msk.bf16.gmra.mrb[124].mxu1 %vm8071_vm15, %v6736_v54  ;;  %5123 = vmatpush3.bf16.msra.mxu0 %v5469_v23  ;;  %v8092_v54 = vld [vmem:[#allocation35_spill] sm:$0xff]  ;;  %v7108_v46 = vadd.f32 %v4580_v61, %v4579_v60  ;;  %vm8103_vm15 = vnez %v8037_v19 }
 0x1e9   : > { %3107 = vmatprep.mubr.bf16.mxu1 %v6731_v35  ;;  %5124 = vmatprep.subr.bf16.mxu0 %v5470_v55  ;;  %v8093_v35 = vld [vmem:[#allocation36_spill] sm:$0xff] }
 0x1ea   : > { %vm8094_vm3 = vnez %v8093_v35 }
 0x1eb   : > { %5093 = vmatmul.mubr.msk.bf16.gmra.mrb[28].mxu0 %vm8091_vm11, %v6299_v51 }
 0x1ec   : > { %5096 = vmatprep.mubr.msk.bf16.mxu0 %vm8094_vm3, %v8092_v54  ;;  %5125 = vmatpush3.bf16.msra.mxu0 %v5470_v55 }
 0x1ed   : > { %5126 = vmatprep.subr.bf16.mxu0 %v5471_v22 }
 0x1f0   : > { %4478 = vmatmul.mubr.msk.bf16.gmra.mrb[128].mxu1 %vm8072_vm5, %v6752_v58  ;;  %5127 = vmatpush3.bf16.msra.mxu0 %v5471_v22  ;;  %v4582_v58 = vpop.f32.mrb[28].mxu1 }
 0x1f1   : > { %3115 = vmatprep.mubr.bf16.mxu1 %v6750_v16  ;;  %v5472_v16 = vld [vmem:[%s7661_s5] sm:$0xff]   ;;  %v4583_v15 = vpop.f32.mrb[29].mxu1 }
 0x1f2   : > { %5160 = vmatprep.subr.bf16.mxu1 %v5472_v16  ;;  %v7120_v11 = vadd.f32 %v4583_v15, %v4582_v58  ;;  %v4585_v1 = vpop.f32.mrb[30].mxu1 }
 0x1f3   : > { %5097 = vmatmul.mubr.msk.bf16.gmra.mrb[32].mxu0 %vm8097_vm10, %v8095_v21  ;;  %5161 = vmatpush3.bf16.msra.mxu1 %v5472_v16  ;;  %v4586_v44 = vpop.f32.mrb[31].mxu1 }
 0x1f4   : > { %5100 = vmatprep.mubr.msk.bf16.mxu0 %vm8098_vm0, %v6479_v5  ;;  %v7128_v26 = vadd.f32 %v4586_v44, %v4585_v1 }
 0x1f8   : > { %4481 = vmatmul.mubr.msk.bf16.gmra.mrb[132].mxu1 %vm6939_vm8, %v6773_v29  ;;  %vm8102_vm8 = vnez %v8000_v6 }
 0x1f9   : > { %3123 = vmatprep.mubr.bf16.mxu1 %v6766_v4  ;;  %v4588_v4 = vpop.f32.mrb[32].mxu1 }
 0x1fa   : > { %v4589_v29 = vpop.f32.mrb[33].mxu1 }
 0x1fb   : > { %5101 = vmatmul.mubr.msk.bf16.gmra.mrb[36].mxu0 %vm8100_vm12, %v6511_v0  ;;  %v7134_v52 = vadd.f32 %v4589_v29, %v4588_v4  ;;  %v4591_v3 = vpop.f32.mrb[34].mxu1 }
 0x1fc   : > { %5104 = vmatprep.mubr.msk.bf16.mxu0 %vm8101_vm13, %v6570_v31  ;;  %v4592_v57 = vpop.f32.mrb[35].mxu1 }
 0x1fd   : > { %v7145_v45 = vadd.f32 %v4592_v57, %v4591_v3 }
 0x1fe   : > { %v4594_v8 = vpop.f32.mrb[36].mxu1 }
 0x1ff   : > { %v4595_v23 = vpop.f32.mrb[37].mxu1 }
 0x200   : > { %4484 = vmatmul.mubr.msk.bf16.gmra.mrb[136].mxu1 %vm6952_vm9, %v6786_v59  ;;  %v5473_v59 = vld [vmem:[%s7661_s5 + $0x8] sm:$0xff]   ;;  %v7148_v13 = vadd.f32 %v4595_v23, %v4594_v8  ;;  %v4597_v9 = vpop.f32.mrb[38].mxu1  ;;  %vm8104_vm9 = vnez %v8040_v20 }
 0x201   : > { %3131 = vmatprep.mubr.bf16.mxu1 %v8073_v33  ;;  %5162 = vmatprep.subr.bf16.mxu1 %v5473_v59  ;;  %v4598_v55 = vpop.f32.mrb[39].mxu1 }
 0x202   : > { %5163 = vmatpush3.bf16.msra.mxu1 %v5473_v59  ;;  %v7156_v41 = vadd.f32 %v4598_v55, %v4597_v9 }
 0x203   : > { %5105 = vmatmul.mubr.msk.bf16.gmra.mrb[40].mxu0 %vm8102_vm8, %v6572_v39 }
 0x204   : > { %5108 = vmatprep.mubr.msk.bf16.mxu0 %vm8103_vm15, %v6603_v56 }
 0x208   : > { %3132 = vmatmul.mubr.bf16.gmra.mrb[140].mxu1 %v8073_v33 }
 0x20b   : > { %5109 = vmatmul.mubr.msk.bf16.gmra.mrb[44].mxu0 %vm8104_vm9, %v6619_v48 }
 0x20c   : > { %5128 = vmatprep.mubr.msk.bf16.mxu0 %vm8079_vm2, %v8077_v14  ;;  %v5474_v14 = vld [vmem:[%s7661_s5 + $0x10] sm:$0xff]  }
 0x20d   : > { %5164 = vmatprep.subr.bf16.mxu1 %v5474_v14 }
 0x20e   : > { %5165 = vmatpush3.bf16.msra.mxu1 %v5474_v14 }
 0x20f   : > { %v4600_v53 = vpop.f32.mrb[40].mxu1  ;;  %5166 = vmatprep.subr.bf16.mxu1 %v5475_v36 }
 0x210   : > { %v4601_v22 = vpop.f32.mrb[41].mxu1 }
 0x211   : > { %v7158_v24 = vadd.f32 %v4601_v22, %v4600_v53  ;;  %v4603_v42 = vpop.f32.mrb[42].mxu1 }
 0x212   : > { %v4604_v2 = vpop.f32.mrb[43].mxu1  ;;  %5167 = vmatpush3.bf16.msra.mxu1 %v5475_v36 }
 0x213   : > { %5129 = vmatmul.mubr.msk.bf16.vlgmr.msra.gmra.mrb[16].mxu0 %vm8082_vm14, %v8080_v25  ;;  %v7169_v50 = vadd.f32 %v4604_v2, %v4603_v42 }
 0x214   : > { %5132 = vmatprep.mubr.msk.bf16.mxu0 %vm8085_vm4, %v8083_v47 }
 0x21b   : > { %v4606_v43 = vpop.f32.mrb[44].mxu1  ;;  %5133 = vmatmul.mubr.msk.bf16.gmra.mrb[20].mxu0 %vm8088_vm1, %v8086_v40 }
 0x21c   : > { %v4607_v60 = vpop.f32.mrb[45].mxu1  ;;  %5136 = vmatprep.mubr.msk.bf16.mxu0 %vm8089_vm6, %v6252_v7 }
 0x21d   : > { %v7171_v61 = vadd.f32 %v4607_v60, %v4606_v43  ;;  %v4609_v16 = vpop.f32.mrb[46].mxu1 }
 0x21e   : > { %v4610_v25 = vpop.f32.mrb[47].mxu1 }
 0x21f   : > { %v7179_v63 = vadd.f32 %v4610_v25, %v4609_v16 }
 0x223   : > { %v4612_v47 = vpop.f32.mrb[48].mxu1  ;;  %5137 = vmatmul.mubr.msk.bf16.gmra.mrb[24].mxu0 %vm8091_vm11, %v6299_v51 }
 0x224   : > { %v4613_v12 = vpop.f32.mrb[49].mxu1  ;;  %5140 = vmatprep.mubr.msk.bf16.mxu0 %vm8094_vm3, %v8092_v54 }
 0x225   : > { %v7181_v58 = vadd.f32 %v4613_v12, %v4612_v47  ;;  %v4615_v15 = vpop.f32.mrb[50].mxu1 }
 0x226   : > { %v4616_v1 = vpop.f32.mrb[51].mxu1  ;;  %v4700_v40 = vpop.f32.mrb[48].mxu0 }
 0x227   : > { %v7192_v7 = vadd.f32 %v4616_v1, %v4615_v15  ;;  %v4701_v38 = vpop.f32.mrb[49].mxu0 }
 0x228   : > { %v4702_v44 = vadd.f32 %v4701_v38, %v4700_v40  ;;  %v4703_v4 = vpop.f32.mrb[50].mxu0 }
 0x229   : > { %v4704_v27 = vpop.f32.mrb[51].mxu0 }
 0x22a   : > { %v7195_v51 = vadd.f32 %v4702_v44, %v7069_v30  ;;  %v4705_v35 = vadd.f32 %v4704_v27, %v4703_v4 }
 0x22b   : > { %v4618_v29 = vpop.f32.mrb[52].mxu1  ;;  %5141 = vmatmul.mubr.msk.bf16.gmra.mrb[28].mxu0 %vm8097_vm10, %v8095_v21 }
 0x22c   : > { %v4619_v3 = vpop.f32.mrb[53].mxu1  ;;  %v7203_v59 = vadd.f32 %v4705_v35, %v7074_v17  ;;  %5144 = vmatprep.mubr.msk.bf16.mxu0 %vm8098_vm0, %v6479_v5  ;;  %v5476_v5 = vld [vmem:[%s7661_s5 + $0x20] sm:$0xff]  }
 0x22d   : > { %v7197_v54 = vadd.f32 %v4619_v3, %v4618_v29  ;;  %v4621_v57 = vpop.f32.mrb[54].mxu1  ;;  %5168 = vmatprep.subr.bf16.mxu1 %v5476_v5 }
 0x22e   : > { %v4622_v8 = vpop.f32.mrb[55].mxu1  ;;  %v4706_v30 = vpop.f32.mrb[52].mxu0  ;;  %5169 = vmatpush3.bf16.msra.mxu1 %v5476_v5 }
 0x22f   : > { %v7208_v23 = vadd.f32 %v4622_v8, %v4621_v57  ;;  %v4707_v9 = vpop.f32.mrb[53].mxu0 }
 0x230   : > { %v4708_v55 = vadd.f32 %v4707_v9, %v4706_v30  ;;  %v4709_v53 = vpop.f32.mrb[54].mxu0 }
 0x231   : > { %v4710_v42 = vpop.f32.mrb[55].mxu0 }
 0x232   : > { %v7211_v2 = vadd.f32 %v4708_v55, %v7089_v32  ;;  %v4711_v18 = vadd.f32 %v4710_v42, %v4709_v53 }
 0x233   : > { %v4624_v22 = vpop.f32.mrb[56].mxu1  ;;  %5145 = vmatmul.mubr.msk.bf16.gmra.mrb[32].mxu0 %vm8100_vm12, %v6511_v0 }
 0x234   : > { %v4625_v21 = vpop.f32.mrb[57].mxu1  ;;  %v7222_v10 = vadd.f32 %v4711_v18, %v7094_v62  ;;  %5148 = vmatprep.mubr.msk.bf16.mxu0 %vm8101_vm13, %v6570_v31 }
 0x235   : > { %v7213_v17 = vadd.f32 %v4625_v21, %v4624_v22  ;;  %v4627_v14 = vpop.f32.mrb[58].mxu1 }
 0x236   : > { %v4628_v43 = vpop.f32.mrb[59].mxu1  ;;  %v4712_v60 = vpop.f32.mrb[56].mxu0 }
 0x237   : > { %v7227_v32 = vadd.f32 %v4628_v43, %v4627_v14  ;;  %v4713_v16 = vpop.f32.mrb[57].mxu0 }
 0x238   : > { %v4714_v34 = vadd.f32 %v4713_v16, %v4712_v60  ;;  %v4715_v0 = vpop.f32.mrb[58].mxu0 }
 0x239   : > { %v4716_v47 = vpop.f32.mrb[59].mxu0 }
 0x23a   : > { %v7230_v12 = vadd.f32 %v4714_v34, %v7103_v28  ;;  %v4717_v15 = vadd.f32 %v4716_v47, %v4715_v0 }
 0x23b   : > { %v4630_v25 = vpop.f32.mrb[60].mxu1  ;;  %5149 = vmatmul.mubr.msk.bf16.gmra.mrb[36].mxu0 %vm8102_vm8, %v6572_v39 }
 0x23c   : > { %v4631_v62 = vpop.f32.mrb[61].mxu1  ;;  %v7238_v31 = vadd.f32 %v4717_v15, %v7108_v46  ;;  %5152 = vmatprep.mubr.msk.bf16.mxu0 %vm8103_vm15, %v6603_v56  ;;  %v5477_v56 = vld [vmem:[%s7661_s5 + $0x28] sm:$0xff]  }
 0x23d   : > { %v7232_v1 = vadd.f32 %v4631_v62, %v4630_v25  ;;  %v4633_v36 = vpop.f32.mrb[62].mxu1  ;;  %5170 = vmatprep.subr.bf16.mxu1 %v5477_v56 }
 0x23e   : > { %v4634_v49 = vpop.f32.mrb[63].mxu1  ;;  %v4718_v28 = vpop.f32.mrb[60].mxu0  ;;  %5171 = vmatpush3.bf16.msra.mxu1 %v5477_v56 }
 0x23f   : > { %v7243_v40 = vadd.f32 %v4634_v49, %v4633_v36  ;;  %v4719_v38 = vpop.f32.mrb[61].mxu0 }
 0x240   : > { %v4720_v44 = vadd.f32 %v4719_v38, %v4718_v28  ;;  %v4721_v4 = vpop.f32.mrb[62].mxu0 }
 0x241   : > { %v4722_v27 = vpop.f32.mrb[63].mxu0 }
 0x242   : > { %v7246_v3 = vadd.f32 %v4720_v44, %v7120_v11  ;;  %v4723_v6 = vadd.f32 %v4722_v27, %v4721_v4  ;;  %v8105_v11 = vld [vmem:[#allocation40_spill] sm:$0xff] }
 0x243   : > { %v4636_v29 = vpop.f32.mrb[64].mxu1  ;;  %5153 = vmatmul.mubr.msk.bf16.gmra.mrb[40].mxu0 %vm8104_vm9, %v6619_v48  ;;  %vm8106_vm5 = vnez %v8105_v11 }
 0x244   : > { %v4637_v39 = vpop.f32.mrb[65].mxu1  ;;  %v7257_v19 = vadd.f32 %v4723_v6, %v7128_v26  ;;  %5156 = vmatprep.mubr.msk.bf16.mxu0 %vm8106_vm5, %v6629_v37 }
 0x245   : > { %v7248_v46 = vadd.f32 %v4637_v39, %v4636_v29  ;;  %v4639_v35 = vpop.f32.mrb[66].mxu1 }
 0x246   : > { %v4640_v57 = vpop.f32.mrb[67].mxu1  ;;  %v4724_v30 = vpop.f32.mrb[64].mxu0 }
 0x247   : > { %v7262_v8 = vadd.f32 %v4640_v57, %v4639_v35  ;;  %v4725_v9 = vpop.f32.mrb[65].mxu0 }
 0x248   : > { %v4726_v20 = vadd.f32 %v4725_v9, %v4724_v30  ;;  %v4727_v48 = vpop.f32.mrb[66].mxu0  ;;  %v5479_v9 = vld [vmem:[%s7661_s5 + $0x38] sm:$0xff]  }
 0x249   : > { %v4728_v53 = vpop.f32.mrb[67].mxu0 }
 0x24a   : > { %v7265_v22 = vadd.f32 %v4726_v20, %v7134_v52  ;;  %v4729_v42 = vadd.f32 %v4728_v53, %v4727_v48 }
 0x24b   : > { %v4642_v55 = vpop.f32.mrb[68].mxu1  ;;  %5157 = vmatmul.mubr.bf16.gmra.mrb[44].mxu0 %v8073_v33 }
 0x24c   : > { %v4643_v26 = vpop.f32.mrb[69].mxu1  ;;  %v7271_v37 = vadd.f32 %v4729_v42, %v7145_v45  ;;  %v5478_v45 = vld [vmem:[%s7661_s5 + $0x30] sm:$0xff]  }
 0x24d   : > { %v7267_v21 = vadd.f32 %v4643_v26, %v4642_v55  ;;  %v4645_v18 = vpop.f32.mrb[70].mxu1  ;;  %5172 = vmatprep.subr.bf16.mxu1 %v5478_v45 }
 0x24e   : > { %v4646_v14 = vpop.f32.mrb[71].mxu1  ;;  %v4730_v43 = vpop.f32.mrb[68].mxu0  ;;  %5173 = vmatpush3.bf16.msra.mxu1 %v5478_v45 }
 0x24f   : > { %v7273_v5 = vadd.f32 %v4646_v14, %v4645_v18  ;;  %v4731_v60 = vpop.f32.mrb[69].mxu0  ;;  %5174 = vmatprep.subr.bf16.mxu1 %v5479_v9 }
 0x250   : > { %v4732_v16 = vadd.f32 %v4731_v60, %v4730_v43  ;;  %v4733_v34 = vpop.f32.mrb[70].mxu0 }
 0x251   : > { %v4734_v52 = vpop.f32.mrb[71].mxu0 }
 0x252   : > { %v7276_v25 = vadd.f32 %v4732_v16, %v7148_v13  ;;  %v4735_v62 = vadd.f32 %v4734_v52, %v4733_v34  ;;  %5175 = vmatpush3.bf16.msra.mxu1 %v5479_v9 }
 0x253   : > { %v4648_v0 = vpop.f32.mrb[72].mxu1 }
 0x254   : > { %v4649_v47 = vpop.f32.mrb[73].mxu1  ;;  %v7284_v36 = vadd.f32 %v4735_v62, %v7156_v41 }
 0x255   : > { %v7278_v15 = vadd.f32 %v4649_v47, %v4648_v0  ;;  %v4651_v33 = vpop.f32.mrb[74].mxu1 }
 0x256   : > { %v4652_v49 = vpop.f32.mrb[75].mxu1  ;;  %v4736_v38 = vpop.f32.mrb[72].mxu0 }
 0x257   : > { %v7286_v28 = vadd.f32 %v4652_v49, %v4651_v33  ;;  %v4737_v13 = vpop.f32.mrb[73].mxu0 }
 0x258   : > { %v4738_v44 = vadd.f32 %v4737_v13, %v4736_v38  ;;  %v4739_v4 = vpop.f32.mrb[74].mxu0 }
 0x259   : > { %v4740_v27 = vpop.f32.mrb[75].mxu0 }
 0x25a   : > { %v7289_v39 = vadd.f32 %v4738_v44, %v7158_v24  ;;  %v4741_v35 = vadd.f32 %v4740_v27, %v4739_v4 }
 0x25b   : > { %v4654_v29 = vpop.f32.mrb[76].mxu1 }
 0x25c   : > { %v4655_v6 = vpop.f32.mrb[77].mxu1  ;;  %v7294_v57 = vadd.f32 %v4741_v35, %v7169_v50 }
 0x25d   : > { %v7291_v56 = vadd.f32 %v4655_v6, %v4654_v29  ;;  %v4657_v41 = vpop.f32.mrb[78].mxu1 }
 0x25e   : > { %v4658_v11 = vpop.f32.mrb[79].mxu1  ;;  %v4742_v20 = vpop.f32.mrb[76].mxu0 }
 0x25f   : > { %v7296_v30 = vadd.f32 %v4658_v11, %v4657_v41  ;;  %v4743_v48 = vpop.f32.mrb[77].mxu0 }
 0x260   : > { %v4744_v24 = vadd.f32 %v4743_v48, %v4742_v20  ;;  %v4745_v55 = vpop.f32.mrb[78].mxu0 }
 0x261   : > { %v4746_v26 = vpop.f32.mrb[79].mxu0 }
 0x262   : > { %v7302_v42 = vadd.f32 %v4744_v24, %v7171_v61  ;;  %v4747_v50 = vadd.f32 %v4746_v26, %v4745_v55 }
 0x263   : > { %v4836_v53 = vpop.f32.mrb[80].mxu1 }
 0x264   : > { %v4837_v18 = vpop.f32.mrb[81].mxu1  ;;  %v7305_v60 = vadd.f32 %v4747_v50, %v7179_v63 }
 0x265   : > { %v4838_v14 = vadd.f32 %v4837_v18, %v4836_v53  ;;  %v4839_v43 = vpop.f32.mrb[82].mxu1 }
 0x266   : > { %v4840_v16 = vpop.f32.mrb[83].mxu1  ;;  %v4748_v52 = vpop.f32.mrb[80].mxu0 }
 0x267   : > { %v4841_v34 = vadd.f32 %v4840_v16, %v4839_v43  ;;  %v7308_v0 = vadd.f32 %v7195_v51, %v4838_v14  ;;  %v4749_v47 = vpop.f32.mrb[81].mxu0 }
 0x268   : > { %v4750_v33 = vadd.f32 %v4749_v47, %v4748_v52  ;;  %v4751_v61 = vpop.f32.mrb[82].mxu0 }
 0x269   : > { %v7311_v62 = vadd.f32 %v7203_v59, %v4841_v34  ;;  %v4752_v49 = vpop.f32.mrb[83].mxu0 }
 0x26a   : > { %v7314_v38 = vadd.f32 %v4750_v33, %v7181_v58  ;;  %v4753_v13 = vadd.f32 %v4752_v49, %v4751_v61 }
 0x26b   : > { %v4842_v45 = vpop.f32.mrb[84].mxu1 }
 0x26c   : > { %v4843_v63 = vpop.f32.mrb[85].mxu1  ;;  %v7317_v29 = vadd.f32 %v4753_v13, %v7192_v7 }
 0x26d   : > { %v4844_v44 = vadd.f32 %v4843_v63, %v4842_v45  ;;  %v4845_v4 = vpop.f32.mrb[86].mxu1 }
 0x26e   : > { %v4846_v51 = vpop.f32.mrb[87].mxu1  ;;  %v4754_v59 = vpop.f32.mrb[84].mxu0 }
 0x26f   : > { %v4847_v27 = vadd.f32 %v4846_v51, %v4845_v4  ;;  %v7320_v6 = vadd.f32 %v7211_v2, %v4844_v44  ;;  %v4755_v35 = vpop.f32.mrb[85].mxu0 }
 0x270   : > { %v4756_v11 = vadd.f32 %v4755_v35, %v4754_v59  ;;  %v4757_v58 = vpop.f32.mrb[86].mxu0 }
 0x271   : > { %v7323_v41 = vadd.f32 %v7222_v10, %v4847_v27  ;;  %v4758_v20 = vpop.f32.mrb[87].mxu0 }
 0x272   : > { %v7326_v48 = vadd.f32 %v4756_v11, %v7197_v54  ;;  %v4759_v24 = vadd.f32 %v4758_v20, %v4757_v58 }
 0x273   : > { %v4848_v9 = vpop.f32.mrb[88].mxu1 }
 0x274   : > { %v4849_v7 = vpop.f32.mrb[89].mxu1  ;;  %v7329_v26 = vadd.f32 %v4759_v24, %v7208_v23 }
 0x275   : > { %v4850_v55 = vadd.f32 %v4849_v7, %v4848_v9  ;;  %v4851_v53 = vpop.f32.mrb[90].mxu1 }
 0x276   : > { %v4852_v2 = vpop.f32.mrb[91].mxu1  ;;  %v4760_v10 = vpop.f32.mrb[88].mxu0 }
 0x277   : > { %v4853_v50 = vadd.f32 %v4852_v2, %v4851_v53  ;;  %v7332_v18 = vadd.f32 %v7230_v12, %v4850_v55  ;;  %v4761_v14 = vpop.f32.mrb[89].mxu0 }
 0x278   : > { %v4762_v16 = vadd.f32 %v4761_v14, %v4760_v10  ;;  %v4763_v54 = vpop.f32.mrb[90].mxu0 }
 0x279   : > { %v7335_v43 = vadd.f32 %v7238_v31, %v4853_v50  ;;  %v4764_v52 = vpop.f32.mrb[91].mxu0 }
 0x27a   : > { %v7338_v47 = vadd.f32 %v4762_v16, %v7213_v17  ;;  %v4765_v33 = vadd.f32 %v4764_v52, %v4763_v54 }
 0x27b   : > { %v4854_v34 = vpop.f32.mrb[92].mxu1 }
 0x27c   : > { %v4855_v23 = vpop.f32.mrb[93].mxu1  ;;  %v7341_v49 = vadd.f32 %v4765_v33, %v7227_v32 }
 0x27d   : > { %v4856_v61 = vadd.f32 %v4855_v23, %v4854_v34  ;;  %v4857_v45 = vpop.f32.mrb[94].mxu1 }
 0x27e   : > { %v4858_v12 = vpop.f32.mrb[95].mxu1  ;;  %v4766_v31 = vpop.f32.mrb[92].mxu0 }
 0x27f   : > { %v4859_v13 = vadd.f32 %v4858_v12, %v4857_v45  ;;  %v7344_v63 = vadd.f32 %v7246_v3, %v4856_v61  ;;  %v4767_v44 = vpop.f32.mrb[93].mxu0 }
 0x280   : > { %v4768_v51 = vadd.f32 %v4767_v44, %v4766_v31  ;;  %v4769_v17 = vpop.f32.mrb[94].mxu0 }
 0x281   : > { %v7347_v4 = vadd.f32 %v7257_v19, %v4859_v13  ;;  %v4770_v59 = vpop.f32.mrb[95].mxu0 }
 0x282   : > { %v7350_v35 = vadd.f32 %v4768_v51, %v7232_v1  ;;  %v4771_v11 = vadd.f32 %v4770_v59, %v4769_v17 }
 0x283   : > { %v4860_v27 = vpop.f32.mrb[96].mxu1 }
 0x284   : > { %v4861_v32 = vpop.f32.mrb[97].mxu1  ;;  %v7353_v20 = vadd.f32 %v4771_v11, %v7243_v40 }
 0x285   : > { %v4862_v58 = vadd.f32 %v4861_v32, %v4860_v27  ;;  %v4863_v9 = vpop.f32.mrb[98].mxu1 }
 0x286   : > { %v4864_v3 = vpop.f32.mrb[99].mxu1  ;;  %v4772_v19 = vpop.f32.mrb[96].mxu0 }
 0x287   : > { %v4865_v24 = vadd.f32 %v4864_v3, %v4863_v9  ;;  %v7356_v7 = vadd.f32 %v7265_v22, %v4862_v58  ;;  %v4773_v55 = vpop.f32.mrb[97].mxu0 }
 0x288   : > { %v4774_v2 = vadd.f32 %v4773_v55, %v4772_v19  ;;  %v4775_v1 = vpop.f32.mrb[98].mxu0 }
 0x289   : > { %v7359_v53 = vadd.f32 %v7271_v37, %v4865_v24  ;;  %v4776_v10 = vpop.f32.mrb[99].mxu0 }
 0x28a   : > { %v7362_v14 = vadd.f32 %v4774_v2, %v7248_v46  ;;  %v4777_v16 = vadd.f32 %v4776_v10, %v4775_v1 }
 0x28b   : > { %v4866_v50 = vpop.f32.mrb[100].mxu1 }
 0x28c   : > { %v4867_v40 = vpop.f32.mrb[101].mxu1  ;;  %v7365_v52 = vadd.f32 %v4777_v16, %v7262_v8 }
 0x28d   : > { %v4868_v54 = vadd.f32 %v4867_v40, %v4866_v50  ;;  %v4869_v34 = vpop.f32.mrb[102].mxu1 }
 0x28e   : > { %v4870_v22 = vpop.f32.mrb[103].mxu1  ;;  %v4778_v37 = vpop.f32.mrb[100].mxu0 }
 0x28f   : > { %v4871_v33 = vadd.f32 %v4870_v22, %v4869_v34  ;;  %v7368_v23 = vadd.f32 %v7276_v25, %v4868_v54  ;;  %v4779_v61 = vpop.f32.mrb[101].mxu0 }
 0x290   : > { %v4780_v12 = vadd.f32 %v4779_v61, %v4778_v37  ;;  %v4781_v46 = vpop.f32.mrb[102].mxu0 }
 0x291   : > { %v7371_v45 = vadd.f32 %v7284_v36, %v4871_v33  ;;  %v4782_v31 = vpop.f32.mrb[103].mxu0 }
 0x292   : > { %v7374_v44 = vadd.f32 %v4780_v12, %v7267_v21  ;;  %v4783_v51 = vadd.f32 %v4782_v31, %v4781_v46 }
 0x293   : > { %v4872_v13 = vpop.f32.mrb[104].mxu1 }
 0x294   : > { %v4873_v8 = vpop.f32.mrb[105].mxu1  ;;  %v7377_v59 = vadd.f32 %v4783_v51, %v7273_v5 }
 0x295   : > { %v4874_v17 = vadd.f32 %v4873_v8, %v4872_v13  ;;  %v4875_v27 = vpop.f32.mrb[106].mxu1 }
 0x296   : > { %v4876_v25 = vpop.f32.mrb[107].mxu1  ;;  %v4784_v36 = vpop.f32.mrb[104].mxu0 }
 0x297   : > { %v4877_v11 = vadd.f32 %v4876_v25, %v4875_v27  ;;  %v7380_v32 = vadd.f32 %v7289_v39, %v4874_v17  ;;  %v4785_v58 = vpop.f32.mrb[105].mxu0 }
 0x298   : > { %v4786_v3 = vadd.f32 %v4785_v58, %v4784_v36  ;;  %v4787_v21 = vpop.f32.mrb[106].mxu0 }
 0x299   : > { %v7383_v9 = vadd.f32 %v7294_v57, %v4877_v11  ;;  %v4788_v19 = vpop.f32.mrb[107].mxu0 }
 0x29a   : > { %v7386_v55 = vadd.f32 %v4786_v3, %v7278_v15  ;;  %v4789_v2 = vadd.f32 %v4788_v19, %v4787_v21 }
 0x29b   : > { %v4878_v24 = vpop.f32.mrb[108].mxu1 }
 0x29c   : > { %v4879_v5 = vpop.f32.mrb[109].mxu1  ;;  %v7389_v10 = vadd.f32 %v4789_v2, %v7286_v28 }
 0x29d   : > { %v4880_v1 = vadd.f32 %v4879_v5, %v4878_v24  ;;  %v4881_v50 = vpop.f32.mrb[110].mxu1 }
 0x29e   : > { %v4882_v39 = vpop.f32.mrb[111].mxu1  ;;  %v4790_v57 = vpop.f32.mrb[108].mxu0 }
 0x29f   : > { %v4883_v16 = vadd.f32 %v4882_v39, %v4881_v50  ;;  %v7392_v40 = vadd.f32 %v7302_v42, %v4880_v1  ;;  %v4791_v54 = vpop.f32.mrb[109].mxu0 }
 0x2a0   : > { %v4792_v22 = vadd.f32 %v4791_v54, %v4790_v57  ;;  %v4793_v15 = vpop.f32.mrb[110].mxu0 }
 0x2a1   : > { %v7395_v34 = vadd.f32 %v7305_v60, %v4883_v16  ;;  %v4794_v37 = vpop.f32.mrb[111].mxu0 }
 0x2a2   : > { %v7398_v61 = vadd.f32 %v4792_v22, %v7291_v56  ;;  %v4795_v12 = vadd.f32 %v4794_v37, %v4793_v15 }
 0x2a3   : > { %v4884_v33 = vpop.f32.mrb[112].mxu1 }
 0x2a4   : > { %v4885_v28 = vpop.f32.mrb[113].mxu1  ;;  %v5302_v31 = vadd.f32 %v4795_v12, %v7296_v30 }
 0x2a5   : > { %v4886_v46 = vadd.f32 %v4885_v28, %v4884_v33  ;;  %v4887_v13 = vpop.f32.mrb[114].mxu1 }
 0x2a6   : > { %v4888_v42 = vpop.f32.mrb[115].mxu1 }
 0x2a7   : > { %v4889_v51 = vadd.f32 %v4888_v42, %v4887_v13  ;;  %v7402_v8 = vadd.f32 %v7314_v38, %v4886_v46 }
 0x2a9   : > { %v7405_v60 = vadd.f32 %v7317_v29, %v4889_v51 }
 0x2ab   : > { %v4890_v17 = vpop.f32.mrb[116].mxu1 }
 0x2ac   : > { %v4891_v27 = vpop.f32.mrb[117].mxu1 }
 0x2ad   : > { %v4892_v25 = vadd.f32 %v4891_v27, %v4890_v17  ;;  %v4893_v11 = vpop.f32.mrb[118].mxu1 }
 0x2ae   : > { %v4894_v56 = vpop.f32.mrb[119].mxu1 }
 0x2af   : > { %v4895_v36 = vadd.f32 %v4894_v56, %v4893_v11  ;;  %v7408_v58 = vadd.f32 %v7326_v48, %v4892_v25 }
 0x2b1   : > { %v7411_v3 = vadd.f32 %v7329_v26, %v4895_v36 }
 0x2b3   : > { %v4896_v30 = vpop.f32.mrb[120].mxu1 }
 0x2b4   : > { %v4897_v21 = vpop.f32.mrb[121].mxu1 }
 0x2b5   : > { %v4898_v24 = vadd.f32 %v4897_v21, %v4896_v30  ;;  %v4899_v38 = vpop.f32.mrb[122].mxu1 }
 0x2b6   : > { %v4900_v19 = vpop.f32.mrb[123].mxu1 }
 0x2b7   : > { %v4901_v2 = vadd.f32 %v4900_v19, %v4899_v38  ;;  %v7414_v29 = vadd.f32 %v7338_v47, %v4898_v24 }
 0x2b9   : > { %v7417_v5 = vadd.f32 %v7341_v49, %v4901_v2 }
 0x2bb   : > { %v4902_v1 = vpop.f32.mrb[124].mxu1 }
 0x2bc   : > { %v4903_v50 = vpop.f32.mrb[125].mxu1 }
 0x2bd   : > { %v4904_v39 = vadd.f32 %v4903_v50, %v4902_v1  ;;  %v4905_v48 = vpop.f32.mrb[126].mxu1 }
 0x2be   : > { %v4906_v16 = vpop.f32.mrb[127].mxu1 }
 0x2bf   : > { %v4907_v57 = vadd.f32 %v4906_v16, %v4905_v48  ;;  %v7420_v26 = vadd.f32 %v7350_v35, %v4904_v39 }
 0x2c1   : > { %v7423_v54 = vadd.f32 %v7353_v20, %v4907_v57 }
 0x2c3   : > { %v4908_v22 = vpop.f32.mrb[128].mxu1 }
 0x2c4   : > { %v4909_v15 = vpop.f32.mrb[129].mxu1 }
 0x2c5   : > { %v4910_v33 = vadd.f32 %v4909_v15, %v4908_v22  ;;  %v4911_v47 = vpop.f32.mrb[130].mxu1 }
 0x2c6   : > { %v4912_v37 = vpop.f32.mrb[131].mxu1 }
 0x2c7   : > { %v4913_v12 = vadd.f32 %v4912_v37, %v4911_v47  ;;  %v7426_v49 = vadd.f32 %v7362_v14, %v4910_v33 }
 0x2c9   : > { %v7429_v28 = vadd.f32 %v7365_v52, %v4913_v12 }
 0x2cb   : > { %v4914_v46 = vpop.f32.mrb[132].mxu1 }
 0x2cc   : > { %v4915_v13 = vpop.f32.mrb[133].mxu1 }
 0x2cd   : > { %v4916_v42 = vadd.f32 %v4915_v13, %v4914_v46  ;;  %v4917_v35 = vpop.f32.mrb[134].mxu1 }
 0x2ce   : > { %v4918_v51 = vpop.f32.mrb[135].mxu1 }
 0x2cf   : > { %v4919_v17 = vadd.f32 %v4918_v51, %v4917_v35  ;;  %v7432_v20 = vadd.f32 %v7374_v44, %v4916_v42 }
 0x2d1   : > { %v7435_v27 = vadd.f32 %v7377_v59, %v4919_v17 }
 0x2d3   : > { %v4920_v25 = vpop.f32.mrb[136].mxu1 }
 0x2d4   : > { %v4921_v11 = vpop.f32.mrb[137].mxu1 }
 0x2d5   : > { %v4922_v56 = vadd.f32 %v4921_v11, %v4920_v25  ;;  %v4923_v14 = vpop.f32.mrb[138].mxu1 }
 0x2d6   : > { %v4924_v36 = vpop.f32.mrb[139].mxu1 }
 0x2d7   : > { %v4925_v30 = vadd.f32 %v4924_v36, %v4923_v14  ;;  %v7438_v52 = vadd.f32 %v7386_v55, %v4922_v56  ;;  %v7451_v55 = vld [vmem:[%s7660_s4] ss:$0 sm:$0xff] }
 0x2d9   : > { %v7441_v21 = vadd.f32 %v7389_v10, %v4925_v30 }
 0x2db   : > { %v4926_v24 = vpop.f32.mrb[140].mxu1 }
 0x2dc   : > { %v4927_v38 = vpop.f32.mrb[141].mxu1 }
 0x2dd   : > { %v4928_v19 = vadd.f32 %v4927_v38, %v4926_v24  ;;  %v4929_v44 = vpop.f32.mrb[142].mxu1 }
 0x2de   : > { %v4930_v2 = vpop.f32.mrb[143].mxu1 }
 0x2df   : > { %v4931_v1 = vadd.f32 %v4930_v2, %v4929_v44  ;;  %v7444_v59 = vadd.f32 %v7398_v61, %v4928_v19 }
 0x2e1   : > { %v7446_v50 = vadd.f32 %v5302_v31, %v4931_v1 }
 0x2e6   : > { %v5130_v39 = vpop.f32.mrb[16].mxu0 }
 0x2e7   : > { %v5214_v10 = vadd.f32 %v7320_v6, %v5130_v39  ;;  %v3174_v48 = vpop.f32.mrb[17].mxu0 }
 0x2e8   : > { %v5217_v16 = vadd.f32 %v7308_v0, %v3174_v48  ;;  %v5131_v57 = vpop.f32.mrb[18].mxu0 }
 0x2e9   : > { %v3342_v22 = vadd.f32 %v5214_v10, %v7451_v55  ;;  %v5220_v15 = vadd.f32 %v7323_v41, %v5131_v57  ;;  %v3177_v61 = vpop.f32.mrb[19].mxu0 }
 0x2ea   : > { %v3340_v31 = vadd.f32 %v5217_v16, %v7451_v55  ;;  %v5223_v33 = vadd.f32 %v7311_v62, %v3177_v61 }
 0x2eb   : > { %v3343_v47 = vadd.f32 %v5220_v15, %v7451_v55  ;;  %v3374_v12 = vmax.f32 %v3342_v22, 0.0 }
 0x2ec   : > { %v3341_v37 = vadd.f32 %v5223_v33, %v7451_v55  ;;  %v3372_v6 = vmax.f32 %v3340_v31, 0.0 }
 0x2ed   : > { %v3375_v46 = vmax.f32 %v3343_v47, 0.0 }
 0x2ee   : > { %v3373_v13 = vmax.f32 %v3341_v37, 0.0  ;;  %v5134_v42 = vpop.f32.mrb[20].mxu0 }
 0x2ef   : > { %v3405_v0 = vpack.c.bf16 %v3375_v46, %v3374_v12  ;;  %v5226_v35 = vadd.f32 %v7344_v63, %v5134_v42  ;;  %v3190_v51 = vpop.f32.mrb[21].mxu0 }
 0x2f0   : > { %v5229_v41 = vadd.f32 %v7332_v18, %v3190_v51  ;;  %v5135_v17 = vpop.f32.mrb[22].mxu0  ;;  %v3404_v25 = vpack.c.bf16 %v3373_v13, %v3372_v6 }
 0x2f1   : > { %v3346_v11 = vadd.f32 %v5226_v35, %v7451_v55  ;;  %v5232_v62 = vadd.f32 %v7347_v4, %v5135_v17  ;;  %v3193_v56 = vpop.f32.mrb[23].mxu0 }
 0x2f2   : > { %v3344_v14 = vadd.f32 %v5229_v41, %v7451_v55  ;;  %v5235_v36 = vadd.f32 %v7335_v43, %v3193_v56  ;;  %5176 = vmatprep.mubr.bf16.mxu1 %v3404_v25 }
 0x2f3   : > { %v3347_v30 = vadd.f32 %v5232_v62, %v7451_v55  ;;  %5177 = vmatmul.mubr.bf16.vlgmr.msra.gmra.mrb[144].mxu1 %v3405_v0  ;;  %v3378_v24 = vmax.f32 %v3346_v11, 0.0 }
 0x2f4   : > { %v3345_v63 = vadd.f32 %v5235_v36, %v7451_v55  ;;  %v3376_v18 = vmax.f32 %v3344_v14, 0.0 }
 0x2f5   : > { %v3379_v38 = vmax.f32 %v3347_v30, 0.0 }
 0x2f6   : > { %v3377_v19 = vmax.f32 %v3345_v63, 0.0  ;;  %v5138_v44 = vpop.f32.mrb[24].mxu0 }
 0x2f7   : > { %v5238_v2 = vadd.f32 %v7368_v23, %v5138_v44  ;;  %v3206_v1 = vpop.f32.mrb[25].mxu0  ;;  %v3407_v4 = vpack.c.bf16 %v3379_v38, %v3378_v24 }
 0x2f8   : > { %v5241_v39 = vadd.f32 %v7356_v7, %v3206_v1  ;;  %v5139_v10 = vpop.f32.mrb[26].mxu0  ;;  %v3406_v48 = vpack.c.bf16 %v3377_v19, %v3376_v18 }
 0x2f9   : > { %v3350_v43 = vadd.f32 %v5238_v2, %v7451_v55  ;;  %v5244_v16 = vadd.f32 %v7371_v45, %v5139_v10  ;;  %v3209_v57 = vpop.f32.mrb[27].mxu0 }
 0x2fa   : > { %v3348_v22 = vadd.f32 %v5241_v39, %v7451_v55  ;;  %v5247_v15 = vadd.f32 %v7359_v53, %v3209_v57  ;;  %5180 = vmatprep.mubr.bf16.mxu1 %v3406_v48 }
 0x2fb   : > { %v3351_v61 = vadd.f32 %v5244_v16, %v7451_v55  ;;  %5181 = vmatmul.mubr.bf16.gmra.mrb[148].mxu1 %v3407_v4  ;;  %v3382_v31 = vmax.f32 %v3350_v43, 0.0 }
 0x2fc   : > { %v3349_v23 = vadd.f32 %v5247_v15, %v7451_v55  ;;  %v3380_v7 = vmax.f32 %v3348_v22, 0.0 }
 0x2fd   : > { %v3383_v33 = vmax.f32 %v3351_v61, 0.0 }
 0x2fe   : > { %v3381_v47 = vmax.f32 %v3349_v23, 0.0  ;;  %v5142_v37 = vpop.f32.mrb[28].mxu0 }
 0x2ff   : > { %v5250_v12 = vadd.f32 %v7392_v40, %v5142_v37  ;;  %v3222_v46 = vpop.f32.mrb[29].mxu0  ;;  %v3409_v45 = vpack.c.bf16 %v3383_v33, %v3382_v31 }
 0x300   : > { %v5253_v6 = vadd.f32 %v7380_v32, %v3222_v46  ;;  %v5143_v13 = vpop.f32.mrb[30].mxu0  ;;  %v3408_v42 = vpack.c.bf16 %v3381_v47, %v3380_v7 }
 0x301   : > { %v3354_v53 = vadd.f32 %v5250_v12, %v7451_v55  ;;  %v5256_v0 = vadd.f32 %v7395_v34, %v5143_v13  ;;  %v3225_v35 = vpop.f32.mrb[31].mxu0 }
 0x302   : > { %v3352_v51 = vadd.f32 %v5253_v6, %v7451_v55  ;;  %v5259_v41 = vadd.f32 %v7383_v9, %v3225_v35  ;;  %5184 = vmatprep.mubr.bf16.mxu1 %v3408_v42 }
 0x303   : > { %v3355_v17 = vadd.f32 %v5256_v0, %v7451_v55  ;;  %5185 = vmatmul.mubr.bf16.gmra.mrb[152].mxu1 %v3409_v45  ;;  %v3386_v25 = vmax.f32 %v3354_v53, 0.0 }
 0x304   : > { %v3353_v40 = vadd.f32 %v5259_v41, %v7451_v55  ;;  %v3384_v32 = vmax.f32 %v3352_v51, 0.0 }
 0x305   : > { %v3387_v11 = vmax.f32 %v3355_v17, 0.0 }
 0x306   : > { %v3385_v62 = vmax.f32 %v3353_v40, 0.0  ;;  %v5146_v56 = vpop.f32.mrb[32].mxu0 }
 0x307   : > { %v5262_v14 = vadd.f32 %v7408_v58, %v5146_v56  ;;  %v3238_v36 = vpop.f32.mrb[33].mxu0  ;;  %v3411_v34 = vpack.c.bf16 %v3387_v11, %v3386_v25 }
 0x308   : > { %v5265_v30 = vadd.f32 %v7402_v8, %v3238_v36  ;;  %v5147_v63 = vpop.f32.mrb[34].mxu0  ;;  %v3410_v24 = vpack.c.bf16 %v3385_v62, %v3384_v32 }
 0x309   : > { %v3358_v9 = vadd.f32 %v5262_v14, %v7451_v55  ;;  %v5268_v38 = vadd.f32 %v7411_v3, %v5147_v63  ;;  %v3241_v18 = vpop.f32.mrb[35].mxu0 }
 0x30a   : > { %v3356_v19 = vadd.f32 %v5265_v30, %v7451_v55  ;;  %v5271_v44 = vadd.f32 %v7405_v60, %v3241_v18  ;;  %5188 = vmatprep.mubr.bf16.mxu1 %v3410_v24 }
 0x30b   : > { %v3359_v2 = vadd.f32 %v5268_v38, %v7451_v55  ;;  %5189 = vmatmul.mubr.bf16.gmra.mrb[156].mxu1 %v3411_v34  ;;  %v3390_v1 = vmax.f32 %v3358_v9, 0.0 }
 0x30c   : > { %v3357_v58 = vadd.f32 %v5271_v44, %v7451_v55  ;;  %v3388_v8 = vmax.f32 %v3356_v19, 0.0 }
 0x30d   : > { %v3391_v4 = vmax.f32 %v3359_v2, 0.0 }
 0x30e   : > { %v3389_v39 = vmax.f32 %v3357_v58, 0.0  ;;  %v5150_v10 = vpop.f32.mrb[36].mxu0 }
 0x30f   : > { %v5274_v48 = vadd.f32 %v7420_v26, %v5150_v10  ;;  %v3254_v43 = vpop.f32.mrb[37].mxu0  ;;  %v3413_v3 = vpack.c.bf16 %v3391_v4, %v3390_v1  ;;  %v5497_v4 = vld [vmem:[%s5575_s12] sm:$0xff]  }
 0x310   : > { %v5277_v16 = vadd.f32 %v7414_v29, %v3254_v43  ;;  %v5151_v57 = vpop.f32.mrb[38].mxu0  ;;  %v3412_v22 = vpack.c.bf16 %v3389_v39, %v3388_v8  ;;  %v3652_v8 = vunpack.c.l.bf16 %v5497_v4 }
 0x311   : > { %v3362_v60 = vadd.f32 %v5274_v48, %v7451_v55  ;;  %v5280_v15 = vadd.f32 %v7423_v54, %v5151_v57  ;;  %v3257_v61 = vpop.f32.mrb[39].mxu0 }
 0x312   : > { %v3360_v23 = vadd.f32 %v5277_v16, %v7451_v55  ;;  %v5283_v31 = vadd.f32 %v7417_v5, %v3257_v61  ;;  %5192 = vmatprep.mubr.bf16.mxu1 %v3412_v22 }
 0x313   : > { %v3363_v33 = vadd.f32 %v5280_v15, %v7451_v55  ;;  %5193 = vmatmul.mubr.bf16.gmra.mrb[160].mxu1 %v3413_v3  ;;  %v3394_v7 = vmax.f32 %v3362_v60, 0.0  ;;  %v3653_v3 = vunpack.c.h.bf16 %v5497_v4 }
 0x314   : > { %v3361_v26 = vadd.f32 %v5283_v31, %v7451_v55  ;;  %v3392_v29 = vmax.f32 %v3360_v23, 0.0 }
 0x315   : > { %v3395_v47 = vmax.f32 %v3363_v33, 0.0 }
 0x316   : > { %v3393_v37 = vmax.f32 %v3361_v26, 0.0  ;;  %v5154_v12 = vpop.f32.mrb[40].mxu0 }
 0x317   : > { %v5286_v46 = vadd.f32 %v7432_v20, %v5154_v12  ;;  %v3270_v45 = vpop.f32.mrb[41].mxu0  ;;  %v3415_v54 = vpack.c.bf16 %v3395_v47, %v3394_v7  ;;  %v5498_v47 = vld [vmem:[%s5575_s12 + $0x18] sm:$0xff]  }
 0x318   : > { %v5289_v6 = vadd.f32 %v7426_v49, %v3270_v45  ;;  %v5155_v13 = vpop.f32.mrb[42].mxu0  ;;  %v3414_v42 = vpack.c.bf16 %v3393_v37, %v3392_v29  ;;  %v3658_v29 = vunpack.c.l.bf16 %v5498_v47  ;;  %v5499_v45 = vld [vmem:[%s5575_s12 + $0x10] sm:$0xff]  }
 0x319   : > { %v3366_v5 = vadd.f32 %v5286_v46, %v7451_v55  ;;  %v5292_v53 = vadd.f32 %v7435_v27, %v5155_v13  ;;  %v3273_v0 = vpop.f32.mrb[43].mxu0 }
 0x31a   : > { %v3364_v35 = vadd.f32 %v5289_v6, %v7451_v55  ;;  %v5295_v51 = vadd.f32 %v7429_v28, %v3273_v0  ;;  %5196 = vmatprep.mubr.bf16.mxu1 %v3414_v42 }
 0x31b   : > { %v3367_v41 = vadd.f32 %v5292_v53, %v7451_v55  ;;  %5197 = vmatmul.mubr.bf16.gmra.mrb[164].mxu1 %v3415_v54  ;;  %v3398_v17 = vmax.f32 %v3366_v5, 0.0  ;;  %v3656_v54 = vunpack.c.l.bf16 %v5499_v45  ;;  %v3659_v5 = vunpack.c.h.bf16 %v5498_v47 }
 0x31c   : > { %v3365_v20 = vadd.f32 %v5295_v51, %v7451_v55  ;;  %v3396_v49 = vmax.f32 %v3364_v35, 0.0  ;;  %v3657_v51 = vunpack.c.h.bf16 %v5499_v45 }
 0x31d   : > { %v3399_v40 = vmax.f32 %v3367_v41, 0.0 }
 0x31e   : > { %v3397_v25 = vmax.f32 %v3365_v20, 0.0  ;;  %v5158_v11 = vpop.f32.mrb[44].mxu0 }
 0x31f   : > { %v5298_v32 = vadd.f32 %v7444_v59, %v5158_v11  ;;  %v3286_v62 = vpop.f32.mrb[45].mxu0  ;;  %v3417_v27 = vpack.c.bf16 %v3399_v40, %v3398_v17 }
 0x320   : > { %v5301_v56 = vadd.f32 %v7438_v52, %v3286_v62  ;;  %v5159_v14 = vpop.f32.mrb[46].mxu0  ;;  %v3416_v36 = vpack.c.bf16 %v3397_v25, %v3396_v49 }
 0x321   : > { %v3370_v28 = vadd.f32 %v5298_v32, %v7451_v55  ;;  %v5304_v34 = vadd.f32 %v7446_v50, %v5159_v14  ;;  %v3289_v30 = vpop.f32.mrb[47].mxu0  ;;  %v7520_v50 = vld [vmem:[%s7662_s6] ss:$0 sm:$0xff]  ;;  %v8107_v14 = vld [vmem:[#allocation9_spill] sm:$0xff] }
 0x322   : > { %v3368_v63 = vadd.f32 %v5301_v56, %v7451_v55  ;;  %v5307_v24 = vadd.f32 %v7441_v21, %v3289_v30  ;;  %5200 = vmatprep.mubr.bf16.mxu1 %v3416_v36  ;;  %v5496_v21 = vld [vmem:[%s5575_s12 + $0x8] sm:$0xff]   ;;  %v3662_v36 = vunpack.c.l.bf16 %v8107_v14 }
 0x323   : > { %v3371_v59 = vadd.f32 %v5304_v34, %v7451_v55  ;;  %5201 = vmatmul.mubr.bf16.gmra.mrb[168].mxu1 %v3417_v27  ;;  %v3402_v52 = vmax.f32 %v3370_v28, 0.0  ;;  %v3654_v58 = vunpack.c.l.bf16 %v5496_v21  ;;  %v3655_v10 = vunpack.c.h.bf16 %v5496_v21 }
 0x324   : > { %v3369_v9 = vadd.f32 %v5307_v24, %v7451_v55  ;;  %v3400_v18 = vmax.f32 %v3368_v63, 0.0  ;;  %v8108_v63 = vld [vmem:[#allocation6_spill] sm:$0xff] }
 0x325   : > { %v3403_v38 = vmax.f32 %v3371_v59, 0.0  ;;  %v3660_v24 = vunpack.c.l.bf16 %v8108_v63 }
 0x326   : > { %v3401_v19 = vmax.f32 %v3369_v9, 0.0 }
 0x327   : > { %v3419_v44 = vpack.c.bf16 %v3403_v38, %v3402_v52  ;;  %v3663_v38 = vunpack.c.h.bf16 %v8107_v14 }
 0x328   : > { %v3418_v2 = vpack.c.bf16 %v3401_v19, %v3400_v18 }
 0x32a   : > { %5204 = vmatprep.mubr.bf16.mxu1 %v3418_v2  ;;  %v3661_v2 = vunpack.c.h.bf16 %v8108_v63 }
 0x32b   : > { %5205 = vmatmul.mubr.bf16.gmra.mrb[172].mxu1 %v3419_v44 }
 0x3c6   : > { %v5178_v1 = vpop.f32.mrb[144].mxu1 }
 0x3c7   : > { %v3534_v55 = vadd.f32 %v5178_v1, %v7520_v50  ;;  %v3525_v39 = vpop.f32.mrb[145].mxu1 }
 0x3c8   : > { %v3526_v48 = vadd.f32 %v7520_v50, %v3525_v39  ;;  %v5179_v43 = vpop.f32.mrb[146].mxu1 }
 0x3c9   : > { %v3686_v16 = vadd.f32 %v3654_v58, %v3534_v55  ;;  %v3537_v57 = vadd.f32 %v5179_v43, %v7520_v50  ;;  %v3528_v22 = vpop.f32.mrb[147].mxu1 }
 0x3ca   : > { %v3684_v60 = vadd.f32 %v3652_v8, %v3526_v48  ;;  %v3529_v15 = vadd.f32 %v7520_v50, %v3528_v22 }
 0x3cb   : > { %v3718_v61 = vmax.f32 %v3686_v16, 0.0  ;;  %v3687_v23 = vadd.f32 %v3655_v10, %v3537_v57  ;;  %v8109_v16 = vld [vmem:[#allocation13_spill] sm:$0xff] }
 0x3cc   : > { %v3716_v31 = vmax.f32 %v3684_v60, 0.0  ;;  %v3685_v33 = vadd.f32 %v3653_v3, %v3529_v15  ;;  %v3666_v57 = vunpack.c.l.bf16 %v8109_v16 }
 0x3cd   : > { %v4224_v26 = vpack.c.bf16 %v3718_v61, %v3718_v61  ;;  %v3719_v7 = vmax.f32 %v3687_v23, 0.0  ;;  %v8110_v61 = vld [vmem:[#allocation10_spill] sm:$0xff] }
 0x3ce   : > { %v4222_v37 = vpack.c.bf16 %v3716_v31, %v3716_v31  ;;  %v3717_v12 = vmax.f32 %v3685_v33, 0.0  ;;  %v5182_v46 = vpop.f32.mrb[148].mxu1  ;;  %v3664_v23 = vunpack.c.l.bf16 %v8110_v61 }
 0x3cf   : > { %3879 = vst.msk [vmem:[%s7533_s29 + $0x8] sm:$0xf] %vm3876_vm7, %v4224_v26  ;;  %v4225_v6 = vpack.c.bf16 %v3719_v7, %v3719_v7  ;;  %v3550_v13 = vadd.f32 %v5182_v46, %v7520_v50  ;;  %v3541_v42 = vpop.f32.mrb[149].mxu1  ;;  %v3667_v7 = vunpack.c.h.bf16 %v8109_v16 }
 0x3d0   : > { %3877 = vst.msk [vmem:[%s7533_s29] sm:$0xf] %vm3876_vm7, %v4222_v37  ;;  %v4223_v53 = vpack.c.bf16 %v3717_v12, %v3717_v12  ;;  %v3542_v0 = vadd.f32 %v7520_v50, %v3541_v42  ;;  %v5183_v35 = vpop.f32.mrb[150].mxu1  ;;  %v3665_v12 = vunpack.c.h.bf16 %v8110_v61 }
 0x3d1   : > { %3880 = vst.msk [vmem:[%s7533_s29 + $0xc] sm:$0xf] %vm3876_vm7, %v4225_v6  ;;  %v3690_v41 = vadd.f32 %v3658_v29, %v3550_v13  ;;  %v3553_v20 = vadd.f32 %v5183_v35, %v7520_v50  ;;  %v3544_v17 = vpop.f32.mrb[151].mxu1 }
 0x3d2   : > { %3878 = vst.msk [vmem:[%s7533_s29 + $0x4] sm:$0xf] %vm3876_vm7, %v4223_v53  ;;  %v3688_v40 = vadd.f32 %v3656_v54, %v3542_v0  ;;  %v3545_v49 = vadd.f32 %v7520_v50, %v3544_v17 }
 0x3d3   : > { %v3722_v25 = vmax.f32 %v3690_v41, 0.0  ;;  %v3691_v11 = vadd.f32 %v3659_v5, %v3553_v20  ;;  %v8111_v41 = vld [vmem:[#allocation4_spill] sm:$0xff] }
 0x3d4   : > { %v3720_v32 = vmax.f32 %v3688_v40, 0.0  ;;  %v3689_v62 = vadd.f32 %v3657_v51, %v3545_v49  ;;  %v3670_v20 = vunpack.c.l.bf16 %v8111_v41 }
 0x3d5   : > { %v4228_v27 = vpack.c.bf16 %v3722_v25, %v3722_v25  ;;  %v3723_v56 = vmax.f32 %v3691_v11, 0.0  ;;  %v8112_v25 = vld [vmem:[#allocation3_spill] sm:$0xff] }
 0x3d6   : > { %v4226_v28 = vpack.c.bf16 %v3720_v32, %v3720_v32  ;;  %v3721_v34 = vmax.f32 %v3689_v62, 0.0  ;;  %v5186_v30 = vpop.f32.mrb[152].mxu1  ;;  %v3668_v11 = vunpack.c.l.bf16 %v8112_v25 }
 0x3d7   : > { %3883 = vst.msk [vmem:[%s7533_s29 + $0x18] sm:$0xf] %vm3876_vm7, %v4228_v27  ;;  %v4229_v59 = vpack.c.bf16 %v3723_v56, %v3723_v56  ;;  %v3566_v9 = vadd.f32 %v5186_v30, %v7520_v50  ;;  %v3557_v52 = vpop.f32.mrb[153].mxu1  ;;  %v3671_v56 = vunpack.c.h.bf16 %v8111_v41 }
 0x3d8   : > { %3881 = vst.msk [vmem:[%s7533_s29 + $0x10] sm:$0xf] %vm3876_vm7, %v4226_v28  ;;  %v4227_v18 = vpack.c.bf16 %v3721_v34, %v3721_v34  ;;  %v3558_v19 = vadd.f32 %v7520_v50, %v3557_v52  ;;  %v5187_v44 = vpop.f32.mrb[154].mxu1  ;;  %v3669_v34 = vunpack.c.h.bf16 %v8112_v25 }
 0x3d9   : > { %3884 = vst.msk [vmem:[%s7533_s29 + $0x1c] sm:$0xf] %vm3876_vm7, %v4229_v59  ;;  %v3694_v21 = vadd.f32 %v3662_v36, %v3566_v9  ;;  %v3569_v58 = vadd.f32 %v5187_v44, %v7520_v50  ;;  %v3560_v1 = vpop.f32.mrb[155].mxu1 }
 0x3da   : > { %3882 = vst.msk [vmem:[%s7533_s29 + $0x14] sm:$0xf] %vm3876_vm7, %v4227_v18  ;;  %v3692_v4 = vadd.f32 %v3660_v24, %v3558_v19  ;;  %v3561_v8 = vadd.f32 %v7520_v50, %v3560_v1 }
 0x3db   : > { %v3726_v55 = vmax.f32 %v3694_v21, 0.0  ;;  %v3695_v39 = vadd.f32 %v3663_v38, %v3569_v58  ;;  %v8113_v21 = vld [vmem:[#allocation7_spill] sm:$0xff] }
 0x3dc   : > { %v3724_v10 = vmax.f32 %v3692_v4, 0.0  ;;  %v3693_v48 = vadd.f32 %v3661_v2, %v3561_v8  ;;  %v3674_v58 = vunpack.c.l.bf16 %v8113_v21 }
 0x3dd   : > { %v4232_v43 = vpack.c.bf16 %v3726_v55, %v3726_v55  ;;  %v3727_v3 = vmax.f32 %v3695_v39, 0.0  ;;  %v8114_v55 = vld [vmem:[#allocation5_spill] sm:$0xff] }
 0x3de   : > { %v4230_v22 = vpack.c.bf16 %v3724_v10, %v3724_v10  ;;  %v3725_v60 = vmax.f32 %v3693_v48, 0.0  ;;  %v5190_v15 = vpop.f32.mrb[156].mxu1  ;;  %v3672_v39 = vunpack.c.l.bf16 %v8114_v55 }
 0x3df   : > { %3887 = vst.msk [vmem:[%s7533_s29 + $0x28] sm:$0xf] %vm3876_vm7, %v4232_v43  ;;  %v4233_v31 = vpack.c.bf16 %v3727_v3, %v3727_v3  ;;  %v3582_v33 = vadd.f32 %v5190_v15, %v7520_v50  ;;  %v3573_v26 = vpop.f32.mrb[157].mxu1  ;;  %v3675_v3 = vunpack.c.h.bf16 %v8113_v21 }
 0x3e0   : > { %3885 = vst.msk [vmem:[%s7533_s29 + $0x20] sm:$0xf] %vm3876_vm7, %v4230_v22  ;;  %v4231_v47 = vpack.c.bf16 %v3725_v60, %v3725_v60  ;;  %v3574_v29 = vadd.f32 %v7520_v50, %v3573_v26  ;;  %v5191_v37 = vpop.f32.mrb[158].mxu1  ;;  %v3673_v60 = vunpack.c.h.bf16 %v8114_v55 }
 0x3e1   : > { %3888 = vst.msk [vmem:[%s7533_s29 + $0x2c] sm:$0xf] %vm3876_vm7, %v4233_v31  ;;  %v3698_v46 = vadd.f32 %v3666_v57, %v3582_v33  ;;  %v3585_v45 = vadd.f32 %v5191_v37, %v7520_v50  ;;  %v3576_v54 = vpop.f32.mrb[159].mxu1 }
 0x3e2   : > { %3886 = vst.msk [vmem:[%s7533_s29 + $0x24] sm:$0xf] %vm3876_vm7, %v4231_v47  ;;  %v3696_v6 = vadd.f32 %v3664_v23, %v3574_v29  ;;  %v3577_v13 = vadd.f32 %v7520_v50, %v3576_v54 }
 0x3e3   : > { %v3730_v42 = vmax.f32 %v3698_v46, 0.0  ;;  %v3699_v5 = vadd.f32 %v3667_v7, %v3585_v45  ;;  %v8115_v46 = vld [vmem:[#allocation11_spill] sm:$0xff] }
 0x3e4   : > { %v3728_v53 = vmax.f32 %v3696_v6, 0.0  ;;  %v3697_v0 = vadd.f32 %v3665_v12, %v3577_v13  ;;  %v3678_v45 = vunpack.c.l.bf16 %v8115_v46 }
 0x3e5   : > { %v4236_v35 = vpack.c.bf16 %v3730_v42, %v3730_v42  ;;  %v3731_v51 = vmax.f32 %v3699_v5, 0.0  ;;  %v8116_v42 = vld [vmem:[#allocation8_spill] sm:$0xff] }
 0x3e6   : > { %v4234_v17 = vpack.c.bf16 %v3728_v53, %v3728_v53  ;;  %v3729_v40 = vmax.f32 %v3697_v0, 0.0  ;;  %v5194_v49 = vpop.f32.mrb[160].mxu1  ;;  %v3676_v5 = vunpack.c.l.bf16 %v8116_v42 }
 0x3e7   : > { %3891 = vst.msk [vmem:[%s7533_s29 + $0x38] sm:$0xf] %vm3876_vm7, %v4236_v35  ;;  %v4237_v32 = vpack.c.bf16 %v3731_v51, %v3731_v51  ;;  %v3598_v62 = vadd.f32 %v5194_v49, %v7520_v50  ;;  %v3589_v27 = vpop.f32.mrb[161].mxu1  ;;  %v3679_v51 = vunpack.c.h.bf16 %v8115_v46 }
 0x3e8   : > { %3889 = vst.msk [vmem:[%s7533_s29 + $0x30] sm:$0xf] %vm3876_vm7, %v4234_v17  ;;  %v4235_v14 = vpack.c.bf16 %v3729_v40, %v3729_v40  ;;  %v3590_v36 = vadd.f32 %v7520_v50, %v3589_v27  ;;  %v5195_v28 = vpop.f32.mrb[162].mxu1  ;;  %v3677_v40 = vunpack.c.h.bf16 %v8116_v42 }
 0x3e9   : > { %3892 = vst.msk [vmem:[%s7533_s29 + $0x3c] sm:$0xf] %vm3876_vm7, %v4237_v32  ;;  %v3702_v30 = vadd.f32 %v3670_v20, %v3598_v62  ;;  %v3601_v63 = vadd.f32 %v5195_v28, %v7520_v50  ;;  %v3592_v24 = vpop.f32.mrb[163].mxu1 }
 0x3ea   : > { %3890 = vst.msk [vmem:[%s7533_s29 + $0x34] sm:$0xf] %vm3876_vm7, %v4235_v14  ;;  %v3700_v59 = vadd.f32 %v3668_v11, %v3590_v36  ;;  %v3593_v9 = vadd.f32 %v7520_v50, %v3592_v24 }
 0x3eb   : > { %v3734_v52 = vmax.f32 %v3702_v30, 0.0  ;;  %v3703_v38 = vadd.f32 %v3671_v56, %v3601_v63  ;;  %v8117_v30 = vld [vmem:[#allocation14_spill] sm:$0xff] }
 0x3ec   : > { %v3732_v18 = vmax.f32 %v3700_v59, 0.0  ;;  %v3701_v19 = vadd.f32 %v3669_v34, %v3593_v9  ;;  %v3682_v63 = vunpack.c.l.bf16 %v8117_v30 }
 0x3ed   : > { %v4240_v44 = vpack.c.bf16 %v3734_v52, %v3734_v52  ;;  %v3735_v2 = vmax.f32 %v3703_v38, 0.0  ;;  %v8118_v52 = vld [vmem:[#allocation12_spill] sm:$0xff] }
 0x3ee   : > { %v4238_v1 = vpack.c.bf16 %v3732_v18, %v3732_v18  ;;  %v3733_v4 = vmax.f32 %v3701_v19, 0.0  ;;  %v5198_v8 = vpop.f32.mrb[164].mxu1  ;;  %v3680_v38 = vunpack.c.l.bf16 %v8118_v52 }
 0x3ef   : > { %3895 = vst.msk [vmem:[%s7533_s29 + $0x48] sm:$0xf] %vm3876_vm7, %v4240_v44  ;;  %v4241_v10 = vpack.c.bf16 %v3735_v2, %v3735_v2  ;;  %v3614_v48 = vadd.f32 %v5198_v8, %v7520_v50  ;;  %v3605_v43 = vpop.f32.mrb[165].mxu1  ;;  %v3683_v2 = vunpack.c.h.bf16 %v8117_v30 }
 0x3f0   : > { %3893 = vst.msk [vmem:[%s7533_s29 + $0x40] sm:$0xf] %vm3876_vm7, %v4238_v1  ;;  %v4239_v16 = vpack.c.bf16 %v3733_v4, %v3733_v4  ;;  %v3606_v57 = vadd.f32 %v7520_v50, %v3605_v43  ;;  %v5199_v22 = vpop.f32.mrb[166].mxu1  ;;  %v3681_v4 = vunpack.c.h.bf16 %v8118_v52 }
 0x3f1   : > { %3896 = vst.msk [vmem:[%s7533_s29 + $0x4c] sm:$0xf] %vm3876_vm7, %v4241_v10  ;;  %v3706_v15 = vadd.f32 %v3674_v58, %v3614_v48  ;;  %v3617_v61 = vadd.f32 %v5199_v22, %v7520_v50  ;;  %v3608_v23 = vpop.f32.mrb[167].mxu1 }
 0x3f2   : > { %3894 = vst.msk [vmem:[%s7533_s29 + $0x44] sm:$0xf] %vm3876_vm7, %v4239_v16  ;;  %v3704_v31 = vadd.f32 %v3672_v39, %v3606_v57  ;;  %v3609_v33 = vadd.f32 %v7520_v50, %v3608_v23 }
 0x3f3   : > { %v3738_v26 = vmax.f32 %v3706_v15, 0.0  ;;  %v3707_v7 = vadd.f32 %v3675_v3, %v3617_v61 }
 0x3f4   : > { %v3736_v47 = vmax.f32 %v3704_v31, 0.0  ;;  %v3705_v29 = vadd.f32 %v3673_v60, %v3609_v33 }
 0x3f5   : > { %v4244_v37 = vpack.c.bf16 %v3738_v26, %v3738_v26  ;;  %v3739_v12 = vmax.f32 %v3707_v7, 0.0 }
 0x3f6   : > { %v4242_v54 = vpack.c.bf16 %v3736_v47, %v3736_v47  ;;  %v3737_v6 = vmax.f32 %v3705_v29, 0.0  ;;  %v5202_v13 = vpop.f32.mrb[168].mxu1 }
 0x3f7   : > { %3899 = vst.msk [vmem:[%s7533_s29 + $0x58] sm:$0xf] %vm3876_vm7, %v4244_v37  ;;  %v4245_v53 = vpack.c.bf16 %v3739_v12, %v3739_v12  ;;  %v3630_v0 = vadd.f32 %v5202_v13, %v7520_v50  ;;  %v3621_v35 = vpop.f32.mrb[169].mxu1 }
 0x3f8   : > { %3897 = vst.msk [vmem:[%s7533_s29 + $0x50] sm:$0xf] %vm3876_vm7, %v4242_v54  ;;  %v4243_v41 = vpack.c.bf16 %v3737_v6, %v3737_v6  ;;  %v3622_v20 = vadd.f32 %v7520_v50, %v3621_v35  ;;  %v5203_v17 = vpop.f32.mrb[170].mxu1 }
 0x3f9   : > { %3900 = vst.msk [vmem:[%s7533_s29 + $0x5c] sm:$0xf] %vm3876_vm7, %v4245_v53  ;;  %v3710_v49 = vadd.f32 %v3678_v45, %v3630_v0  ;;  %v3633_v25 = vadd.f32 %v5203_v17, %v7520_v50  ;;  %v3624_v11 = vpop.f32.mrb[171].mxu1 }
 0x3fa   : > { %3898 = vst.msk [vmem:[%s7533_s29 + $0x54] sm:$0xf] %vm3876_vm7, %v4243_v41  ;;  %v3708_v32 = vadd.f32 %v3676_v5, %v3622_v20  ;;  %v3625_v62 = vadd.f32 %v7520_v50, %v3624_v11 }
 0x3fb   : > { %v3742_v27 = vmax.f32 %v3710_v49, 0.0  ;;  %v3711_v56 = vadd.f32 %v3679_v51, %v3633_v25 }
 0x3fc   : > { %v3740_v14 = vmax.f32 %v3708_v32, 0.0  ;;  %v3709_v36 = vadd.f32 %v3677_v40, %v3625_v62 }
 0x3fd   : > { %v4248_v28 = vpack.c.bf16 %v3742_v27, %v3742_v27  ;;  %v3743_v34 = vmax.f32 %v3711_v56, 0.0 }
 0x3fe   : > { %v4246_v24 = vpack.c.bf16 %v3740_v14, %v3740_v14  ;;  %v3741_v59 = vmax.f32 %v3709_v36, 0.0  ;;  %v5206_v9 = vpop.f32.mrb[172].mxu1 }
 0x3ff   : > { %3903 = vst.msk [vmem:[%s7533_s29 + $0x68] sm:$0xf] %vm3876_vm7, %v4248_v28  ;;  %v4249_v18 = vpack.c.bf16 %v3743_v34, %v3743_v34  ;;  %v3646_v19 = vadd.f32 %v5206_v9, %v7520_v50  ;;  %v3637_v44 = vpop.f32.mrb[173].mxu1 }
 0x400   : > { %3901 = vst.msk [vmem:[%s7533_s29 + $0x60] sm:$0xf] %vm3876_vm7, %v4246_v24  ;;  %v4247_v21 = vpack.c.bf16 %v3741_v59, %v3741_v59  ;;  %v3638_v58 = vadd.f32 %v7520_v50, %v3637_v44  ;;  %v5207_v1 = vpop.f32.mrb[174].mxu1 }
 0x401   : > { %3904 = vst.msk [vmem:[%s7533_s29 + $0x6c] sm:$0xf] %vm3876_vm7, %v4249_v18  ;;  %v3714_v8 = vadd.f32 %v3682_v63, %v3646_v19  ;;  %v3649_v55 = vadd.f32 %v5207_v1, %v7520_v50  ;;  %v3640_v39 = vpop.f32.mrb[175].mxu1 }
 0x402   : > { %3902 = vst.msk [vmem:[%s7533_s29 + $0x64] sm:$0xf] %vm3876_vm7, %v4247_v21  ;;  %v3712_v10 = vadd.f32 %v3680_v38, %v3638_v58  ;;  %v3641_v48 = vadd.f32 %v7520_v50, %v3640_v39 }
 0x403   : > { %v3746_v43 = vmax.f32 %v3714_v8, 0.0  ;;  %v3715_v3 = vadd.f32 %v3683_v2, %v3649_v55 }
 0x404   : > { %v3744_v16 = vmax.f32 %v3712_v10, 0.0  ;;  %v3713_v57 = vadd.f32 %v3681_v4, %v3641_v48 }
 0x405   : > { %v4252_v22 = vpack.c.bf16 %v3746_v43, %v3746_v43  ;;  %v3747_v60 = vmax.f32 %v3715_v3, 0.0 }
 0x406   : > { %v4250_v15 = vpack.c.bf16 %v3744_v16, %v3744_v16  ;;  %v3745_v61 = vmax.f32 %v3713_v57, 0.0 }
 0x407   : > { %3907 = vst.msk [vmem:[%s7533_s29 + $0x78] sm:$0xf] %vm3876_vm7, %v4252_v22  ;;  %v4253_v23 = vpack.c.bf16 %v3747_v60, %v3747_v60 }
 0x408   : > { %3905 = vst.msk [vmem:[%s7533_s29 + $0x70] sm:$0xf] %vm3876_vm7, %v4250_v15  ;;  %v4251_v31 = vpack.c.bf16 %v3745_v61, %v3745_v61 }
 0x409   : > { %3908 = vst.msk [vmem:[%s7533_s29 + $0x7c] sm:$0xf] %vm3876_vm7, %v4253_v23 }
 0x40a   : > { %3906 = vst.msk [vmem:[%s7533_s29 + $0x74] sm:$0xf] %vm3876_vm7, %v4251_v31 }
 0x40b PF: > { %s17_s24 = sadd.s32 1, %s5506_s24  }
 0x40c   : > { %p14_p4 = scmp.ge.s32.totalorder %s17_s24, 4  }
 0x40e   :  { %16 = sbr.rel (!%p14_p4) target bundleno = 1 (0x1), region = 80 }

</bundles_post_ra>
